<compile_context>
chip_gen: v6e
topology: v6e:2x2x1
jax: 0.10.0
libtpu: 0.0.40
codegen_flags: <defaults>
</compile_context>

<pallas_src>
import jax
import jax.numpy as jnp
from jax.experimental import pallas as pl
from jax.experimental.pallas import tpu as pltpu

BN_EPS = 1e-4


def _im2col_conv(read_tap, p_ref, w_ref, H, W, C, dil):
    """3x3 'same' conv with dilation `dil` as a single (H*W, 9C) x (9C, C) MXU matmul.

    read_tap(sh0, sh1, sw0, sw1) -> f32 source window of shape (sh1-sh0, sw1-sw0, C).
    p_ref: VMEM scratch (H, W, 9*C) used as the im2col patch matrix.
    """
    KC = 9 * C
    # Zero only the `dil`-wide border strips: those are the only output positions where some
    # tap falls outside the image; the interior is fully overwritten by every tap below.
    p_ref[0:dil, :, :] = jnp.zeros((dil, W, KC), jnp.float32)
    p_ref[H - dil:H, :, :] = jnp.zeros((dil, W, KC), jnp.float32)
    p_ref[:, 0:dil, :] = jnp.zeros((H, dil, KC), jnp.float32)
    p_ref[:, W - dil:W, :] = jnp.zeros((H, dil, KC), jnp.float32)
    for kh in range(3):
        for kw in range(3):
            oh = dil * (kh - 1)
            ow = dil * (kw - 1)
            dh0, dh1 = max(0, -oh), H - max(0, oh)   # valid destination rows
            dw0, dw1 = max(0, -ow), W - max(0, ow)   # valid destination cols
            sh0, sh1 = max(0, oh), H - max(0, -oh)   # matching source rows
            sw0, sw1 = max(0, ow), W - max(0, -ow)   # matching source cols
            k = kh * 3 + kw
            p_ref[dh0:dh1, dw0:dw1, k * C:(k + 1) * C] = read_tap(sh0, sh1, sw0, sw1)
    patches = p_ref[...].reshape(H * W, KC)          # (M, 9C)
    # NOTE(perf): on v6e/v7x patches + weights can be bf16 with f32 accumulation; kept f32
    # here to stay within the 1e-3 reference tolerance of the test.
    return jnp.dot(patches, w_ref[...], preferred_element_type=jnp.float32)


def conv1_stats_kernel(x_ref, w1_ref, b1_ref, y_ref, part_ref, p_ref):
    """Phase 1 (per batch sample): conv1 + bias, emit y and BN partial sums (sum, sumsq)."""
    _, H, W, C = x_ref.shape

    def read_tap(sh0, sh1, sw0, sw1):
        return x_ref[0, sh0:sh1, sw0:sw1, :].astype(jnp.float32)

    y = _im2col_conv(read_tap, p_ref, w1_ref, H, W, C, dil=1)   # (M, C)
    y = y + b1_ref[...]
    # fused single-pass BN statistics (per-sample partials; reduced globally in the wrapper)
    part_ref[0, 0:1, :] = jnp.sum(y, axis=0, keepdims=True)
    part_ref[0, 1:2, :] = jnp.sum(y * y, axis=0, keepdims=True)
    y_ref[0] = y.reshape(H, W, C).astype(y_ref.dtype)


def bn_dconv_res_kernel(y_ref, x_ref, scale_ref, shift_ref, w2_ref, b2_ref, o_ref, p_ref):
    """Phase 2 (per batch sample): BN affine (global stats) + ReLU + dilated conv + ReLU + add."""
    _, H, W, C = x_ref.shape
    yn = jnp.maximum(y_ref[0] * scale_ref[...] + shift_ref[...], 0.0)   # (H, W, C) f32

    def read_tap(sh0, sh1, sw0, sw1):
        return yn[sh0:sh1, sw0:sw1, :]

    acc = _im2col_conv(read_tap, p_ref, w2_ref, H, W, C, dil=2)         # (M, C)
    res = jnp.maximum(acc + b2_ref[...], 0.0)
    o_ref[0] = (x_ref[0].astype(jnp.float32) + res.reshape(H, W, C)).astype(o_ref.dtype)


def resblock_cbrdr(x_nchw, w1, b1, gamma, beta, w2, b2):
    """x_nchw: (N, C, H, W) like PyTorch; w1/w2: (3, 3, Cin, Cout) (HWIO). Returns NCHW."""
    N, C, H, W = x_nchw.shape
    x = jnp.transpose(x_nchw, (0, 2, 3, 1))                 # NHWC, no pre-padding
    w1r = w1.reshape(9 * C, C).astype(jnp.float32)          # (kh,kw,cin)-flattened -> K=9C
    w2r = w2.reshape(9 * C, C).astype(jnp.float32)

    cparams = pltpu.CompilerParams(
        dimension_semantics=("parallel",),                  # batch grid -> both TCs on v7x
        vmem_limit_bytes=32 * 1024 * 1024,
    )

    sample_spec = pl.BlockSpec((1, H, W, C), lambda n: (n, 0, 0, 0))
    vec_spec = pl.BlockSpec((1, C), lambda n: (0, 0))
    w_spec = pl.BlockSpec((9 * C, C), lambda n: (0, 0))

    # ---- phase 1: conv1 + per-sample BN partial sums ----
    y, part = pl.pallas_call(
        conv1_stats_kernel,
        grid=(N,),
        in_specs=[sample_spec, w_spec, vec_spec],
        out_specs=[sample_spec, pl.BlockSpec((1, 2, C), lambda n: (n, 0, 0))],
        out_shape=(jax.ShapeDtypeStruct((N, H, W, C), jnp.float32),
                   jax.ShapeDtypeStruct((N, 2, C), jnp.float32)),
        scratch_shapes=[pltpu.VMEM((H, W, 9 * C), jnp.float32)],
        compiler_params=cparams,
    )(x, w1r, b1.reshape(1, C).astype(jnp.float32))

    # ---- global training-mode BN statistics (tiny reduction, plain JAX) ----
    m_tot = N * H * W
    mean = jnp.sum(part[:, 0, :], axis=0) / m_tot
    var = jnp.sum(part[:, 1, :], axis=0) / m_tot - mean * mean          # biased variance
    inv = gamma * jax.lax.rsqrt(var + BN_EPS)
    scale = inv.reshape(1, C).astype(jnp.float32)
    shift = (beta - mean * inv).reshape(1, C).astype(jnp.float32)

    # ---- phase 2: normalize + ReLU + dilated conv + ReLU + residual ----
    out = pl.pallas_call(
        bn_dconv_res_kernel,
        grid=(N,),
        in_specs=[sample_spec, sample_spec, vec_spec, vec_spec, w_spec, vec_spec],
        out_specs=sample_spec,
        out_shape=jax.ShapeDtypeStruct((N, H, W, C), x_nchw.dtype),
        scratch_shapes=[pltpu.VMEM((H, W, 9 * C), jnp.float32)],
        compiler_params=cparams,
    )(y, x, scale, shift, w2r, b2.reshape(1, C).astype(jnp.float32))

    return jnp.transpose(out, (0, 3, 1, 2))


def resblock_cbrdr_ref(x, w1, b1, gamma, beta, w2, b2):
    """Pure-JAX reference matching the PyTorch forward (training-mode BN)."""
    dn = ('NCHW', 'HWIO', 'NCHW')
    y = jax.lax.conv_general_dilated(x, w1, (1, 1), ((1, 1), (1, 1)),
                                     dimension_numbers=dn)
    y = y + b1[None, :, None, None]
    mean = jnp.mean(y, axis=(0, 2, 3), keepdims=True)
    var = jnp.mean((y - mean) ** 2, axis=(0, 2, 3), keepdims=True)
    y = (y - mean) / jnp.sqrt(var + BN_EPS)
    y = y * gamma[None, :, None, None] + beta[None, :, None, None]
    y = jnp.maximum(y, 0.0)
    z = jax.lax.conv_general_dilated(y, w2, (1, 1), ((2, 2), (2, 2)),
                                     rhs_dilation=(2, 2), dimension_numbers=dn)
    z = jnp.maximum(z + b2[None, :, None, None], 0.0)
    return x + z


if __name__ == "__main__":
    key = jax.random.PRNGKey(0)
    kx, k1, kb1, kg, kb, k2, kb2 = jax.random.split(key, 7)

    N, C, H, W = 2, 8, 16, 16
    x = jax.random.normal(kx, (N, C, H, W), jnp.float32)

    w1 = 0.1 * jax.random.normal(k1, (3, 3, C, C), jnp.float32)
    b1 = 0.1 * jax.random.normal(kb1, (C,), jnp.float32)
    gamma = 1.0 + 0.1 * jax.random.normal(kg, (C,), jnp.float32)
    beta = 0.1 * jax.random.normal(kb, (C,), jnp.float32)
    w2 = 0.1 * jax.random.normal(k2, (3, 3, C, C), jnp.float32)
    b2 = 0.1 * jax.random.normal(kb2, (C,), jnp.float32)

    out = jax.jit(resblock_cbrdr)(x, w1, b1, gamma, beta, w2, b2)
    out = jax.block_until_ready(out)

    ref = resblock_cbrdr_ref(x, w1, b1, gamma, beta, w2, b2)
    assert out.shape == ref.shape == (N, C, H, W)
    max_err = float(jnp.max(jnp.abs(out - ref)))
    assert max_err < 1e-3, f"max abs error {max_err}"
    print("KERNEL_OK")
</pallas_src>

<mosaic_0001>
module attributes {stable_mosaic.version = 11 : i64} {
  func.func @conv1_stats_kernel(%arg0: i32, %arg1: memref<1x16x16x8xf32, #tpu.memory_space<vmem>>, %arg2: memref<72x8xf32, #tpu.memory_space<vmem>>, %arg3: memref<1x8xf32, #tpu.memory_space<vmem>>, %arg4: memref<1x16x16x8xf32, #tpu.memory_space<vmem>>, %arg5: memref<1x2x8xf32, #tpu.memory_space<vmem>>, %arg6: memref<16x16x72xf32, #tpu.memory_space<vmem>>) attributes {dimension_semantics = [#tpu.dimension_semantics<parallel>], iteration_bounds = array<i64: 2>, scalar_prefetch = 0 : i64, scratch_operands = 1 : i64, tpu.core_type = #tpu.core_type<tc>, window_params = [{transform_indices = @transform_0, window_bounds = array<i64: 1, 16, 16, 8>}, {pipeline_mode = #tpu.pipeline_mode<synchronous>, transform_indices = @transform_1, window_bounds = array<i64: 72, 8>}, {pipeline_mode = #tpu.pipeline_mode<synchronous>, transform_indices = @transform_2, window_bounds = array<i64: 1, 8>}, {transform_indices = @transform_3, window_bounds = array<i64: 1, 16, 16, 8>}, {transform_indices = @transform_4, window_bounds = array<i64: 1, 2, 8>}]} {
    %cst = arith.constant 0.000000e+00 : f32
    %0 = vector.broadcast %cst : f32 to vector<1x16x72xf32>
    %c0 = arith.constant 0 : index
    %c0_0 = arith.constant 0 : index
    %c0_1 = arith.constant 0 : index
    %1 = vector.load %arg6[%c0, %c0_0, %c0_1] : memref<16x16x72xf32, #tpu.memory_space<vmem>>, vector<1x16x72xf32>
    tpu.vector_store %arg6[%c0, %c0_0, %c0_1], %0 {strides = array<i32>} : memref<16x16x72xf32, #tpu.memory_space<vmem>>, vector<1x16x72xf32>,
    %cst_2 = arith.constant 0.000000e+00 : f32
    %2 = vector.broadcast %cst_2 : f32 to vector<1x16x72xf32>
    %c15 = arith.constant 15 : index
    %c0_3 = arith.constant 0 : index
    %c0_4 = arith.constant 0 : index
    %3 = vector.load %arg6[%c15, %c0_3, %c0_4] : memref<16x16x72xf32, #tpu.memory_space<vmem>>, vector<1x16x72xf32>
    tpu.vector_store %arg6[%c15, %c0_3, %c0_4], %2 {strides = array<i32>} : memref<16x16x72xf32, #tpu.memory_space<vmem>>, vector<1x16x72xf32>,
    %cst_5 = arith.constant 0.000000e+00 : f32
    %4 = vector.broadcast %cst_5 : f32 to vector<16x1x72xf32>
    %c0_6 = arith.constant 0 : index
    %c0_7 = arith.constant 0 : index
    %c0_8 = arith.constant 0 : index
    %5 = vector.load %arg6[%c0_6, %c0_7, %c0_8] : memref<16x16x72xf32, #tpu.memory_space<vmem>>, vector<16x1x72xf32>
    tpu.vector_store %arg6[%c0_6, %c0_7, %c0_8], %4 {strides = array<i32>} : memref<16x16x72xf32, #tpu.memory_space<vmem>>, vector<16x1x72xf32>,
    %cst_9 = arith.constant 0.000000e+00 : f32
    %6 = vector.broadcast %cst_9 : f32 to vector<16x1x72xf32>
    %c0_10 = arith.constant 0 : index
    %c15_11 = arith.constant 15 : index
    %c0_12 = arith.constant 0 : index
    %7 = vector.load %arg6[%c0_10, %c15_11, %c0_12] : memref<16x16x72xf32, #tpu.memory_space<vmem>>, vector<16x1x72xf32>
    tpu.vector_store %arg6[%c0_10, %c15_11, %c0_12], %6 {strides = array<i32>} : memref<16x16x72xf32, #tpu.memory_space<vmem>>, vector<16x1x72xf32>,
    %c0_13 = arith.constant 0 : index
    %c0_14 = arith.constant 0 : index
    %c0_15 = arith.constant 0 : index
    %c0_16 = arith.constant 0 : index
    %8 = vector.load %arg1[%c0_13, %c0_14, %c0_15, %c0_16] : memref<1x16x16x8xf32, #tpu.memory_space<vmem>>, vector<1x15x15x8xf32>
    %9 = vector.shape_cast %8 : vector<1x15x15x8xf32> to vector<15x15x8xf32>
    %c1 = arith.constant 1 : index
    %c1_17 = arith.constant 1 : index
    %c0_18 = arith.constant 0 : index
    %10 = vector.load %arg6[%c1, %c1_17, %c0_18] : memref<16x16x72xf32, #tpu.memory_space<vmem>>, vector<15x15x8xf32>
    tpu.vector_store %arg6[%c1, %c1_17, %c0_18], %9 {strides = array<i32>} : memref<16x16x72xf32, #tpu.memory_space<vmem>>, vector<15x15x8xf32>,
    %c0_19 = arith.constant 0 : index
    %c0_20 = arith.constant 0 : index
    %c0_21 = arith.constant 0 : index
    %c0_22 = arith.constant 0 : index
    %11 = vector.load %arg1[%c0_19, %c0_20, %c0_21, %c0_22] : memref<1x16x16x8xf32, #tpu.memory_space<vmem>>, vector<1x15x16x8xf32>
    %12 = vector.shape_cast %11 : vector<1x15x16x8xf32> to vector<15x16x8xf32>
    %c1_23 = arith.constant 1 : index
    %c0_24 = arith.constant 0 : index
    %c8 = arith.constant 8 : index
    %13 = vector.load %arg6[%c1_23, %c0_24, %c8] : memref<16x16x72xf32, #tpu.memory_space<vmem>>, vector<15x16x8xf32>
    tpu.vector_store %arg6[%c1_23, %c0_24, %c8], %12 {strides = array<i32>} : memref<16x16x72xf32, #tpu.memory_space<vmem>>, vector<15x16x8xf32>,
    %c0_25 = arith.constant 0 : index
    %c0_26 = arith.constant 0 : index
    %c1_27 = arith.constant 1 : index
    %c0_28 = arith.constant 0 : index
    %14 = vector.load %arg1[%c0_25, %c0_26, %c1_27, %c0_28] : memref<1x16x16x8xf32, #tpu.memory_space<vmem>>, vector<1x15x15x8xf32>
    %15 = vector.shape_cast %14 : vector<1x15x15x8xf32> to vector<15x15x8xf32>
    %c1_29 = arith.constant 1 : index
    %c0_30 = arith.constant 0 : index
    %c16 = arith.constant 16 : index
    %16 = vector.load %arg6[%c1_29, %c0_30, %c16] : memref<16x16x72xf32, #tpu.memory_space<vmem>>, vector<15x15x8xf32>
    tpu.vector_store %arg6[%c1_29, %c0_30, %c16], %15 {strides = array<i32>} : memref<16x16x72xf32, #tpu.memory_space<vmem>>, vector<15x15x8xf32>,
    %c0_31 = arith.constant 0 : index
    %c0_32 = arith.constant 0 : index
    %c0_33 = arith.constant 0 : index
    %c0_34 = arith.constant 0 : index
    %17 = vector.load %arg1[%c0_31, %c0_32, %c0_33, %c0_34] : memref<1x16x16x8xf32, #tpu.memory_space<vmem>>, vector<1x16x15x8xf32>
    %18 = vector.shape_cast %17 : vector<1x16x15x8xf32> to vector<16x15x8xf32>
    %c0_35 = arith.constant 0 : index
    %c1_36 = arith.constant 1 : index
    %c24 = arith.constant 24 : index
    %19 = vector.load %arg6[%c0_35, %c1_36, %c24] : memref<16x16x72xf32, #tpu.memory_space<vmem>>, vector<16x15x8xf32>
    tpu.vector_store %arg6[%c0_35, %c1_36, %c24], %18 {strides = array<i32>} : memref<16x16x72xf32, #tpu.memory_space<vmem>>, vector<16x15x8xf32>,
    %c0_37 = arith.constant 0 : index
    %c0_38 = arith.constant 0 : index
    %c0_39 = arith.constant 0 : index
    %c0_40 = arith.constant 0 : index
    %20 = vector.load %arg1[%c0_37, %c0_38, %c0_39, %c0_40] : memref<1x16x16x8xf32, #tpu.memory_space<vmem>>, vector<1x16x16x8xf32>
    %21 = vector.shape_cast %20 : vector<1x16x16x8xf32> to vector<16x16x8xf32>
    %c0_41 = arith.constant 0 : index
    %c0_42 = arith.constant 0 : index
    %c32 = arith.constant 32 : index
    %22 = vector.load %arg6[%c0_41, %c0_42, %c32] : memref<16x16x72xf32, #tpu.memory_space<vmem>>, vector<16x16x8xf32>
    tpu.vector_store %arg6[%c0_41, %c0_42, %c32], %21 {strides = array<i32>} : memref<16x16x72xf32, #tpu.memory_space<vmem>>, vector<16x16x8xf32>,
    %c0_43 = arith.constant 0 : index
    %c0_44 = arith.constant 0 : index
    %c1_45 = arith.constant 1 : index
    %c0_46 = arith.constant 0 : index
    %23 = vector.load %arg1[%c0_43, %c0_44, %c1_45, %c0_46] : memref<1x16x16x8xf32, #tpu.memory_space<vmem>>, vector<1x16x15x8xf32>
    %24 = vector.shape_cast %23 : vector<1x16x15x8xf32> to vector<16x15x8xf32>
    %c0_47 = arith.constant 0 : index
    %c0_48 = arith.constant 0 : index
    %c40 = arith.constant 40 : index
    %25 = vector.load %arg6[%c0_47, %c0_48, %c40] : memref<16x16x72xf32, #tpu.memory_space<vmem>>, vector<16x15x8xf32>
    tpu.vector_store %arg6[%c0_47, %c0_48, %c40], %24 {strides = array<i32>} : memref<16x16x72xf32, #tpu.memory_space<vmem>>, vector<16x15x8xf32>,
    %c0_49 = arith.constant 0 : index
    %c1_50 = arith.constant 1 : index
    %c0_51 = arith.constant 0 : index
    %c0_52 = arith.constant 0 : index
    %26 = vector.load %arg1[%c0_49, %c1_50, %c0_51, %c0_52] : memref<1x16x16x8xf32, #tpu.memory_space<vmem>>, vector<1x15x15x8xf32>
    %27 = vector.shape_cast %26 : vector<1x15x15x8xf32> to vector<15x15x8xf32>
    %c0_53 = arith.constant 0 : index
    %c1_54 = arith.constant 1 : index
    %c48 = arith.constant 48 : index
    %28 = vector.load %arg6[%c0_53, %c1_54, %c48] : memref<16x16x72xf32, #tpu.memory_space<vmem>>, vector<15x15x8xf32>
    tpu.vector_store %arg6[%c0_53, %c1_54, %c48], %27 {strides = array<i32>} : memref<16x16x72xf32, #tpu.memory_space<vmem>>, vector<15x15x8xf32>,
    %c0_55 = arith.constant 0 : index
    %c1_56 = arith.constant 1 : index
    %c0_57 = arith.constant 0 : index
    %c0_58 = arith.constant 0 : index
    %29 = vector.load %arg1[%c0_55, %c1_56, %c0_57, %c0_58] : memref<1x16x16x8xf32, #tpu.memory_space<vmem>>, vector<1x15x16x8xf32>
    %30 = vector.shape_cast %29 : vector<1x15x16x8xf32> to vector<15x16x8xf32>
    %c0_59 = arith.constant 0 : index
    %c0_60 = arith.constant 0 : index
    %c56 = arith.constant 56 : index
    %31 = vector.load %arg6[%c0_59, %c0_60, %c56] : memref<16x16x72xf32, #tpu.memory_space<vmem>>, vector<15x16x8xf32>
    tpu.vector_store %arg6[%c0_59, %c0_60, %c56], %30 {strides = array<i32>} : memref<16x16x72xf32, #tpu.memory_space<vmem>>, vector<15x16x8xf32>,
    %c0_61 = arith.constant 0 : index
    %c1_62 = arith.constant 1 : index
    %c1_63 = arith.constant 1 : index
    %c0_64 = arith.constant 0 : index
    %32 = vector.load %arg1[%c0_61, %c1_62, %c1_63, %c0_64] : memref<1x16x16x8xf32, #tpu.memory_space<vmem>>, vector<1x15x15x8xf32>
    %33 = vector.shape_cast %32 : vector<1x15x15x8xf32> to vector<15x15x8xf32>
    %c0_65 = arith.constant 0 : index
    %c0_66 = arith.constant 0 : index
    %c64 = arith.constant 64 : index
    %34 = vector.load %arg6[%c0_65, %c0_66, %c64] : memref<16x16x72xf32, #tpu.memory_space<vmem>>, vector<15x15x8xf32>
    tpu.vector_store %arg6[%c0_65, %c0_66, %c64], %33 {strides = array<i32>} : memref<16x16x72xf32, #tpu.memory_space<vmem>>, vector<15x15x8xf32>,
    %c0_67 = arith.constant 0 : index
    %c0_68 = arith.constant 0 : index
    %c0_69 = arith.constant 0 : index
    %35 = vector.load %arg6[%c0_67, %c0_68, %c0_69] : memref<16x16x72xf32, #tpu.memory_space<vmem>>, vector<16x16x72xf32>
    %36 = vector.shape_cast %35 : vector<16x16x72xf32> to vector<256x72xf32>
    %c0_70 = arith.constant 0 : index
    %c0_71 = arith.constant 0 : index
    %37 = vector.load %arg2[%c0_70, %c0_71] : memref<72x8xf32, #tpu.memory_space<vmem>>, vector<72x8xf32>
    %cst_72 = arith.constant dense<0.000000e+00> : vector<256x8xf32>
    %38 = tpu.matmul %36, %37, %cst_72 {dimension_numbers = #tpu.dot_dimension_numbers<[1], [0], [0], [1], [0, 0, 1, 1], [], []>} : vector<256x72xf32>, vector<72x8xf32>, vector<256x8xf32> -> vector<256x8xf32>
    %c0_73 = arith.constant 0 : index
    %c0_74 = arith.constant 0 : index
    %39 = vector.load %arg3[%c0_73, %c0_74] : memref<1x8xf32, #tpu.memory_space<vmem>>, vector<1x8xf32>
    %40 = vector.broadcast %39 : vector<1x8xf32> to vector<256x8xf32>
    %41 = arith.addf %38, %40 : vector<256x8xf32>
    %cst_75 = arith.constant dense<0.000000e+00> : vector<8xf32>
    %42 = vector.multi_reduction <add>, %41, %cst_75 [0] : vector<256x8xf32> to vector<8xf32>
    %43 = vector.shape_cast %42 : vector<8xf32> to vector<1x8xf32>
    %c0_76 = arith.constant 0 : index
    %c0_77 = arith.constant 0 : index
    %c0_78 = arith.constant 0 : index
    %44 = vector.load %arg5[%c0_76, %c0_77, %c0_78] : memref<1x2x8xf32, #tpu.memory_space<vmem>>, vector<1x1x8xf32>
    %45 = vector.shape_cast %44 : vector<1x1x8xf32> to vector<1x8xf32>
    %46 = vector.shape_cast %43 : vector<1x8xf32> to vector<1x1x8xf32>
    tpu.vector_store %arg5[%c0_76, %c0_77, %c0_78], %46 {strides = array<i32>} : memref<1x2x8xf32, #tpu.memory_space<vmem>>, vector<1x1x8xf32>,
    %47 = arith.mulf %41, %41 : vector<256x8xf32>
    %cst_79 = arith.constant dense<0.000000e+00> : vector<8xf32>
    %48 = vector.multi_reduction <add>, %47, %cst_79 [0] : vector<256x8xf32> to vector<8xf32>
    %49 = vector.shape_cast %48 : vector<8xf32> to vector<1x8xf32>
    %c0_80 = arith.constant 0 : index
    %c1_81 = arith.constant 1 : index
    %c0_82 = arith.constant 0 : index
    %50 = vector.load %arg5[%c0_80, %c1_81, %c0_82] : memref<1x2x8xf32, #tpu.memory_space<vmem>>, vector<1x1x8xf32>
    %51 = vector.shape_cast %50 : vector<1x1x8xf32> to vector<1x8xf32>
    %52 = vector.shape_cast %49 : vector<1x8xf32> to vector<1x1x8xf32>
    tpu.vector_store %arg5[%c0_80, %c1_81, %c0_82], %52 {strides = array<i32>} : memref<1x2x8xf32, #tpu.memory_space<vmem>>, vector<1x1x8xf32>,
    %53 = vector.shape_cast %41 : vector<256x8xf32> to vector<16x16x8xf32>
    %c0_83 = arith.constant 0 : index
    %c0_84 = arith.constant 0 : index
    %c0_85 = arith.constant 0 : index
    %c0_86 = arith.constant 0 : index
    %54 = vector.load %arg4[%c0_83, %c0_84, %c0_85, %c0_86] : memref<1x16x16x8xf32, #tpu.memory_space<vmem>>, vector<1x16x16x8xf32>
    %55 = vector.shape_cast %54 : vector<1x16x16x8xf32> to vector<16x16x8xf32>
    %56 = vector.shape_cast %53 : vector<16x16x8xf32> to vector<1x16x16x8xf32>
    tpu.vector_store %arg4[%c0_83, %c0_84, %c0_85, %c0_86], %56 {strides = array<i32>} : memref<1x16x16x8xf32, #tpu.memory_space<vmem>>, vector<1x16x16x8xf32>,
    return
  }
  func.func @transform_0(%arg0: i32) -> (i32, i32, i32, i32) {
    %c0_i32 = arith.constant 0 : i32
    %c0_i32_0 = arith.constant 0 : i32
    %c0_i32_1 = arith.constant 0 : i32
    %c0_i32_2 = arith.constant 0 : i32
    return %arg0, %c0_i32, %c0_i32_0, %c0_i32_1 : i32, i32, i32, i32
  }
  func.func @transform_1(%arg0: i32) -> (i32, i32) {
    %c0_i32 = arith.constant 0 : i32
    %c0_i32_0 = arith.constant 0 : i32
    %c0_i32_1 = arith.constant 0 : i32
    return %c0_i32, %c0_i32_0 : i32, i32
  }
  func.func @transform_2(%arg0: i32) -> (i32, i32) {
    %c0_i32 = arith.constant 0 : i32
    %c0_i32_0 = arith.constant 0 : i32
    %c0_i32_1 = arith.constant 0 : i32
    return %c0_i32, %c0_i32_0 : i32, i32
  }
  func.func @transform_3(%arg0: i32) -> (i32, i32, i32, i32) {
    %c0_i32 = arith.constant 0 : i32
    %c0_i32_0 = arith.constant 0 : i32
    %c0_i32_1 = arith.constant 0 : i32
    %c0_i32_2 = arith.constant 0 : i32
    return %arg0, %c0_i32, %c0_i32_0, %c0_i32_1 : i32, i32, i32, i32
  }
  func.func @transform_4(%arg0: i32) -> (i32, i32, i32) {
    %c0_i32 = arith.constant 0 : i32
    %c0_i32_0 = arith.constant 0 : i32
    %c0_i32_1 = arith.constant 0 : i32
    return %arg0, %c0_i32, %c0_i32_0 : i32, i32, i32
  }
}

module attributes {stable_mosaic.version = 11 : i64} {
  func.func @bn_dconv_res_kernel(%arg0: i32, %arg1: memref<1x16x16x8xf32, #tpu.memory_space<vmem>>, %arg2: memref<1x16x16x8xf32, #tpu.memory_space<vmem>>, %arg3: memref<1x8xf32, #tpu.memory_space<vmem>>, %arg4: memref<1x8xf32, #tpu.memory_space<vmem>>, %arg5: memref<72x8xf32, #tpu.memory_space<vmem>>, %arg6: memref<1x8xf32, #tpu.memory_space<vmem>>, %arg7: memref<1x16x16x8xf32, #tpu.memory_space<vmem>>, %arg8: memref<16x16x72xf32, #tpu.memory_space<vmem>>) attributes {dimension_semantics = [#tpu.dimension_semantics<parallel>], iteration_bounds = array<i64: 2>, scalar_prefetch = 0 : i64, scratch_operands = 1 : i64, tpu.core_type = #tpu.core_type<tc>, window_params = [{transform_indices = @transform_0, window_bounds = array<i64: 1, 16, 16, 8>}, {transform_indices = @transform_1, window_bounds = array<i64: 1, 16, 16, 8>}, {pipeline_mode = #tpu.pipeline_mode<synchronous>, transform_indices = @transform_2, window_bounds = array<i64: 1, 8>}, {pipeline_mode = #tpu.pipeline_mode<synchronous>, transform_indices = @transform_3, window_bounds = array<i64: 1, 8>}, {pipeline_mode = #tpu.pipeline_mode<synchronous>, transform_indices = @transform_4, window_bounds = array<i64: 72, 8>}, {pipeline_mode = #tpu.pipeline_mode<synchronous>, transform_indices = @transform_5, window_bounds = array<i64: 1, 8>}, {transform_indices = @transform_6, window_bounds = array<i64: 1, 16, 16, 8>}]} {
    %c0 = arith.constant 0 : index
    %c0_0 = arith.constant 0 : index
    %c0_1 = arith.constant 0 : index
    %c0_2 = arith.constant 0 : index
    %0 = vector.load %arg1[%c0, %c0_0, %c0_1, %c0_2] : memref<1x16x16x8xf32, #tpu.memory_space<vmem>>, vector<1x16x16x8xf32>
    %1 = vector.shape_cast %0 : vector<1x16x16x8xf32> to vector<16x16x8xf32>
    %c0_3 = arith.constant 0 : index
    %c0_4 = arith.constant 0 : index
    %2 = vector.load %arg3[%c0_3, %c0_4] : memref<1x8xf32, #tpu.memory_space<vmem>>, vector<1x8xf32>
    %3 = vector.shape_cast %2 : vector<1x8xf32> to vector<1x1x8xf32>
    %4 = vector.broadcast %3 : vector<1x1x8xf32> to vector<16x16x8xf32>
    %5 = arith.mulf %1, %4 : vector<16x16x8xf32>
    %c0_5 = arith.constant 0 : index
    %c0_6 = arith.constant 0 : index
    %6 = vector.load %arg4[%c0_5, %c0_6] : memref<1x8xf32, #tpu.memory_space<vmem>>, vector<1x8xf32>
    %7 = vector.shape_cast %6 : vector<1x8xf32> to vector<1x1x8xf32>
    %8 = vector.broadcast %7 : vector<1x1x8xf32> to vector<16x16x8xf32>
    %9 = arith.addf %5, %8 : vector<16x16x8xf32>
    %cst = arith.constant 0.000000e+00 : f32
    %10 = vector.broadcast %cst : f32 to vector<16x16x8xf32>
    %11 = arith.maximumf %9, %10 : vector<16x16x8xf32>
    %cst_7 = arith.constant 0.000000e+00 : f32
    %12 = vector.broadcast %cst_7 : f32 to vector<2x16x72xf32>
    %c0_8 = arith.constant 0 : index
    %c0_9 = arith.constant 0 : index
    %c0_10 = arith.constant 0 : index
    %13 = vector.load %arg8[%c0_8, %c0_9, %c0_10] : memref<16x16x72xf32, #tpu.memory_space<vmem>>, vector<2x16x72xf32>
    tpu.vector_store %arg8[%c0_8, %c0_9, %c0_10], %12 {strides = array<i32>} : memref<16x16x72xf32, #tpu.memory_space<vmem>>, vector<2x16x72xf32>,
    %cst_11 = arith.constant 0.000000e+00 : f32
    %14 = vector.broadcast %cst_11 : f32 to vector<2x16x72xf32>
    %c14 = arith.constant 14 : index
    %c0_12 = arith.constant 0 : index
    %c0_13 = arith.constant 0 : index
    %15 = vector.load %arg8[%c14, %c0_12, %c0_13] : memref<16x16x72xf32, #tpu.memory_space<vmem>>, vector<2x16x72xf32>
    tpu.vector_store %arg8[%c14, %c0_12, %c0_13], %14 {strides = array<i32>} : memref<16x16x72xf32, #tpu.memory_space<vmem>>, vector<2x16x72xf32>,
    %cst_14 = arith.constant 0.000000e+00 : f32
    %16 = vector.broadcast %cst_14 : f32 to vector<16x2x72xf32>
    %c0_15 = arith.constant 0 : index
    %c0_16 = arith.constant 0 : index
    %c0_17 = arith.constant 0 : index
    %17 = vector.load %arg8[%c0_15, %c0_16, %c0_17] : memref<16x16x72xf32, #tpu.memory_space<vmem>>, vector<16x2x72xf32>
    tpu.vector_store %arg8[%c0_15, %c0_16, %c0_17], %16 {strides = array<i32>} : memref<16x16x72xf32, #tpu.memory_space<vmem>>, vector<16x2x72xf32>,
    %cst_18 = arith.constant 0.000000e+00 : f32
    %18 = vector.broadcast %cst_18 : f32 to vector<16x2x72xf32>
    %c0_19 = arith.constant 0 : index
    %c14_20 = arith.constant 14 : index
    %c0_21 = arith.constant 0 : index
    %19 = vector.load %arg8[%c0_19, %c14_20, %c0_21] : memref<16x16x72xf32, #tpu.memory_space<vmem>>, vector<16x2x72xf32>
    tpu.vector_store %arg8[%c0_19, %c14_20, %c0_21], %18 {strides = array<i32>} : memref<16x16x72xf32, #tpu.memory_space<vmem>>, vector<16x2x72xf32>,
    %20 = vector.extract_strided_slice %11 {offsets = [0, 0, 0], sizes = [14, 14, 8], strides = [1, 1, 1]} : vector<16x16x8xf32> to vector<14x14x8xf32>
    %c2 = arith.constant 2 : index
    %c2_22 = arith.constant 2 : index
    %c0_23 = arith.constant 0 : index
    %21 = vector.load %arg8[%c2, %c2_22, %c0_23] : memref<16x16x72xf32, #tpu.memory_space<vmem>>, vector<14x14x8xf32>
    tpu.vector_store %arg8[%c2, %c2_22, %c0_23], %20 {strides = array<i32>} : memref<16x16x72xf32, #tpu.memory_space<vmem>>, vector<14x14x8xf32>,
    %22 = vector.extract_strided_slice %11 {offsets = [0, 0, 0], sizes = [14, 16, 8], strides = [1, 1, 1]} : vector<16x16x8xf32> to vector<14x16x8xf32>
    %c2_24 = arith.constant 2 : index
    %c0_25 = arith.constant 0 : index
    %c8 = arith.constant 8 : index
    %23 = vector.load %arg8[%c2_24, %c0_25, %c8] : memref<16x16x72xf32, #tpu.memory_space<vmem>>, vector<14x16x8xf32>
    tpu.vector_store %arg8[%c2_24, %c0_25, %c8], %22 {strides = array<i32>} : memref<16x16x72xf32, #tpu.memory_space<vmem>>, vector<14x16x8xf32>,
    %24 = vector.extract_strided_slice %11 {offsets = [0, 2, 0], sizes = [14, 14, 8], strides = [1, 1, 1]} : vector<16x16x8xf32> to vector<14x14x8xf32>
    %c2_26 = arith.constant 2 : index
    %c0_27 = arith.constant 0 : index
    %c16 = arith.constant 16 : index
    %25 = vector.load %arg8[%c2_26, %c0_27, %c16] : memref<16x16x72xf32, #tpu.memory_space<vmem>>, vector<14x14x8xf32>
    tpu.vector_store %arg8[%c2_26, %c0_27, %c16], %24 {strides = array<i32>} : memref<16x16x72xf32, #tpu.memory_space<vmem>>, vector<14x14x8xf32>,
    %26 = vector.extract_strided_slice %11 {offsets = [0, 0, 0], sizes = [16, 14, 8], strides = [1, 1, 1]} : vector<16x16x8xf32> to vector<16x14x8xf32>
    %c0_28 = arith.constant 0 : index
    %c2_29 = arith.constant 2 : index
    %c24 = arith.constant 24 : index
    %27 = vector.load %arg8[%c0_28, %c2_29, %c24] : memref<16x16x72xf32, #tpu.memory_space<vmem>>, vector<16x14x8xf32>
    tpu.vector_store %arg8[%c0_28, %c2_29, %c24], %26 {strides = array<i32>} : memref<16x16x72xf32, #tpu.memory_space<vmem>>, vector<16x14x8xf32>,
    %c0_30 = arith.constant 0 : index
    %c0_31 = arith.constant 0 : index
    %c32 = arith.constant 32 : index
    %28 = vector.load %arg8[%c0_30, %c0_31, %c32] : memref<16x16x72xf32, #tpu.memory_space<vmem>>, vector<16x16x8xf32>
    tpu.vector_store %arg8[%c0_30, %c0_31, %c32], %11 {strides = array<i32>} : memref<16x16x72xf32, #tpu.memory_space<vmem>>, vector<16x16x8xf32>,
    %29 = vector.extract_strided_slice %11 {offsets = [0, 2, 0], sizes = [16, 14, 8], strides = [1, 1, 1]} : vector<16x16x8xf32> to vector<16x14x8xf32>
    %c0_32 = arith.constant 0 : index
    %c0_33 = arith.constant 0 : index
    %c40 = arith.constant 40 : index
    %30 = vector.load %arg8[%c0_32, %c0_33, %c40] : memref<16x16x72xf32, #tpu.memory_space<vmem>>, vector<16x14x8xf32>
    tpu.vector_store %arg8[%c0_32, %c0_33, %c40], %29 {strides = array<i32>} : memref<16x16x72xf32, #tpu.memory_space<vmem>>, vector<16x14x8xf32>,
    %31 = vector.extract_strided_slice %11 {offsets = [2, 0, 0], sizes = [14, 14, 8], strides = [1, 1, 1]} : vector<16x16x8xf32> to vector<14x14x8xf32>
    %c0_34 = arith.constant 0 : index
    %c2_35 = arith.constant 2 : index
    %c48 = arith.constant 48 : index
    %32 = vector.load %arg8[%c0_34, %c2_35, %c48] : memref<16x16x72xf32, #tpu.memory_space<vmem>>, vector<14x14x8xf32>
    tpu.vector_store %arg8[%c0_34, %c2_35, %c48], %31 {strides = array<i32>} : memref<16x16x72xf32, #tpu.memory_space<vmem>>, vector<14x14x8xf32>,
    %33 = vector.extract_strided_slice %11 {offsets = [2, 0, 0], sizes = [14, 16, 8], strides = [1, 1, 1]} : vector<16x16x8xf32> to vector<14x16x8xf32>
    %c0_36 = arith.constant 0 : index
    %c0_37 = arith.constant 0 : index
    %c56 = arith.constant 56 : index
    %34 = vector.load %arg8[%c0_36, %c0_37, %c56] : memref<16x16x72xf32, #tpu.memory_space<vmem>>, vector<14x16x8xf32>
    tpu.vector_store %arg8[%c0_36, %c0_37, %c56], %33 {strides = array<i32>} : memref<16x16x72xf32, #tpu.memory_space<vmem>>, vector<14x16x8xf32>,
    %35 = vector.extract_strided_slice %11 {offsets = [2, 2, 0], sizes = [14, 14, 8], strides = [1, 1, 1]} : vector<16x16x8xf32> to vector<14x14x8xf32>
    %c0_38 = arith.constant 0 : index
    %c0_39 = arith.constant 0 : index
    %c64 = arith.constant 64 : index
    %36 = vector.load %arg8[%c0_38, %c0_39, %c64] : memref<16x16x72xf32, #tpu.memory_space<vmem>>, vector<14x14x8xf32>
    tpu.vector_store %arg8[%c0_38, %c0_39, %c64], %35 {strides = array<i32>} : memref<16x16x72xf32, #tpu.memory_space<vmem>>, vector<14x14x8xf32>,
    %c0_40 = arith.constant 0 : index
    %c0_41 = arith.constant 0 : index
    %c0_42 = arith.constant 0 : index
    %37 = vector.load %arg8[%c0_40, %c0_41, %c0_42] : memref<16x16x72xf32, #tpu.memory_space<vmem>>, vector<16x16x72xf32>
    %38 = vector.shape_cast %37 : vector<16x16x72xf32> to vector<256x72xf32>
    %c0_43 = arith.constant 0 : index
    %c0_44 = arith.constant 0 : index
    %39 = vector.load %arg5[%c0_43, %c0_44] : memref<72x8xf32, #tpu.memory_space<vmem>>, vector<72x8xf32>
    %cst_45 = arith.constant dense<0.000000e+00> : vector<256x8xf32>
    %40 = tpu.matmul %38, %39, %cst_45 {dimension_numbers = #tpu.dot_dimension_numbers<[1], [0], [0], [1], [0, 0, 1, 1], [], []>} : vector<256x72xf32>, vector<72x8xf32>, vector<256x8xf32> -> vector<256x8xf32>
    %c0_46 = arith.constant 0 : index
    %c0_47 = arith.constant 0 : index
    %41 = vector.load %arg6[%c0_46, %c0_47] : memref<1x8xf32, #tpu.memory_space<vmem>>, vector<1x8xf32>
    %42 = vector.broadcast %41 : vector<1x8xf32> to vector<256x8xf32>
    %43 = arith.addf %40, %42 : vector<256x8xf32>
    %cst_48 = arith.constant 0.000000e+00 : f32
    %44 = vector.broadcast %cst_48 : f32 to vector<256x8xf32>
    %45 = arith.maximumf %43, %44 : vector<256x8xf32>
    %c0_49 = arith.constant 0 : index
    %c0_50 = arith.constant 0 : index
    %c0_51 = arith.constant 0 : index
    %c0_52 = arith.constant 0 : index
    %46 = vector.load %arg2[%c0_49, %c0_50, %c0_51, %c0_52] : memref<1x16x16x8xf32, #tpu.memory_space<vmem>>, vector<1x16x16x8xf32>
    %47 = vector.shape_cast %46 : vector<1x16x16x8xf32> to vector<16x16x8xf32>
    %48 = vector.shape_cast %45 : vector<256x8xf32> to vector<16x16x8xf32>
    %49 = arith.addf %47, %48 : vector<16x16x8xf32>
    %c0_53 = arith.constant 0 : index
    %c0_54 = arith.constant 0 : index
    %c0_55 = arith.constant 0 : index
    %c0_56 = arith.constant 0 : index
    %50 = vector.load %arg7[%c0_53, %c0_54, %c0_55, %c0_56] : memref<1x16x16x8xf32, #tpu.memory_space<vmem>>, vector<1x16x16x8xf32>
    %51 = vector.shape_cast %50 : vector<1x16x16x8xf32> to vector<16x16x8xf32>
    %52 = vector.shape_cast %49 : vector<16x16x8xf32> to vector<1x16x16x8xf32>
    tpu.vector_store %arg7[%c0_53, %c0_54, %c0_55, %c0_56], %52 {strides = array<i32>} : memref<1x16x16x8xf32, #tpu.memory_space<vmem>>, vector<1x16x16x8xf32>,
    return
  }
  func.func @transform_0(%arg0: i32) -> (i32, i32, i32, i32) {
    %c0_i32 = arith.constant 0 : i32
    %c0_i32_0 = arith.constant 0 : i32
    %c0_i32_1 = arith.constant 0 : i32
    %c0_i32_2 = arith.constant 0 : i32
    return %arg0, %c0_i32, %c0_i32_0, %c0_i32_1 : i32, i32, i32, i32
  }
  func.func @transform_1(%arg0: i32) -> (i32, i32, i32, i32) {
    %c0_i32 = arith.constant 0 : i32
    %c0_i32_0 = arith.constant 0 : i32
    %c0_i32_1 = arith.constant 0 : i32
    %c0_i32_2 = arith.constant 0 : i32
    return %arg0, %c0_i32, %c0_i32_0, %c0_i32_1 : i32, i32, i32, i32
  }
  func.func @transform_2(%arg0: i32) -> (i32, i32) {
    %c0_i32 = arith.constant 0 : i32
    %c0_i32_0 = arith.constant 0 : i32
    %c0_i32_1 = arith.constant 0 : i32
    return %c0_i32, %c0_i32_0 : i32, i32
  }
  func.func @transform_3(%arg0: i32) -> (i32, i32) {
    %c0_i32 = arith.constant 0 : i32
    %c0_i32_0 = arith.constant 0 : i32
    %c0_i32_1 = arith.constant 0 : i32
    return %c0_i32, %c0_i32_0 : i32, i32
  }
  func.func @transform_4(%arg0: i32) -> (i32, i32) {
    %c0_i32 = arith.constant 0 : i32
    %c0_i32_0 = arith.constant 0 : i32
    %c0_i32_1 = arith.constant 0 : i32
    return %c0_i32, %c0_i32_0 : i32, i32
  }
  func.func @transform_5(%arg0: i32) -> (i32, i32) {
    %c0_i32 = arith.constant 0 : i32
    %c0_i32_0 = arith.constant 0 : i32
    %c0_i32_1 = arith.constant 0 : i32
    return %c0_i32, %c0_i32_0 : i32, i32
  }
  func.func @transform_6(%arg0: i32) -> (i32, i32, i32, i32) {
    %c0_i32 = arith.constant 0 : i32
    %c0_i32_0 = arith.constant 0 : i32
    %c0_i32_1 = arith.constant 0 : i32
    %c0_i32_2 = arith.constant 0 : i32
    return %arg0, %c0_i32, %c0_i32_0, %c0_i32_1 : i32, i32, i32, i32
  }
}

</mosaic_0001>

<bundles_post_ra>
// kernel: resblock_cbrdr.3
= control target key start
LH: loop header
LB: loop body
LE: loop exit
PB: predicated region body
PF: predicated region fallthrough
CT: control target
= control target key end

     0   :  { %s2288_s21 = smov 0   ;;  %s3499_s0 = inlined_call_operand.vmem [shape: f32[2,16,16,8], index: 0, kind: input, shape index: {}]   ;;  %s3500_s1 = inlined_call_operand.vmem [shape: f32[2,16,16,8], index: 1, kind: input, shape index: {}]   ;;  %s3501_s2 = inlined_call_operand.vmem [shape: f32[1,8], index: 2, kind: input, shape index: {}]   ;;  %s3502_s3 = inlined_call_operand.vmem [shape: f32[1,8], index: 3, kind: input, shape index: {}]   ;;  %s3503_s4 = inlined_call_operand.vmem [shape: f32[72,8], index: 4, kind: input, shape index: {}]   ;;  %s3504_s5 = inlined_call_operand.vmem [shape: f32[1,8], index: 5, kind: input, shape index: {}]   ;;  %s3505_s6 = inlined_call_operand.vmem [shape: f32[2,16,16,8], index: 6, kind: output, shape index: {}]  }
   0x1 LB: > { %s2041_s22 = sadd.s32 4294967295, %s2242_s21   ;;  %p2045_p0 = scmp.ge.s32.totalorder %s2242_s21, 1  ;;  %s2242_s21 = sphi %s2288_s21, %s16_s21  }
   0x2   : > { %p222_p1 = scmp.lt.s32.totalorder %s2242_s21, 3 }
   0x4   : > { %p223_p2 = pnand %p2045_p0, %p222_p1 }
   0x5   : > { %p257_p3 = scmp.lt.s32.totalorder (!%p223_p2), %s2041_s22, 1  ;;  %s2245_s7 = smov (!%p223_p2), 8  }
   0x6   : > { %226 = sbr.rel (%p223_p2) target bundleno = 816 (0x330), region = 44  ;;  %s2246_s8 = smov (!%p223_p2), 16  }
   0x7   : > { %s2247_s9 = smov (!%p223_p2), 24   ;;  %s2248_s10 = smov (!%p223_p2), 32  }
   0x8   : > { %s2249_s11 = smov (!%p223_p2), 40   ;;  %s2250_s12 = smov (!%p223_p2), 48  }
   0x9   : > { %s2252_s15 = smov (!%p223_p2), 64  }
   0xb   : > { %vm424_vm0 = vcmask 582656   ;;  %s3507_s22 = smov (!%p257_p3, %s2041_s22), 1  ;;  %v2244_v0 = vmov 0.0   ;;  %v2349_v1 = vld [vmem:[%s3501_s2] ss:$0 sm:$0xff]  ;;  %vm458_vm1 = vcmask 64512  }
   0xc   : > { %428 = vst.msk [vmem:[#allocation2 + $0x30] sm:$0x3] %vm424_vm0, %v2244_v0  ;;  %427 = vst.msk [vmem:[#allocation2 + $0x20] sm:$0x3] %vm424_vm0, %v2244_v0  ;;  %s2344_s23 = sshll.u32 %s3507_s22, 8  ;;  %vm460_vm2 = vcmask 62464  }
   0xd   : > { %429 = vst.msk [vmem:[#allocation2 + $0x40] sm:$0x3] %vm424_vm0, %v2244_v0  ;;  %430 = vst.msk [vmem:[#allocation2 + $0x50] sm:$0x3] %vm424_vm0, %v2244_v0  ;;  %s2355_s28 = scalar_lea.vmem %s3499_s0, %s2344_s23  ;;  %v2360_v2 = vld [vmem:[%s3502_s3] ss:$0 sm:$0xff]  ;;  %s3320_s19 = scalar_lea.vmem %s3500_s1, %s2344_s23 }
   0xe   : > { %431 = vst.msk [vmem:[#allocation2 + $0x60] sm:$0x3] %vm424_vm0, %v2244_v0  ;;  %432 = vst.msk [vmem:[#allocation2 + $0x70] sm:$0x3] %vm424_vm0, %v2244_v0  ;;  %v274_v3 = vld [vmem:[%s2355_s28 + $0x10] sm:$0xff]  ;;  %v272_v4 = vld [vmem:[%s2355_s28] sm:$0xff]  ;;  %s3333_s24 = scalar_lea.vmem %s3505_s6, %s2344_s23 }
   0xf   : > { %433 = vst.msk [vmem:[#allocation2 + $0x80] sm:$0x3] %vm424_vm0, %v2244_v0  ;;  %434 = vst.msk [vmem:[#allocation2 + $0x90] sm:$0x3] %vm424_vm0, %v2244_v0  ;;  %v275_v5 = vld [vmem:[%s2355_s28 + $0x18] sm:$0xff]  ;;  %v313_v6 = vmul.f32 %v2349_v1, %v274_v3  ;;  %v311_v7 = vmul.f32 %v2349_v1, %v272_v4  ;;  %v273_v9 = vld [vmem:[%s2355_s28 + $0x8] sm:$0xff] }
  0x10   : > { %435 = vst.msk [vmem:[#allocation2 + $0xa0] sm:$0x3] %vm424_vm0, %v2244_v0  ;;  %436 = vst.msk [vmem:[#allocation2 + $0xb0] sm:$0x3] %vm424_vm0, %v2244_v0  ;;  %v314_v8 = vmul.f32 %v2349_v1, %v275_v5  ;;  %v277_v10 = vld [vmem:[%s2355_s28 + $0x28] sm:$0xff]  ;;  %v276_v11 = vld [vmem:[%s2355_s28 + $0x20] sm:$0xff]  ;;  %v312_v12 = vmul.f32 %v2349_v1, %v273_v9 }
  0x11   : > { %437 = vst.msk [vmem:[#allocation2 + $0xc0] sm:$0x3] %vm424_vm0, %v2244_v0  ;;  %438 = vst.msk [vmem:[#allocation2 + $0xd0] sm:$0x3] %vm424_vm0, %v2244_v0  ;;  %v316_v13 = vmul.f32 %v2349_v1, %v277_v10  ;;  %v315_v14 = vmul.f32 %v2349_v1, %v276_v11  ;;  %v279_v15 = vld [vmem:[%s2355_s28 + $0x38] sm:$0xff]  ;;  %v278_v16 = vld [vmem:[%s2355_s28 + $0x30] sm:$0xff]  ;;  %v352_v17 = vadd.f32 %v2360_v2, %v313_v6 }
  0x12   : > { %443 = vst.msk [vmem:[#allocation2 + $0x2e] sm:$0x3] %vm424_vm0, %v2244_v0  ;;  %444 = vst.msk [vmem:[#allocation2 + $0x3e] sm:$0x3] %vm424_vm0, %v2244_v0  ;;  %v350_v18 = vadd.f32 %v2360_v2, %v311_v7  ;;  %v353_v19 = vadd.f32 %v2360_v2, %v314_v8  ;;  %v318_v20 = vmul.f32 %v2349_v1, %v279_v15  ;;  %v281_v25 = vld [vmem:[%s2355_s28 + $0x48] sm:$0xff]  ;;  %v280_v26 = vld [vmem:[%s2355_s28 + $0x40] sm:$0xff] }
  0x13   : > { %445 = vst.msk [vmem:[#allocation2 + $0x4e] sm:$0x3] %vm424_vm0, %v2244_v0  ;;  %446 = vst.msk [vmem:[#allocation2 + $0x5e] sm:$0x3] %vm424_vm0, %v2244_v0  ;;  %v351_v21 = vadd.f32 %v2360_v2, %v312_v12  ;;  %v355_v22 = vadd.f32 %v2360_v2, %v316_v13  ;;  %v354_v23 = vadd.f32 %v2360_v2, %v315_v14  ;;  %v283_v27 = vld [vmem:[%s2355_s28 + $0x58] sm:$0xff]  ;;  %v2387_v28 = vmax.f32 %v352_v17, 0.0 }
  0x14   : > { %447 = vst.msk [vmem:[#allocation2 + $0x6e] sm:$0x3] %vm424_vm0, %v2244_v0  ;;  %448 = vst.msk [vmem:[#allocation2 + $0x7e] sm:$0x3] %vm424_vm0, %v2244_v0  ;;  %v317_v24 = vmul.f32 %v2349_v1, %v278_v16  ;;  %v2389_v29 = vmax.f32 %v350_v18, 0.0  ;;  %v2391_v30 = vmax.f32 %v353_v19, 0.0  ;;  %v357_v31 = vadd.f32 %v2360_v2, %v318_v20 }
  0x15   : > { %449 = vst.msk [vmem:[#allocation2 + $0x8e] sm:$0x3] %vm424_vm0, %v2244_v0  ;;  %450 = vst.msk [vmem:[#allocation2 + $0x9e] sm:$0x3] %vm424_vm0, %v2244_v0  ;;  %v282_v32 = vld [vmem:[%s2355_s28 + $0x50] sm:$0xff]  ;;  %v285_v33 = vld [vmem:[%s2355_s28 + $0x68] sm:$0xff]  ;;  %520 = vrot.lane.b32.xlu1 %v2387_v28, %s2245_s7  ;;  %v320_v41 = vmul.f32 %v2349_v1, %v281_v25  ;;  %v319_v42 = vmul.f32 %v2349_v1, %v280_v26  ;;  %v322_v43 = vmul.f32 %v2349_v1, %v283_v27 }
  0x16   : > { %451 = vst.msk [vmem:[#allocation2 + $0xae] sm:$0x3] %vm424_vm0, %v2244_v0  ;;  %452 = vst.msk [vmem:[#allocation2 + $0xbe] sm:$0x3] %vm424_vm0, %v2244_v0  ;;  %v284_v34 = vld [vmem:[%s2355_s28 + $0x60] sm:$0xff]  ;;  %v2397_v35 = vmax.f32 %v351_v21, 0.0  ;;  %v356_v38 = vadd.f32 %v2360_v2, %v317_v24  ;;  %516 = vrot.lane.b32.xlu0 %v2389_v29, %s2245_s7  ;;  %v321_v46 = vmul.f32 %v2349_v1, %v282_v32 }
  0x17   : > { %453 = vst.msk [vmem:[#allocation2 + $0xce] sm:$0x3] %vm424_vm0, %v2244_v0  ;;  %454 = vst.msk [vmem:[#allocation2 + $0xde] sm:$0x3] %vm424_vm0, %v2244_v0  ;;  %v2399_v36 = vmax.f32 %v355_v22, 0.0  ;;  %v2401_v37 = vmax.f32 %v354_v23, 0.0  ;;  %v324_v47 = vmul.f32 %v2349_v1, %v285_v33  ;;  %v323_v48 = vmul.f32 %v2349_v1, %v284_v34 }
  0x18   : > { %v287_v39 = vld [vmem:[%s2355_s28 + $0x78] sm:$0xff]  ;;  %v2409_v40 = vmax.f32 %v357_v31, 0.0  ;;  %v286_v44 = vld [vmem:[%s2355_s28 + $0x70] sm:$0xff]  ;;  %462 = vst.msk [vmem:[#allocation2 + $0x32] sm:$0xff] %vm458_vm1, %v2387_v28  ;;  %459 = vst.msk [vmem:[#allocation2 + $0x22] sm:$0xff] %vm458_vm1, %v2389_v29  ;;  %v2421_v45 = vmax.f32 %v356_v38, 0.0  ;;  %v359_v49 = vadd.f32 %v2360_v2, %v320_v41  ;;  %v358_v50 = vadd.f32 %v2360_v2, %v319_v42 }
  0x19   : > { %463 = vst.msk [vmem:[#allocation2 + $0x3a] sm:$0x3f] %vm460_vm2, %v2391_v30  ;;  %461 = vst.msk [vmem:[#allocation2 + $0x2a] sm:$0x3f] %vm460_vm2, %v2397_v35  ;;  %v361_v51 = vadd.f32 %v2360_v2, %v322_v43  ;;  %v326_v52 = vmul.f32 %v2349_v1, %v287_v39  ;;  %v289_v53 = vld [vmem:[%s2355_s28 + $0x88] sm:$0xff]  ;;  %v360_v54 = vadd.f32 %v2360_v2, %v321_v46  ;;  %v288_v58 = vld [vmem:[%s2355_s28 + $0x80] sm:$0xff]  ;;  %522 = vrot.lane.b32.xlu1 %v2391_v30, %s2245_s7 }
  0x1a   : > { %464 = vst.msk [vmem:[#allocation2 + $0x42] sm:$0xff] %vm458_vm1, %v2401_v37  ;;  %v363_v55 = vadd.f32 %v2360_v2, %v324_v47  ;;  %v362_v56 = vadd.f32 %v2360_v2, %v323_v48  ;;  %v325_v57 = vmul.f32 %v2349_v1, %v286_v44  ;;  %v291_v59 = vld [vmem:[%s2355_s28 + $0x98] sm:$0xff]  ;;  %v290_v60 = vld [vmem:[%s2355_s28 + $0x90] sm:$0xff]  ;;  %466 = vst.msk [vmem:[#allocation2 + $0x52] sm:$0xff] %vm458_vm1, %v2421_v45  ;;  %518 = vrot.lane.b32.xlu0 %v2397_v35, %s2245_s7  ;;  %vm414_vm3 = vcmask 588800   ;;  %s2251_s22 = smov 56  }
  0x1b   : > { %465 = vst.msk [vmem:[#allocation2 + $0x4a] sm:$0x3f] %vm460_vm2, %v2399_v36  ;;  %467 = vst.msk [vmem:[#allocation2 + $0x5a] sm:$0x3f] %vm460_vm2, %v2409_v40  ;;  %v2452_v61 = vmax.f32 %v359_v49, 0.0  ;;  %v2454_v62 = vmax.f32 %v358_v50, 0.0  ;;  %v365_v3 = vadd.f32 %v2360_v2, %v326_v52  ;;  %v328_v11 = vmul.f32 %v2349_v1, %v289_v53 }
  0x1c   : > { %v2456_v63 = vmax.f32 %v361_v51, 0.0  ;;  %v293_v4 = vld [vmem:[%s2355_s28 + $0xa8] sm:$0xff]  ;;  %v292_v5 = vld [vmem:[%s2355_s28 + $0xa0] sm:$0xff]  ;;  %v2461_v6 = vmax.f32 %v360_v54, 0.0  ;;  %v2463_v7 = vmax.f32 %v363_v55, 0.0  ;;  %v2465_v8 = vmax.f32 %v362_v56, 0.0 }
  0x1d   : > { %v364_v9 = vadd.f32 %v2360_v2, %v325_v57  ;;  %v2468_v10 = vmax.f32 %v365_v3, 0.0  ;;  %v327_v12 = vmul.f32 %v2349_v1, %v288_v58  ;;  %v330_v13 = vmul.f32 %v2349_v1, %v291_v59  ;;  %v295_v14 = vld [vmem:[%s2355_s28 + $0xb8] sm:$0xff]  ;;  %468 = vst.msk [vmem:[#allocation2 + $0x62] sm:$0xff] %vm458_vm1, %v2454_v62  ;;  %v294_v19 = vld [vmem:[%s2355_s28 + $0xb0] sm:$0xff]  ;;  %526 = vrot.lane.b32.xlu1 %v2399_v36, %s2245_s7  ;;  %v296_v46 = vld [vmem:[%s2355_s28 + $0xc0] sm:$0xff] }
  0x1e   : > { %469 = vst.msk [vmem:[#allocation2 + $0x6a] sm:$0x3f] %vm460_vm2, %v2452_v61  ;;  %471 = vst.msk [vmem:[#allocation2 + $0x7a] sm:$0x3f] %vm460_vm2, %v2456_v63  ;;  %v329_v16 = vmul.f32 %v2349_v1, %v290_v60  ;;  %v332_v17 = vmul.f32 %v2349_v1, %v293_v4  ;;  %v331_v18 = vmul.f32 %v2349_v1, %v292_v5  ;;  %524 = vrot.lane.b32.xlu0 %v2401_v37, %s2245_s7  ;;  %v298_v47 = vld [vmem:[%s2355_s28 + $0xd0] sm:$0xff]  ;;  %v297_v48 = vld [vmem:[%s2355_s28 + $0xc8] sm:$0xff] }
  0x1f   : > { %v2480_v15 = vmax.f32 %v364_v9, 0.0  ;;  %470 = vst.msk [vmem:[#allocation2 + $0x72] sm:$0xff] %vm458_vm1, %v2461_v6  ;;  %472 = vst.msk [vmem:[#allocation2 + $0x82] sm:$0xff] %vm458_vm1, %v2465_v8  ;;  %v367_v20 = vadd.f32 %v2360_v2, %v328_v11  ;;  %v366_v21 = vadd.f32 %v2360_v2, %v327_v12  ;;  %v369_v22 = vadd.f32 %v2360_v2, %v330_v13  ;;  %v299_v49 = vld [vmem:[%s2355_s28 + $0xd8] sm:$0xff] }
  0x20   : > { %473 = vst.msk [vmem:[#allocation2 + $0x8a] sm:$0x3f] %vm460_vm2, %v2463_v7  ;;  %475 = vst.msk [vmem:[#allocation2 + $0x9a] sm:$0x3f] %vm460_vm2, %v2468_v10  ;;  %v368_v23 = vadd.f32 %v2360_v2, %v329_v16  ;;  %v371_v24 = vadd.f32 %v2360_v2, %v332_v17  ;;  %v370_v25 = vadd.f32 %v2360_v2, %v331_v18  ;;  %vm600_vm4 = vcmask 130112  }
  0x21   : > { %v334_v26 = vmul.f32 %v2349_v1, %v295_v14  ;;  %474 = vst.msk [vmem:[#allocation2 + $0x92] sm:$0xff] %vm458_vm1, %v2480_v15  ;;  %v2507_v27 = vmax.f32 %v367_v20, 0.0  ;;  %v2509_v31 = vmax.f32 %v366_v21, 0.0  ;;  %v2511_v32 = vmax.f32 %v369_v22, 0.0  ;;  %530 = vrot.lane.b32.xlu1 %v2409_v40, %s2245_s7 }
  0x22   : > { %v333_v33 = vmul.f32 %v2349_v1, %v294_v19  ;;  %v2514_v34 = vmax.f32 %v368_v23, 0.0  ;;  %v2516_v38 = vmax.f32 %v371_v24, 0.0  ;;  %v2518_v39 = vmax.f32 %v370_v25, 0.0  ;;  %528 = vrot.lane.b32.xlu0 %v2421_v45, %s2245_s7  ;;  %420 = vst.msk [vmem:[#allocation2 + $0xe0] sm:$0xff] %vm414_vm3, %v2244_v0  ;;  %421 = vst.msk [vmem:[#allocation2 + $0xe8] sm:$0xff] %vm414_vm3, %v2244_v0 }
  0x23   : > { %v373_v41 = vadd.f32 %v2360_v2, %v334_v26  ;;  %476 = vst.msk [vmem:[#allocation2 + $0xa2] sm:$0xff] %vm458_vm1, %v2509_v31  ;;  %v335_v50 = vmul.f32 %v2349_v1, %v296_v46  ;;  %v337_v51 = vmul.f32 %v2349_v1, %v298_v47  ;;  %v336_v52 = vmul.f32 %v2349_v1, %v297_v48 }
  0x24   : > { %v372_v42 = vadd.f32 %v2360_v2, %v333_v33  ;;  %477 = vst.msk [vmem:[#allocation2 + $0xaa] sm:$0x3f] %vm460_vm2, %v2507_v27  ;;  %479 = vst.msk [vmem:[#allocation2 + $0xba] sm:$0x3f] %vm460_vm2, %v2511_v32  ;;  %v338_v53 = vmul.f32 %v2349_v1, %v299_v49  ;;  %vm715_vm5 = vcmask 195712   ;;  %vm713_vm6 = vcmask 195714  }
  0x25   : > { %v2532_v43 = vmax.f32 %v373_v41, 0.0  ;;  %478 = vst.msk [vmem:[#allocation2 + $0xb2] sm:$0xff] %vm458_vm1, %v2514_v34  ;;  %480 = vst.msk [vmem:[#allocation2 + $0xc2] sm:$0xff] %vm458_vm1, %v2518_v39  ;;  %534 = vrot.lane.b32.xlu1 %v2452_v61, %s2245_s7  ;;  %v374_v54 = vadd.f32 %v2360_v2, %v335_v50  ;;  %v376_v55 = vadd.f32 %v2360_v2, %v337_v51  ;;  %v301_v41 = vld [vmem:[%s2355_s28 + $0xe8] sm:$0xff]  ;;  %vm845_vm7 = vcmask 259264  }
  0x26   : > { %481 = vst.msk [vmem:[#allocation2 + $0xca] sm:$0x3f] %vm460_vm2, %v2516_v38  ;;  %v2540_v44 = vmax.f32 %v372_v42, 0.0  ;;  %532 = vrot.lane.b32.xlu0 %v2454_v62, %s2245_s7  ;;  %v375_v56 = vadd.f32 %v2360_v2, %v336_v52  ;;  %v377_v57 = vadd.f32 %v2360_v2, %v338_v53  ;;  %v300_v42 = vld [vmem:[%s2355_s28 + $0xe0] sm:$0xff]  ;;  %v340_v48 = vmul.f32 %v2349_v1, %v301_v41 }
  0x27   : > { %483 = vst.msk [vmem:[#allocation2 + $0xda] sm:$0x3f] %vm460_vm2, %v2532_v43  ;;  %v2574_v58 = vmax.f32 %v374_v54, 0.0  ;;  %v2576_v59 = vmax.f32 %v376_v55, 0.0  ;;  %v339_v49 = vmul.f32 %v2349_v1, %v300_v42  ;;  %vm843_vm8 = vcmask 261312  }
  0x28   : > { %482 = vst.msk [vmem:[#allocation2 + $0xd2] sm:$0xff] %vm458_vm1, %v2540_v44  ;;  %v2582_v60 = vmax.f32 %v375_v56, 0.0  ;;  %v2584_v3 = vmax.f32 %v377_v57, 0.0  ;;  %v379_v52 = vadd.f32 %v2360_v2, %v340_v48  ;;  %vm973_vm9 = vcmask 326912  }
  0x29   : > { %538 = vrot.lane.b32.xlu1 %v2456_v63, %s2245_s7  ;;  %415 = vst.msk [vmem:[#allocation2] sm:$0xff] %vm414_vm3, %v2244_v0  ;;  %416 = vst.msk [vmem:[#allocation2 + $0x8] sm:$0xff] %vm414_vm3, %v2244_v0  ;;  %v378_v53 = vadd.f32 %v2360_v2, %v339_v49  ;;  %v1510_v49 = vld [vmem:[%s3503_s4 + $0x8] sm:$0xff]  ;;  %vm1104_vm10 = vcmask 392512   ;;  %vm1102_vm11 = vcmask 392514   ;;  %vm1222_vm12 = vcmask 456064  }
  0x2a   : > { %536 = vrot.lane.b32.xlu0 %v2461_v6, %s2245_s7  ;;  %417 = vst.msk [vmem:[#allocation2 + $0x10] sm:$0xff] %vm414_vm3, %v2244_v0  ;;  %418 = vst.msk [vmem:[#allocation2 + $0x18] sm:$0xff] %vm414_vm3, %v2244_v0  ;;  %v2762_v1 = vmax.f32 %v379_v52, 0.0  ;;  %vm1220_vm13 = vcmask 458112   ;;  %vm1334_vm14 = vcmask 523712   ;;  %vm1449_vm15 = vcmask 589312  }
  0x2b   : > { %422 = vst.msk [vmem:[#allocation2 + $0xf0] sm:$0xff] %vm414_vm3, %v2244_v0  ;;  %423 = vst.msk [vmem:[#allocation2 + $0xf8] sm:$0xff] %vm414_vm3, %v2244_v0  ;;  %v2764_v56 = vmax.f32 %v378_v53, 0.0 }
  0x2c   : > { %455 = vst.msk [vmem:[#allocation2 + $0xee] sm:$0x3] %vm424_vm0, %v2244_v0  ;;  %439 = vst.msk [vmem:[#allocation2 + $0xe0] sm:$0x3] %vm424_vm0, %v2244_v0 }
  0x2d   : > { %542 = vrot.lane.b32.xlu1 %v2463_v7, %s2245_s7  ;;  %484 = vst.msk [vmem:[#allocation2 + $0xe2] sm:$0xff] %vm458_vm1, %v2574_v58  ;;  %486 = vst.msk [vmem:[#allocation2 + $0xf2] sm:$0xff] %vm458_vm1, %v2576_v59 }
  0x2e   : > { %540 = vrot.lane.b32.xlu0 %v2465_v8, %s2245_s7  ;;  %425 = vst.msk [vmem:[#allocation2] sm:$0x3] %vm424_vm0, %v2244_v0  ;;  %426 = vst.msk [vmem:[#allocation2 + $0x10] sm:$0x3] %vm424_vm0, %v2244_v0 }
  0x2f   : > { %440 = vst.msk [vmem:[#allocation2 + $0xf0] sm:$0x3] %vm424_vm0, %v2244_v0  ;;  %441 = vst.msk [vmem:[#allocation2 + $0xe] sm:$0x3] %vm424_vm0, %v2244_v0 }
  0x30   : > { %442 = vst.msk [vmem:[#allocation2 + $0x1e] sm:$0x3] %vm424_vm0, %v2244_v0  ;;  %456 = vst.msk [vmem:[#allocation2 + $0xfe] sm:$0x3] %vm424_vm0, %v2244_v0  ;;  %vm1447_vm0 = vcmask 589314  }
  0x31   : > { %546 = vrot.lane.b32.xlu1 %v2468_v10, %s2245_s7  ;;  %485 = vst.msk [vmem:[#allocation2 + $0xea] sm:$0x3f] %vm460_vm2, %v2582_v60  ;;  %487 = vst.msk [vmem:[#allocation2 + $0xfa] sm:$0x3f] %vm460_vm2, %v2584_v3 }
  0x32   : > { %544 = vrot.lane.b32.xlu0 %v2480_v15, %s2245_s7 }
  0x35   : > { %550 = vrot.lane.b32.xlu1 %v2507_v27, %s2245_s7 }
  0x36   : > { %548 = vrot.lane.b32.xlu0 %v2509_v31, %s2245_s7 }
  0x39   : > { %554 = vrot.lane.b32.xlu1 %v2511_v32, %s2245_s7 }
  0x3a   : > { %552 = vrot.lane.b32.xlu0 %v2514_v34, %s2245_s7 }
  0x3d   : > { %558 = vrot.lane.b32.xlu1 %v2516_v38, %s2245_s7 }
  0x3e   : > { %556 = vrot.lane.b32.xlu0 %v2518_v39, %s2245_s7 }
  0x41   : > { %562 = vrot.lane.b32.xlu1 %v2532_v43, %s2245_s7 }
  0x42   : > { %560 = vrot.lane.b32.xlu0 %v2540_v44, %s2245_s7 }
  0x45   : > { %566 = vrot.lane.b32.xlu1 %v2582_v60, %s2245_s7 }
  0x46   : > { %564 = vrot.lane.b32.xlu0 %v2574_v58, %s2245_s7 }
  0x49   : > { %570 = vrot.lane.b32.xlu1 %v2584_v3, %s2245_s7 }
  0x4a   : > { %568 = vrot.lane.b32.xlu0 %v2576_v59, %s2245_s7 }
  0x4d   : > { %631 = vrot.lane.b32.xlu1 %v2397_v35, %s2246_s8 }
  0x4e   : > { %629 = vrot.lane.b32.xlu0 %v2389_v29, %s2246_s8 }
  0x51   : > { %635 = vrot.lane.b32.xlu1 %v2391_v30, %s2246_s8 }
  0x52   : > { %633 = vrot.lane.b32.xlu0 %v2387_v28, %s2246_s8 }
  0x55   : > { %639 = vrot.lane.b32.xlu1 %v2399_v36, %s2246_s8 }
  0x56   : > { %637 = vrot.lane.b32.xlu0 %v2401_v37, %s2246_s8 }
  0x59   : > { %643 = vrot.lane.b32.xlu1 %v2409_v40, %s2246_s8 }
  0x5a   : > { %641 = vrot.lane.b32.xlu0 %v2421_v45, %s2246_s8 }
  0x5d   : > { %647 = vrot.lane.b32.xlu1 %v2452_v61, %s2246_s8 }
  0x5e   : > { %645 = vrot.lane.b32.xlu0 %v2454_v62, %s2246_s8 }
  0x61   : > { %651 = vrot.lane.b32.xlu1 %v2456_v63, %s2246_s8 }
  0x62   : > { %649 = vrot.lane.b32.xlu0 %v2461_v6, %s2246_s8 }
  0x65   : > { %655 = vrot.lane.b32.xlu1 %v2463_v7, %s2246_s8 }
  0x66   : > { %653 = vrot.lane.b32.xlu0 %v2465_v8, %s2246_s8 }
  0x69   : > { %659 = vrot.lane.b32.xlu1 %v2468_v10, %s2246_s8 }
  0x6a   : > { %657 = vrot.lane.b32.xlu0 %v2480_v15, %s2246_s8 }
  0x6d   : > { %663 = vrot.lane.b32.xlu1 %v2507_v27, %s2246_s8 }
  0x6e   : > { %661 = vrot.lane.b32.xlu0 %v2509_v31, %s2246_s8 }
  0x71   : > { %667 = vrot.lane.b32.xlu1 %v2511_v32, %s2246_s8 }
  0x72   : > { %665 = vrot.lane.b32.xlu0 %v2514_v34, %s2246_s8 }
  0x75   : > { %671 = vrot.lane.b32.xlu1 %v2516_v38, %s2246_s8 }
  0x76   : > { %669 = vrot.lane.b32.xlu0 %v2518_v39, %s2246_s8 }
  0x79   : > { %675 = vrot.lane.b32.xlu1 %v2532_v43, %s2246_s8 }
  0x7a   : > { %673 = vrot.lane.b32.xlu0 %v2540_v44, %s2246_s8 }
  0x7d   : > { %679 = vrot.lane.b32.xlu1 %v2582_v60, %s2246_s8 }
  0x7e   : > { %677 = vrot.lane.b32.xlu0 %v2574_v58, %s2246_s8 }
  0x81   : > { %683 = vrot.lane.b32.xlu1 %v2584_v3, %s2246_s8 }
  0x82   : > { %681 = vrot.lane.b32.xlu0 %v2576_v59, %s2246_s8 }
  0x85   : > { %749 = vrot.lane.b32.xlu1 %v2397_v35, %s2247_s9 }
  0x86   : > { %747 = vrot.lane.b32.xlu0 %v2389_v29, %s2247_s9 }
  0x87   : > { %v521_v0 = vpop.permute.xlu1 %520 }
  0x88   : > { %v517_v4 = vpop.permute.xlu0 %516  ;;  %603 = vst.msk [vmem:[#allocation2 + $0x30] sm:$0xff] %vm600_vm4, %v521_v0 }
  0x89   : > { %601 = vst.msk [vmem:[#allocation2 + $0x20] sm:$0xff] %vm600_vm4, %v517_v4  ;;  %753 = vrot.lane.b32.xlu1 %v2391_v30, %s2247_s9 }
  0x8a   : > { %751 = vrot.lane.b32.xlu0 %v2387_v28, %s2247_s9 }
  0x8b   : > { %v523_v5 = vpop.permute.xlu1 %522 }
  0x8c   : > { %v519_v9 = vpop.permute.xlu0 %518  ;;  %604 = vst.msk [vmem:[#allocation2 + $0x38] sm:$0xff] %vm600_vm4, %v523_v5 }
  0x8d   : > { %602 = vst.msk [vmem:[#allocation2 + $0x28] sm:$0xff] %vm600_vm4, %v519_v9  ;;  %757 = vrot.lane.b32.xlu1 %v2399_v36, %s2247_s9 }
  0x8e   : > { %755 = vrot.lane.b32.xlu0 %v2401_v37, %s2247_s9 }
  0x8f   : > { %v527_v11 = vpop.permute.xlu1 %526 }
  0x90   : > { %v525_v12 = vpop.permute.xlu0 %524  ;;  %606 = vst.msk [vmem:[#allocation2 + $0x48] sm:$0xff] %vm600_vm4, %v527_v11 }
  0x91   : > { %605 = vst.msk [vmem:[#allocation2 + $0x40] sm:$0xff] %vm600_vm4, %v525_v12  ;;  %761 = vrot.lane.b32.xlu1 %v2409_v40, %s2247_s9 }
  0x92   : > { %759 = vrot.lane.b32.xlu0 %v2421_v45, %s2247_s9 }
  0x93   : > { %v531_v13 = vpop.permute.xlu1 %530 }
  0x94   : > { %v529_v14 = vpop.permute.xlu0 %528  ;;  %608 = vst.msk [vmem:[#allocation2 + $0x58] sm:$0xff] %vm600_vm4, %v531_v13 }
  0x95   : > { %607 = vst.msk [vmem:[#allocation2 + $0x50] sm:$0xff] %vm600_vm4, %v529_v14  ;;  %765 = vrot.lane.b32.xlu1 %v2452_v61, %s2247_s9 }
  0x96   : > { %763 = vrot.lane.b32.xlu0 %v2454_v62, %s2247_s9 }
  0x97   : > { %v535_v16 = vpop.permute.xlu1 %534 }
  0x98   : > { %v533_v17 = vpop.permute.xlu0 %532  ;;  %610 = vst.msk [vmem:[#allocation2 + $0x68] sm:$0xff] %vm600_vm4, %v535_v16 }
  0x99   : > { %609 = vst.msk [vmem:[#allocation2 + $0x60] sm:$0xff] %vm600_vm4, %v533_v17  ;;  %769 = vrot.lane.b32.xlu1 %v2456_v63, %s2247_s9 }
  0x9a   : > { %767 = vrot.lane.b32.xlu0 %v2461_v6, %s2247_s9 }
  0x9b   : > { %v539_v18 = vpop.permute.xlu1 %538 }
  0x9c   : > { %v537_v19 = vpop.permute.xlu0 %536  ;;  %612 = vst.msk [vmem:[#allocation2 + $0x78] sm:$0xff] %vm600_vm4, %v539_v18 }
  0x9d   : > { %611 = vst.msk [vmem:[#allocation2 + $0x70] sm:$0xff] %vm600_vm4, %v537_v19  ;;  %773 = vrot.lane.b32.xlu1 %v2463_v7, %s2247_s9  ;;  %v1516_v19 = vld [vmem:[%s3503_s4 + $0x38] sm:$0xff] }
  0x9e   : > { %771 = vrot.lane.b32.xlu0 %v2465_v8, %s2247_s9 }
  0x9f   : > { %v543_v20 = vpop.permute.xlu1 %542 }
  0xa0   : > { %v541_v21 = vpop.permute.xlu0 %540  ;;  %614 = vst.msk [vmem:[#allocation2 + $0x88] sm:$0xff] %vm600_vm4, %v543_v20  ;;  %v1515_v20 = vld [vmem:[%s3503_s4 + $0x30] sm:$0xff] }
  0xa1   : > { %613 = vst.msk [vmem:[#allocation2 + $0x80] sm:$0xff] %vm600_vm4, %v541_v21  ;;  %777 = vrot.lane.b32.xlu1 %v2468_v10, %s2247_s9 }
  0xa2   : > { %775 = vrot.lane.b32.xlu0 %v2480_v15, %s2247_s9 }
  0xa3   : > { %v547_v22 = vpop.permute.xlu1 %546 }
  0xa4   : > { %v545_v23 = vpop.permute.xlu0 %544  ;;  %616 = vst.msk [vmem:[#allocation2 + $0x98] sm:$0xff] %vm600_vm4, %v547_v22 }
  0xa5   : > { %615 = vst.msk [vmem:[#allocation2 + $0x90] sm:$0xff] %vm600_vm4, %v545_v23  ;;  %781 = vrot.lane.b32.xlu1 %v2507_v27, %s2247_s9  ;;  %v1514_v23 = vld [vmem:[%s3503_s4 + $0x28] sm:$0xff] }
  0xa6   : > { %779 = vrot.lane.b32.xlu0 %v2509_v31, %s2247_s9 }
  0xa7   : > { %v551_v24 = vpop.permute.xlu1 %550 }
  0xa8   : > { %v549_v25 = vpop.permute.xlu0 %548  ;;  %618 = vst.msk [vmem:[#allocation2 + $0xa8] sm:$0xff] %vm600_vm4, %v551_v24 }
  0xa9   : > { %617 = vst.msk [vmem:[#allocation2 + $0xa0] sm:$0xff] %vm600_vm4, %v549_v25  ;;  %785 = vrot.lane.b32.xlu1 %v2511_v32, %s2247_s9 }
  0xaa   : > { %783 = vrot.lane.b32.xlu0 %v2514_v34, %s2247_s9 }
  0xab   : > { %v555_v26 = vpop.permute.xlu1 %554 }
  0xac   : > { %v553_v33 = vpop.permute.xlu0 %552  ;;  %620 = vst.msk [vmem:[#allocation2 + $0xb8] sm:$0xff] %vm600_vm4, %v555_v26  ;;  %v1513_v26 = vld [vmem:[%s3503_s4 + $0x20] sm:$0xff] }
  0xad   : > { %619 = vst.msk [vmem:[#allocation2 + $0xb0] sm:$0xff] %vm600_vm4, %v553_v33  ;;  %789 = vrot.lane.b32.xlu1 %v2516_v38, %s2247_s9  ;;  %v1512_v33 = vld [vmem:[%s3503_s4 + $0x18] sm:$0xff] }
  0xae   : > { %787 = vrot.lane.b32.xlu0 %v2518_v39, %s2247_s9 }
  0xaf   : > { %v559_v46 = vpop.permute.xlu1 %558 }
  0xb0   : > { %v557_v47 = vpop.permute.xlu0 %556  ;;  %622 = vst.msk [vmem:[#allocation2 + $0xc8] sm:$0xff] %vm600_vm4, %v559_v46  ;;  %v1511_v46 = vld [vmem:[%s3503_s4 + $0x10] sm:$0xff] }
  0xb1   : > { %621 = vst.msk [vmem:[#allocation2 + $0xc0] sm:$0xff] %vm600_vm4, %v557_v47  ;;  %793 = vrot.lane.b32.xlu1 %v2532_v43, %s2247_s9 }
  0xb2   : > { %791 = vrot.lane.b32.xlu0 %v2540_v44, %s2247_s9 }
  0xb3   : > { %v563_v50 = vpop.permute.xlu1 %562 }
  0xb4   : > { %v561_v51 = vpop.permute.xlu0 %560  ;;  %624 = vst.msk [vmem:[#allocation2 + $0xd8] sm:$0xff] %vm600_vm4, %v563_v50  ;;  %v1509_v50 = vld [vmem:[%s3503_s4] sm:$0xff] }
  0xb5   : > { %623 = vst.msk [vmem:[#allocation2 + $0xd0] sm:$0xff] %vm600_vm4, %v561_v51  ;;  %797 = vrot.lane.b32.xlu1 %v2582_v60, %s2247_s9 }
  0xb6   : > { %795 = vrot.lane.b32.xlu0 %v2574_v58, %s2247_s9 }
  0xb7   : > { %v567_v54 = vpop.permute.xlu1 %566 }
  0xb8   : > { %v565_v55 = vpop.permute.xlu0 %564  ;;  %626 = vst.msk [vmem:[#allocation2 + $0xe8] sm:$0xff] %vm600_vm4, %v567_v54 }
  0xb9   : > { %625 = vst.msk [vmem:[#allocation2 + $0xe0] sm:$0xff] %vm600_vm4, %v565_v55  ;;  %801 = vrot.lane.b32.xlu1 %v2584_v3, %s2247_s9 }
  0xba   : > { %799 = vrot.lane.b32.xlu0 %v2576_v59, %s2247_s9 }
  0xbb   : > { %v571_v57 = vpop.permute.xlu1 %570 }
  0xbc   : > { %v569_v0 = vpop.permute.xlu0 %568  ;;  %628 = vst.msk [vmem:[#allocation2 + $0xf8] sm:$0xff] %vm600_vm4, %v571_v57 }
  0xbd   : > { %627 = vst.msk [vmem:[#allocation2 + $0xf0] sm:$0xff] %vm600_vm4, %v569_v0  ;;  %805 = vrot.lane.b32.xlu1 %v2762_v1, %s2247_s9 }
  0xbe   : > { %803 = vrot.lane.b32.xlu0 %v2764_v56, %s2247_s9 }
  0xbf   : > { %v632_v2 = vpop.permute.xlu1 %631 }
  0xc0   : > { %v630_v4 = vpop.permute.xlu0 %629  ;;  %716 = vst.msk [vmem:[#allocation2 + $0x26] sm:$0xff] %vm715_vm5, %v632_v2 }
  0xc1   : > { %714 = vst.msk [vmem:[#allocation2 + $0x1e] sm:$0xfc] %vm713_vm6, %v630_v4  ;;  %879 = vrot.lane.b32.xlu1 %v2397_v35, %s2248_s10 }
  0xc2   : > { %877 = vrot.lane.b32.xlu0 %v2389_v29, %s2248_s10 }
  0xc3   : > { %v636_v5 = vpop.permute.xlu1 %635 }
  0xc4   : > { %v634_v9 = vpop.permute.xlu0 %633  ;;  %718 = vst.msk [vmem:[#allocation2 + $0x36] sm:$0xff] %vm715_vm5, %v636_v5 }
  0xc5   : > { %717 = vst.msk [vmem:[#allocation2 + $0x2e] sm:$0xfc] %vm713_vm6, %v634_v9  ;;  %911 = vrot.lane.b32.xlu1 %v2507_v27, %s2248_s10 }
  0xc6   : > { %909 = vrot.lane.b32.xlu0 %v2509_v31, %s2248_s10 }
  0xc7   : > { %v640_v11 = vpop.permute.xlu1 %639 }
  0xc8   : > { %v638_v12 = vpop.permute.xlu0 %637  ;;  %720 = vst.msk [vmem:[#allocation2 + $0x46] sm:$0xff] %vm715_vm5, %v640_v11 }
  0xc9   : > { %719 = vst.msk [vmem:[#allocation2 + $0x3e] sm:$0xfc] %vm713_vm6, %v638_v12  ;;  %1008 = vrot.lane.b32.xlu1 %v2397_v35, %s2249_s11 }
  0xca   : > { %1006 = vrot.lane.b32.xlu0 %v2389_v29, %s2249_s11  ;;  %v1517_v29 = vld [vmem:[%s3503_s4 + $0x40] sm:$0xff] }
  0xcb   : > { %v644_v13 = vpop.permute.xlu1 %643  ;;  %2133 = vmatprep.subr.mxu0 %v1517_v29  ;;  %2199 = vmatprep.subr.mxu1 %v1517_v29 }
  0xcc   : > { %v642_v14 = vpop.permute.xlu0 %641  ;;  %722 = vst.msk [vmem:[#allocation2 + $0x56] sm:$0xff] %vm715_vm5, %v644_v13  ;;  %2134 = vmatpush3.msra.mxu0 %v1517_v29  ;;  %2208 = vmatpush3.msra.mxu1 %v1517_v29 }
  0xcd   : > { %721 = vst.msk [vmem:[#allocation2 + $0x4e] sm:$0xfc] %vm713_vm6, %v642_v14  ;;  %1040 = vrot.lane.b32.xlu1 %v2507_v27, %s2249_s11  ;;  %2135 = vmatprep.subr.mxu0 %v1516_v19 }
  0xce   : > { %1038 = vrot.lane.b32.xlu0 %v2509_v31, %s2249_s11  ;;  %2200 = vmatprep.subr.mxu1 %v1516_v19 }
  0xcf   : > { %v648_v16 = vpop.permute.xlu1 %647  ;;  %2136 = vmatpush3.msra.mxu0 %v1516_v19  ;;  %2209 = vmatpush3.msra.mxu1 %v1516_v19 }
  0xd0   : > { %v646_v17 = vpop.permute.xlu0 %645  ;;  %724 = vst.msk [vmem:[#allocation2 + $0x66] sm:$0xff] %vm715_vm5, %v648_v16  ;;  %2137 = vmatprep.subr.mxu0 %v1515_v20  ;;  %2201 = vmatprep.subr.mxu1 %v1515_v20 }
  0xd1   : > { %723 = vst.msk [vmem:[#allocation2 + $0x5e] sm:$0xfc] %vm713_vm6, %v646_v17  ;;  %1138 = vrot.lane.b32.xlu1 %v2399_v36, %s2250_s12  ;;  %2138 = vmatpush3.msra.mxu0 %v1515_v20 }
  0xd2   : > { %1136 = vrot.lane.b32.xlu0 %v2401_v37, %s2250_s12  ;;  %2210 = vmatpush3.msra.mxu1 %v1515_v20 }
  0xd3   : > { %v652_v35 = vpop.permute.xlu1 %651  ;;  %2139 = vmatprep.subr.mxu0 %v1514_v23  ;;  %2202 = vmatprep.subr.mxu1 %v1514_v23 }
  0xd4   : > { %v650_v18 = vpop.permute.xlu0 %649  ;;  %726 = vst.msk [vmem:[#allocation2 + $0x76] sm:$0xff] %vm715_vm5, %v652_v35  ;;  %2140 = vmatpush3.msra.mxu0 %v1514_v23  ;;  %2211 = vmatpush3.msra.mxu1 %v1514_v23 }
  0xd5   : > { %725 = vst.msk [vmem:[#allocation2 + $0x6e] sm:$0xfc] %vm713_vm6, %v650_v18  ;;  %1170 = vrot.lane.b32.xlu1 %v2516_v38, %s2250_s12  ;;  %2141 = vmatprep.subr.mxu0 %v1513_v26 }
  0xd6   : > { %1168 = vrot.lane.b32.xlu0 %v2518_v39, %s2250_s12  ;;  %2203 = vmatprep.subr.mxu1 %v1513_v26 }
  0xd7   : > { %v656_v21 = vpop.permute.xlu1 %655  ;;  %2142 = vmatpush3.msra.mxu0 %v1513_v26  ;;  %2212 = vmatpush3.msra.mxu1 %v1513_v26 }
  0xd8   : > { %v654_v22 = vpop.permute.xlu0 %653  ;;  %728 = vst.msk [vmem:[#allocation2 + $0x86] sm:$0xff] %vm715_vm5, %v656_v21  ;;  %2143 = vmatprep.subr.mxu0 %v1512_v33  ;;  %2204 = vmatprep.subr.mxu1 %v1512_v33 }
  0xd9   : > { %727 = vst.msk [vmem:[#allocation2 + $0x7e] sm:$0xfc] %vm713_vm6, %v654_v22  ;;  %1252 = vrot.lane.b32.xlu1 %v2399_v36, %s2251_s22  ;;  %2144 = vmatpush3.msra.mxu0 %v1512_v33 }
  0xda   : > { %1250 = vrot.lane.b32.xlu0 %v2401_v37, %s2251_s22  ;;  %2213 = vmatpush3.msra.mxu1 %v1512_v33 }
  0xdb   : > { %v660_v24 = vpop.permute.xlu1 %659  ;;  %2145 = vmatprep.subr.mxu0 %v1511_v46  ;;  %2205 = vmatprep.subr.mxu1 %v1511_v46 }
  0xdc   : > { %v658_v25 = vpop.permute.xlu0 %657  ;;  %730 = vst.msk [vmem:[#allocation2 + $0x96] sm:$0xff] %vm715_vm5, %v660_v24  ;;  %2146 = vmatpush3.msra.mxu0 %v1511_v46  ;;  %2214 = vmatpush3.msra.mxu1 %v1511_v46 }
  0xdd   : > { %729 = vst.msk [vmem:[#allocation2 + $0x8e] sm:$0xfc] %vm713_vm6, %v658_v25  ;;  %1284 = vrot.lane.b32.xlu1 %v2516_v38, %s2251_s22  ;;  %2147 = vmatprep.subr.mxu0 %v1510_v49 }
  0xde   : > { %1282 = vrot.lane.b32.xlu0 %v2518_v39, %s2251_s22  ;;  %2206 = vmatprep.subr.mxu1 %v1510_v49 }
  0xdf   : > { %v664_v41 = vpop.permute.xlu1 %663  ;;  %2148 = vmatpush3.msra.mxu0 %v1510_v49  ;;  %2215 = vmatpush3.msra.mxu1 %v1510_v49 }
  0xe0   : > { %v662_v42 = vpop.permute.xlu0 %661  ;;  %732 = vst.msk [vmem:[#allocation2 + $0xa6] sm:$0xff] %vm715_vm5, %v664_v41  ;;  %2149 = vmatprep.subr.mxu0 %v1509_v50  ;;  %2207 = vmatprep.subr.mxu1 %v1509_v50 }
  0xe1   : > { %731 = vst.msk [vmem:[#allocation2 + $0x9e] sm:$0xfc] %vm713_vm6, %v662_v42  ;;  %883 = vrot.lane.b32.xlu1 %v2391_v30, %s2248_s10  ;;  %2150 = vmatpush3.msra.mxu0 %v1509_v50 }
  0xe2   : > { %881 = vrot.lane.b32.xlu0 %v2387_v28, %s2248_s10  ;;  %2216 = vmatpush3.msra.mxu1 %v1509_v50 }
  0xe3   : > { %v668_v47 = vpop.permute.xlu1 %667 }
  0xe4   : > { %v666_v48 = vpop.permute.xlu0 %665  ;;  %734 = vst.msk [vmem:[#allocation2 + $0xb6] sm:$0xff] %vm715_vm5, %v668_v47 }
  0xe5   : > { %733 = vst.msk [vmem:[#allocation2 + $0xae] sm:$0xfc] %vm713_vm6, %v666_v48  ;;  %915 = vrot.lane.b32.xlu1 %v2511_v32, %s2248_s10 }
  0xe6   : > { %913 = vrot.lane.b32.xlu0 %v2514_v34, %s2248_s10 }
  0xe7   : > { %v672_v51 = vpop.permute.xlu1 %671 }
  0xe8   : > { %v670_v52 = vpop.permute.xlu0 %669  ;;  %736 = vst.msk [vmem:[#allocation2 + $0xc6] sm:$0xff] %vm715_vm5, %v672_v51 }
  0xe9   : > { %735 = vst.msk [vmem:[#allocation2 + $0xbe] sm:$0xfc] %vm713_vm6, %v670_v52  ;;  %1365 = vrot.lane.b32.xlu1 %v2399_v36, %s2252_s15 }
  0xea   : > { %1363 = vrot.lane.b32.xlu0 %v2401_v37, %s2252_s15 }
  0xeb   : > { %v676_v53 = vpop.permute.xlu1 %675 }
  0xec   : > { %v674_v54 = vpop.permute.xlu0 %673  ;;  %738 = vst.msk [vmem:[#allocation2 + $0xd6] sm:$0xff] %vm715_vm5, %v676_v53 }
  0xed   : > { %737 = vst.msk [vmem:[#allocation2 + $0xce] sm:$0xfc] %vm713_vm6, %v674_v54  ;;  %1397 = vrot.lane.b32.xlu1 %v2516_v38, %s2252_s15 }
  0xee   : > { %1395 = vrot.lane.b32.xlu0 %v2518_v39, %s2252_s15 }
  0xef   : > { %v680_v55 = vpop.permute.xlu1 %679 }
  0xf0   : > { %v678_v57 = vpop.permute.xlu0 %677  ;;  %740 = vst.msk [vmem:[#allocation2 + $0xe6] sm:$0xff] %vm715_vm5, %v680_v55 }
  0xf1   : > { %739 = vst.msk [vmem:[#allocation2 + $0xde] sm:$0xfc] %vm713_vm6, %v678_v57  ;;  %1012 = vrot.lane.b32.xlu1 %v2391_v30, %s2249_s11 }
  0xf2   : > { %1010 = vrot.lane.b32.xlu0 %v2387_v28, %s2249_s11 }
  0xf3   : > { %v684_v0 = vpop.permute.xlu1 %683 }
  0xf4   : > { %v682_v2 = vpop.permute.xlu0 %681  ;;  %742 = vst.msk [vmem:[#allocation2 + $0xf6] sm:$0xff] %vm715_vm5, %v684_v0 }
  0xf5   : > { %741 = vst.msk [vmem:[#allocation2 + $0xee] sm:$0xfc] %vm713_vm6, %v682_v2  ;;  %1044 = vrot.lane.b32.xlu1 %v2511_v32, %s2249_s11 }
  0xf6   : > { %1042 = vrot.lane.b32.xlu0 %v2514_v34, %s2249_s11 }
  0xf7   : > { %v750_v4 = vpop.permute.xlu1 %749 }
  0xf8   : > { %v748_v5 = vpop.permute.xlu0 %747  ;;  %846 = vst.msk [vmem:[#allocation2 + $0xa] sm:$0x3f] %vm845_vm7, %v750_v4 }
  0xf9   : > { %844 = vst.msk [vmem:[#allocation2 + $0x2] sm:$0xff] %vm843_vm8, %v748_v5  ;;  %1142 = vrot.lane.b32.xlu1 %v2409_v40, %s2250_s12 }
  0xfa   : > { %1140 = vrot.lane.b32.xlu0 %v2421_v45, %s2250_s12 }
  0xfb   : > { %v754_v28 = vpop.permute.xlu1 %753 }
  0xfc   : > { %v752_v30 = vpop.permute.xlu0 %751  ;;  %848 = vst.msk [vmem:[#allocation2 + $0x1a] sm:$0x3f] %vm845_vm7, %v754_v28 }
  0xfd   : > { %847 = vst.msk [vmem:[#allocation2 + $0x12] sm:$0xff] %vm843_vm8, %v752_v30  ;;  %1174 = vrot.lane.b32.xlu1 %v2532_v43, %s2250_s12 }
  0xfe   : > { %1172 = vrot.lane.b32.xlu0 %v2540_v44, %s2250_s12 }
  0xff   : > { %v758_v9 = vpop.permute.xlu1 %757 }
 0x100   : > { %v756_v11 = vpop.permute.xlu0 %755  ;;  %850 = vst.msk [vmem:[#allocation2 + $0x2a] sm:$0x3f] %vm845_vm7, %v758_v9 }
 0x101   : > { %849 = vst.msk [vmem:[#allocation2 + $0x22] sm:$0xff] %vm843_vm8, %v756_v11  ;;  %1256 = vrot.lane.b32.xlu1 %v2409_v40, %s2251_s22 }
 0x102   : > { %1254 = vrot.lane.b32.xlu0 %v2421_v45, %s2251_s22 }
 0x103   : > { %v762_v12 = vpop.permute.xlu1 %761 }
 0x104   : > { %v760_v13 = vpop.permute.xlu0 %759  ;;  %852 = vst.msk [vmem:[#allocation2 + $0x3a] sm:$0x3f] %vm845_vm7, %v762_v12 }
 0x105   : > { %851 = vst.msk [vmem:[#allocation2 + $0x32] sm:$0xff] %vm843_vm8, %v760_v13  ;;  %1288 = vrot.lane.b32.xlu1 %v2532_v43, %s2251_s22 }
 0x106   : > { %1286 = vrot.lane.b32.xlu0 %v2540_v44, %s2251_s22 }
 0x107   : > { %v766_v14 = vpop.permute.xlu1 %765 }
 0x108   : > { %v764_v16 = vpop.permute.xlu0 %763  ;;  %854 = vst.msk [vmem:[#allocation2 + $0x4a] sm:$0x3f] %vm845_vm7, %v766_v14 }
 0x109   : > { %853 = vst.msk [vmem:[#allocation2 + $0x42] sm:$0xff] %vm843_vm8, %v764_v16  ;;  %887 = vrot.lane.b32.xlu1 %v2399_v36, %s2248_s10 }
 0x10a   : > { %885 = vrot.lane.b32.xlu0 %v2401_v37, %s2248_s10 }
 0x10b   : > { %v770_v17 = vpop.permute.xlu1 %769 }
 0x10c   : > { %v768_v29 = vpop.permute.xlu0 %767  ;;  %856 = vst.msk [vmem:[#allocation2 + $0x5a] sm:$0x3f] %vm845_vm7, %v770_v17 }
 0x10d   : > { %855 = vst.msk [vmem:[#allocation2 + $0x52] sm:$0xff] %vm843_vm8, %v768_v29  ;;  %919 = vrot.lane.b32.xlu1 %v2516_v38, %s2248_s10 }
 0x10e   : > { %917 = vrot.lane.b32.xlu0 %v2518_v39, %s2248_s10 }
 0x10f   : > { %v774_v35 = vpop.permute.xlu1 %773 }
 0x110   : > { %v772_v18 = vpop.permute.xlu0 %771  ;;  %858 = vst.msk [vmem:[#allocation2 + $0x6a] sm:$0x3f] %vm845_vm7, %v774_v35 }
 0x111   : > { %857 = vst.msk [vmem:[#allocation2 + $0x62] sm:$0xff] %vm843_vm8, %v772_v18  ;;  %1369 = vrot.lane.b32.xlu1 %v2409_v40, %s2252_s15 }
 0x112   : > { %1367 = vrot.lane.b32.xlu0 %v2421_v45, %s2252_s15 }
 0x113   : > { %v778_v19 = vpop.permute.xlu1 %777 }
 0x114   : > { %v776_v20 = vpop.permute.xlu0 %775  ;;  %860 = vst.msk [vmem:[#allocation2 + $0x7a] sm:$0x3f] %vm845_vm7, %v778_v19 }
 0x115   : > { %859 = vst.msk [vmem:[#allocation2 + $0x72] sm:$0xff] %vm843_vm8, %v776_v20  ;;  %1401 = vrot.lane.b32.xlu1 %v2532_v43, %s2252_s15 }
 0x116   : > { %1399 = vrot.lane.b32.xlu0 %v2540_v44, %s2252_s15 }
 0x117   : > { %v782_v21 = vpop.permute.xlu1 %781 }
 0x118   : > { %v780_v22 = vpop.permute.xlu0 %779  ;;  %862 = vst.msk [vmem:[#allocation2 + $0x8a] sm:$0x3f] %vm845_vm7, %v782_v21 }
 0x119   : > { %861 = vst.msk [vmem:[#allocation2 + $0x82] sm:$0xff] %vm843_vm8, %v780_v22  ;;  %1016 = vrot.lane.b32.xlu1 %v2399_v36, %s2249_s11 }
 0x11a   : > { %1014 = vrot.lane.b32.xlu0 %v2401_v37, %s2249_s11 }
 0x11b   : > { %v786_v23 = vpop.permute.xlu1 %785 }
 0x11c   : > { %v784_v24 = vpop.permute.xlu0 %783  ;;  %864 = vst.msk [vmem:[#allocation2 + $0x9a] sm:$0x3f] %vm845_vm7, %v786_v23 }
 0x11d   : > { %863 = vst.msk [vmem:[#allocation2 + $0x92] sm:$0xff] %vm843_vm8, %v784_v24  ;;  %1048 = vrot.lane.b32.xlu1 %v2516_v38, %s2249_s11 }
 0x11e   : > { %1046 = vrot.lane.b32.xlu0 %v2518_v39, %s2249_s11 }
 0x11f   : > { %v790_v25 = vpop.permute.xlu1 %789 }
 0x120   : > { %v788_v26 = vpop.permute.xlu0 %787  ;;  %866 = vst.msk [vmem:[#allocation2 + $0xaa] sm:$0x3f] %vm845_vm7, %v790_v25 }
 0x121   : > { %865 = vst.msk [vmem:[#allocation2 + $0xa2] sm:$0xff] %vm843_vm8, %v788_v26  ;;  %1146 = vrot.lane.b32.xlu1 %v2452_v61, %s2250_s12 }
 0x122   : > { %1144 = vrot.lane.b32.xlu0 %v2454_v62, %s2250_s12 }
 0x123   : > { %v794_v36 = vpop.permute.xlu1 %793 }
 0x124   : > { %v792_v37 = vpop.permute.xlu0 %791  ;;  %868 = vst.msk [vmem:[#allocation2 + $0xba] sm:$0x3f] %vm845_vm7, %v794_v36 }
 0x125   : > { %867 = vst.msk [vmem:[#allocation2 + $0xb2] sm:$0xff] %vm843_vm8, %v792_v37  ;;  %1178 = vrot.lane.b32.xlu1 %v2582_v60, %s2250_s12 }
 0x126   : > { %1176 = vrot.lane.b32.xlu0 %v2574_v58, %s2250_s12 }
 0x127   : > { %v798_v38 = vpop.permute.xlu1 %797 }
 0x128   : > { %v796_v39 = vpop.permute.xlu0 %795  ;;  %870 = vst.msk [vmem:[#allocation2 + $0xca] sm:$0x3f] %vm845_vm7, %v798_v38 }
 0x129   : > { %869 = vst.msk [vmem:[#allocation2 + $0xc2] sm:$0xff] %vm843_vm8, %v796_v39  ;;  %1260 = vrot.lane.b32.xlu1 %v2452_v61, %s2251_s22 }
 0x12a   : > { %1258 = vrot.lane.b32.xlu0 %v2454_v62, %s2251_s22 }
 0x12b   : > { %v802_v33 = vpop.permute.xlu1 %801 }
 0x12c   : > { %v800_v41 = vpop.permute.xlu0 %799  ;;  %872 = vst.msk [vmem:[#allocation2 + $0xda] sm:$0x3f] %vm845_vm7, %v802_v33 }
 0x12d   : > { %871 = vst.msk [vmem:[#allocation2 + $0xd2] sm:$0xff] %vm843_vm8, %v800_v41  ;;  %1292 = vrot.lane.b32.xlu1 %v2582_v60, %s2251_s22 }
 0x12e   : > { %1290 = vrot.lane.b32.xlu0 %v2574_v58, %s2251_s22 }
 0x12f   : > { %v806_v42 = vpop.permute.xlu1 %805 }
 0x130   : > { %v804_v46 = vpop.permute.xlu0 %803  ;;  %874 = vst.msk [vmem:[#allocation2 + $0xea] sm:$0x3f] %vm845_vm7, %v806_v42 }
 0x131   : > { %873 = vst.msk [vmem:[#allocation2 + $0xe2] sm:$0xff] %vm843_vm8, %v804_v46  ;;  %891 = vrot.lane.b32.xlu1 %v2409_v40, %s2248_s10 }
 0x132   : > { %889 = vrot.lane.b32.xlu0 %v2421_v45, %s2248_s10 }
 0x133   : > { %v880_v47 = vpop.permute.xlu1 %879 }
 0x134   : > { %v878_v48 = vpop.permute.xlu0 %877  ;;  %975 = vst.msk [vmem:[#allocation2 + $0x8] sm:$0xff] %vm973_vm9, %v880_v47 }
 0x135   : > { %974 = vst.msk [vmem:[#allocation2] sm:$0xff] %vm973_vm9, %v878_v48  ;;  %923 = vrot.lane.b32.xlu1 %v2532_v43, %s2248_s10 }
 0x136   : > { %921 = vrot.lane.b32.xlu0 %v2540_v44, %s2248_s10 }
 0x137   : > { %v912_v49 = vpop.permute.xlu1 %911 }
 0x138   : > { %v910_v50 = vpop.permute.xlu0 %909  ;;  %991 = vst.msk [vmem:[#allocation2 + $0x88] sm:$0xff] %vm973_vm9, %v912_v49  ;;  %v303_v49 = vld [vmem:[%s2355_s28 + $0xf8] sm:$0xff] }
 0x139   : > { %990 = vst.msk [vmem:[#allocation2 + $0x80] sm:$0xff] %vm973_vm9, %v910_v50  ;;  %1373 = vrot.lane.b32.xlu1 %v2452_v61, %s2252_s15  ;;  %v302_v50 = vld [vmem:[%s2355_s28 + $0xf0] sm:$0xff] }
 0x13a   : > { %1371 = vrot.lane.b32.xlu0 %v2454_v62, %s2252_s15 }
 0x13b   : > { %v1009_v51 = vpop.permute.xlu1 %1008 }
 0x13c   : > { %v1007_v52 = vpop.permute.xlu0 %1006  ;;  %1105 = vst.msk [vmem:[#allocation2 + $0x6] sm:$0xff] %vm1104_vm10, %v1009_v51 }
 0x13d   : > { %1103 = vst.msk [vmem:[#allocation2 - $0x2] sm:$0xfc] %vm1102_vm11, %v1007_v52  ;;  %1405 = vrot.lane.b32.xlu1 %v2582_v60, %s2252_s15 }
 0x13e   : > { %1403 = vrot.lane.b32.xlu0 %v2574_v58, %s2252_s15 }
 0x13f   : > { %v1041_v53 = vpop.permute.xlu1 %1040 }
 0x140   : > { %v1039_v54 = vpop.permute.xlu0 %1038  ;;  %1121 = vst.msk [vmem:[#allocation2 + $0x86] sm:$0xff] %vm1104_vm10, %v1041_v53 }
 0x141   : > { %1120 = vst.msk [vmem:[#allocation2 + $0x7e] sm:$0xfc] %vm1102_vm11, %v1039_v54  ;;  %1020 = vrot.lane.b32.xlu1 %v2409_v40, %s2249_s11 }
 0x142   : > { %1018 = vrot.lane.b32.xlu0 %v2421_v45, %s2249_s11 }
 0x143   : > { %v1139_v55 = vpop.permute.xlu1 %1138 }
 0x144   : > { %v1137_v57 = vpop.permute.xlu0 %1136  ;;  %1223 = vst.msk [vmem:[#allocation2 + $0xa] sm:$0x3f] %vm1222_vm12, %v1139_v55  ;;  %v2234_v55 = vld [vmem:[%s3501_s2] ss:$0 sm:$0xff] }
 0x145   : > { %1221 = vst.msk [vmem:[#allocation2 + $0x2] sm:$0xff] %vm1220_vm13, %v1137_v57  ;;  %1052 = vrot.lane.b32.xlu1 %v2532_v43, %s2249_s11  ;;  %v342_v57 = vmul.f32 %v2234_v55, %v303_v49 }
 0x146   : > { %1050 = vrot.lane.b32.xlu0 %v2540_v44, %s2249_s11 }
 0x147   : > { %v1171_v0 = vpop.permute.xlu1 %1170 }
 0x148   : > { %v1169_v2 = vpop.permute.xlu0 %1168  ;;  %1239 = vst.msk [vmem:[#allocation2 + $0x8a] sm:$0x3f] %vm1222_vm12, %v1171_v0  ;;  %v341_v0 = vmul.f32 %v2234_v55, %v302_v50 }
 0x149   : > { %1238 = vst.msk [vmem:[#allocation2 + $0x82] sm:$0xff] %vm1220_vm13, %v1169_v2  ;;  %1150 = vrot.lane.b32.xlu1 %v2456_v63, %s2250_s12 }
 0x14a   : > { %1148 = vrot.lane.b32.xlu0 %v2461_v6, %s2250_s12 }
 0x14b   : > { %v1253_v40 = vpop.permute.xlu1 %1252 }
 0x14c   : > { %v1251_v45 = vpop.permute.xlu0 %1250  ;;  %1336 = vst.msk [vmem:[#allocation2 + $0x8] sm:$0xff] %vm1334_vm14, %v1253_v40 }
 0x14d   : > { %1335 = vst.msk [vmem:[#allocation2] sm:$0xff] %vm1334_vm14, %v1251_v45  ;;  %1182 = vrot.lane.b32.xlu1 %v2584_v3, %s2250_s12 }
 0x14e   : > { %1180 = vrot.lane.b32.xlu0 %v2576_v59, %s2250_s12 }
 0x14f   : > { %v1285_v43 = vpop.permute.xlu1 %1284 }
 0x150   : > { %v1283_v44 = vpop.permute.xlu0 %1282  ;;  %1352 = vst.msk [vmem:[#allocation2 + $0x88] sm:$0xff] %vm1334_vm14, %v1285_v43 }
 0x151   : > { %1351 = vst.msk [vmem:[#allocation2 + $0x80] sm:$0xff] %vm1334_vm14, %v1283_v44  ;;  %1264 = vrot.lane.b32.xlu1 %v2456_v63, %s2251_s22 }
 0x152   : > { %1262 = vrot.lane.b32.xlu0 %v2461_v6, %s2251_s22 }
 0x153   : > { %v884_v4 = vpop.permute.xlu1 %883 }
 0x154   : > { %v882_v5 = vpop.permute.xlu0 %881  ;;  %977 = vst.msk [vmem:[#allocation2 + $0x18] sm:$0xff] %vm973_vm9, %v884_v4 }
 0x155   : > { %976 = vst.msk [vmem:[#allocation2 + $0x10] sm:$0xff] %vm973_vm9, %v882_v5  ;;  %1296 = vrot.lane.b32.xlu1 %v2584_v3, %s2251_s22 }
 0x156   : > { %1294 = vrot.lane.b32.xlu0 %v2576_v59, %s2251_s22 }
 0x157   : > { %v916_v28 = vpop.permute.xlu1 %915 }
 0x158   : > { %v914_v30 = vpop.permute.xlu0 %913  ;;  %993 = vst.msk [vmem:[#allocation2 + $0x98] sm:$0xff] %vm973_vm9, %v916_v28 }
 0x159   : > { %992 = vst.msk [vmem:[#allocation2 + $0x90] sm:$0xff] %vm973_vm9, %v914_v30  ;;  %895 = vrot.lane.b32.xlu1 %v2452_v61, %s2248_s10 }
 0x15a   : > { %893 = vrot.lane.b32.xlu0 %v2454_v62, %s2248_s10 }
 0x15b   : > { %v1366_v9 = vpop.permute.xlu1 %1365 }
 0x15c   : > { %v1364_v11 = vpop.permute.xlu0 %1363  ;;  %1450 = vst.msk [vmem:[#allocation2 + $0x6] sm:$0xff] %vm1449_vm15, %v1366_v9 }
 0x15d   : > { %1448 = vst.msk [vmem:[#allocation2 - $0x2] sm:$0xfc] %vm1447_vm0, %v1364_v11  ;;  %927 = vrot.lane.b32.xlu1 %v2582_v60, %s2248_s10 }
 0x15e   : > { %925 = vrot.lane.b32.xlu0 %v2574_v58, %s2248_s10 }
 0x15f   : > { %v1398_v12 = vpop.permute.xlu1 %1397 }
 0x160   : > { %v1396_v13 = vpop.permute.xlu0 %1395  ;;  %1466 = vst.msk [vmem:[#allocation2 + $0x86] sm:$0xff] %vm1449_vm15, %v1398_v12 }
 0x161   : > { %1465 = vst.msk [vmem:[#allocation2 + $0x7e] sm:$0xfc] %vm1447_vm0, %v1396_v13  ;;  %1377 = vrot.lane.b32.xlu1 %v2456_v63, %s2252_s15 }
 0x162   : > { %1375 = vrot.lane.b32.xlu0 %v2461_v6, %s2252_s15 }
 0x163   : > { %v1013_v14 = vpop.permute.xlu1 %1012  ;;  %v1478_v29 = vld [vmem:[#allocation2 + $0x8] sm:$0xff] }
 0x164   : > { %v1011_v16 = vpop.permute.xlu0 %1010  ;;  %v1477_v17 = vld [vmem:[#allocation2] sm:$0xff]  ;;  %1107 = vst.msk [vmem:[#allocation2 + $0x16] sm:$0xff] %vm1104_vm10, %v1013_v14 }
 0x165   : > { %1106 = vst.msk [vmem:[#allocation2 + $0xe] sm:$0xfc] %vm1102_vm11, %v1011_v16  ;;  %2151 = vmatprep.mubr.msk.f32.mxu0 %vm414_vm3, %v1477_v17  ;;  %1409 = vrot.lane.b32.xlu1 %v2584_v3, %s2252_s15 }
 0x166   : > { %1407 = vrot.lane.b32.xlu0 %v2576_v59, %s2252_s15  ;;  %2152 = vmatmul.mubr.msk.f32.vlgmr.msra.gmra.mxu0 %vm414_vm3, %v1478_v29 }
 0x167   : > { %v1045_v35 = vpop.permute.xlu1 %1044  ;;  %v1494_v20 = vld [vmem:[#allocation2 + $0x88] sm:$0xff] }
 0x168   : > { %v1043_v18 = vpop.permute.xlu0 %1042  ;;  %v1493_v19 = vld [vmem:[#allocation2 + $0x80] sm:$0xff]  ;;  %1123 = vst.msk [vmem:[#allocation2 + $0x96] sm:$0xff] %vm1104_vm10, %v1045_v35 }
 0x169   : > { %1122 = vst.msk [vmem:[#allocation2 + $0x8e] sm:$0xfc] %vm1102_vm11, %v1043_v18  ;;  %2175 = vmatprep.mubr.msk.f32.mxu1 %vm414_vm3, %v1493_v19  ;;  %1024 = vrot.lane.b32.xlu1 %v2452_v61, %s2249_s11 }
 0x16a   : > { %1022 = vrot.lane.b32.xlu0 %v2454_v62, %s2249_s11  ;;  %2176 = vmatmul.mubr.msk.f32.vlgmr.msra.gmra.mxu1 %vm414_vm3, %v1494_v20 }
 0x16b   : > { %v1143_v21 = vpop.permute.xlu1 %1142 }
 0x16c   : > { %v1141_v22 = vpop.permute.xlu0 %1140  ;;  %1225 = vst.msk [vmem:[#allocation2 + $0x1a] sm:$0x3f] %vm1222_vm12, %v1143_v21 }
 0x16d   : > { %1224 = vst.msk [vmem:[#allocation2 + $0x12] sm:$0xff] %vm1220_vm13, %v1141_v22  ;;  %1056 = vrot.lane.b32.xlu1 %v2582_v60, %s2249_s11 }
 0x16e   : > { %1054 = vrot.lane.b32.xlu0 %v2574_v58, %s2249_s11 }
 0x16f   : > { %v1175_v23 = vpop.permute.xlu1 %1174 }
 0x170   : > { %v1173_v24 = vpop.permute.xlu0 %1172  ;;  %1241 = vst.msk [vmem:[#allocation2 + $0x9a] sm:$0x3f] %vm1222_vm12, %v1175_v23 }
 0x171   : > { %1240 = vst.msk [vmem:[#allocation2 + $0x92] sm:$0xff] %vm1220_vm13, %v1173_v24  ;;  %1154 = vrot.lane.b32.xlu1 %v2463_v7, %s2250_s12 }
 0x172   : > { %1152 = vrot.lane.b32.xlu0 %v2465_v8, %s2250_s12 }
 0x173   : > { %v1257_v61 = vpop.permute.xlu1 %1256 }
 0x174   : > { %v1255_v62 = vpop.permute.xlu0 %1254  ;;  %1338 = vst.msk [vmem:[#allocation2 + $0x18] sm:$0xff] %vm1334_vm14, %v1257_v61 }
 0x175   : > { %1337 = vst.msk [vmem:[#allocation2 + $0x10] sm:$0xff] %vm1334_vm14, %v1255_v62  ;;  %1186 = vrot.lane.b32.xlu1 %v2762_v1, %s2250_s12 }
 0x176   : > { %1184 = vrot.lane.b32.xlu0 %v2764_v56, %s2250_s12 }
 0x177   : > { %v1289_v58 = vpop.permute.xlu1 %1288 }
 0x178   : > { %v1287_v60 = vpop.permute.xlu0 %1286  ;;  %1354 = vst.msk [vmem:[#allocation2 + $0x98] sm:$0xff] %vm1334_vm14, %v1289_v58 }
 0x179   : > { %1353 = vst.msk [vmem:[#allocation2 + $0x90] sm:$0xff] %vm1334_vm14, %v1287_v60  ;;  %1268 = vrot.lane.b32.xlu1 %v2463_v7, %s2251_s22 }
 0x17a   : > { %1266 = vrot.lane.b32.xlu0 %v2465_v8, %s2251_s22 }
 0x17b   : > { %v888_v25 = vpop.permute.xlu1 %887 }
 0x17c   : > { %v886_v26 = vpop.permute.xlu0 %885  ;;  %979 = vst.msk [vmem:[#allocation2 + $0x28] sm:$0xff] %vm973_vm9, %v888_v25 }
 0x17d   : > { %978 = vst.msk [vmem:[#allocation2 + $0x20] sm:$0xff] %vm973_vm9, %v886_v26  ;;  %1300 = vrot.lane.b32.xlu1 %v2762_v1, %s2251_s22 }
 0x17e   : > { %1298 = vrot.lane.b32.xlu0 %v2764_v56, %s2251_s22 }
 0x17f   : > { %v920_v36 = vpop.permute.xlu1 %919 }
 0x180   : > { %v918_v37 = vpop.permute.xlu0 %917  ;;  %995 = vst.msk [vmem:[#allocation2 + $0xa8] sm:$0xff] %vm973_vm9, %v920_v36 }
 0x181   : > { %994 = vst.msk [vmem:[#allocation2 + $0xa0] sm:$0xff] %vm973_vm9, %v918_v37  ;;  %899 = vrot.lane.b32.xlu1 %v2456_v63, %s2248_s10 }
 0x182   : > { %897 = vrot.lane.b32.xlu0 %v2461_v6, %s2248_s10 }
 0x183   : > { %v1370_v38 = vpop.permute.xlu1 %1369 }
 0x184   : > { %v1368_v39 = vpop.permute.xlu0 %1367  ;;  %1452 = vst.msk [vmem:[#allocation2 + $0x16] sm:$0xff] %vm1449_vm15, %v1370_v38 }
 0x185   : > { %1451 = vst.msk [vmem:[#allocation2 + $0xe] sm:$0xfc] %vm1447_vm0, %v1368_v39  ;;  %931 = vrot.lane.b32.xlu1 %v2584_v3, %s2248_s10 }
 0x186   : > { %929 = vrot.lane.b32.xlu0 %v2576_v59, %s2248_s10 }
 0x187   : > { %v1402_v33 = vpop.permute.xlu1 %1401 }
 0x188   : > { %v1400_v41 = vpop.permute.xlu0 %1399  ;;  %1468 = vst.msk [vmem:[#allocation2 + $0x96] sm:$0xff] %vm1449_vm15, %v1402_v33 }
 0x189   : > { %1467 = vst.msk [vmem:[#allocation2 + $0x8e] sm:$0xfc] %vm1447_vm0, %v1400_v41  ;;  %1381 = vrot.lane.b32.xlu1 %v2463_v7, %s2252_s15 }
 0x18a   : > { %1379 = vrot.lane.b32.xlu0 %v2465_v8, %s2252_s15 }
 0x18b   : > { %v1017_v42 = vpop.permute.xlu1 %1016  ;;  %v1480_v48 = vld [vmem:[#allocation2 + $0x18] sm:$0xff] }
 0x18c   : > { %v1015_v46 = vpop.permute.xlu0 %1014  ;;  %v1479_v47 = vld [vmem:[#allocation2 + $0x10] sm:$0xff]  ;;  %1109 = vst.msk [vmem:[#allocation2 + $0x26] sm:$0xff] %vm1104_vm10, %v1017_v42 }
 0x18d   : > { %1108 = vst.msk [vmem:[#allocation2 + $0x1e] sm:$0xfc] %vm1102_vm11, %v1015_v46  ;;  %2154 = vmatprep.mubr.msk.f32.mxu0 %vm414_vm3, %v1479_v47  ;;  %1413 = vrot.lane.b32.xlu1 %v2762_v1, %s2252_s15 }
 0x18e   : > { %1411 = vrot.lane.b32.xlu0 %v2764_v56, %s2252_s15  ;;  %2155 = vmatmul.mubr.msk.f32.gmra.mxu0 %vm414_vm3, %v1480_v48 }
 0x18f   : > { %v1049_v51 = vpop.permute.xlu1 %1048  ;;  %v1496_v54 = vld [vmem:[#allocation2 + $0x98] sm:$0xff] }
 0x190   : > { %v1047_v52 = vpop.permute.xlu0 %1046  ;;  %v1495_v53 = vld [vmem:[#allocation2 + $0x90] sm:$0xff]  ;;  %1125 = vst.msk [vmem:[#allocation2 + $0xa6] sm:$0xff] %vm1104_vm10, %v1049_v51 }
 0x191   : > { %1124 = vst.msk [vmem:[#allocation2 + $0x9e] sm:$0xfc] %vm1102_vm11, %v1047_v52  ;;  %2178 = vmatprep.mubr.msk.f32.mxu1 %vm414_vm3, %v1495_v53  ;;  %1028 = vrot.lane.b32.xlu1 %v2456_v63, %s2249_s11  ;;  %v2235_v63 = vld [vmem:[%s3502_s3] ss:$0 sm:$0xff] }
 0x192   : > { %1026 = vrot.lane.b32.xlu0 %v2461_v6, %s2249_s11  ;;  %2179 = vmatmul.mubr.msk.f32.gmra.mxu1 %vm414_vm3, %v1496_v54  ;;  %v381_v6 = vadd.f32 %v2235_v63, %v342_v57  ;;  %v380_v45 = vadd.f32 %v2235_v63, %v341_v0 }
 0x193   : > { %v1147_v2 = vpop.permute.xlu1 %1146 }
 0x194   : > { %v1145_v40 = vpop.permute.xlu0 %1144  ;;  %1227 = vst.msk [vmem:[#allocation2 + $0x2a] sm:$0x3f] %vm1222_vm12, %v1147_v2 }
 0x195   : > { %1226 = vst.msk [vmem:[#allocation2 + $0x22] sm:$0xff] %vm1220_vm13, %v1145_v40  ;;  %1060 = vrot.lane.b32.xlu1 %v2584_v3, %s2249_s11  ;;  %v3145_v3 = vmax.f32 %v381_v6, 0.0 }
 0x196   : > { %1058 = vrot.lane.b32.xlu0 %v2576_v59, %s2249_s11  ;;  %v3147_v59 = vmax.f32 %v380_v45, 0.0 }
 0x197   : > { %v1179_v43 = vpop.permute.xlu1 %1178 }
 0x198   : > { %v1177_v44 = vpop.permute.xlu0 %1176  ;;  %1243 = vst.msk [vmem:[#allocation2 + $0xaa] sm:$0x3f] %vm1222_vm12, %v1179_v43 }
 0x199   : > { %1242 = vst.msk [vmem:[#allocation2 + $0xa2] sm:$0xff] %vm1220_vm13, %v1177_v44  ;;  %1158 = vrot.lane.b32.xlu1 %v2468_v10, %s2250_s12 }
 0x19a   : > { %1156 = vrot.lane.b32.xlu0 %v2480_v15, %s2250_s12 }
 0x19b   : > { %v1261_v4 = vpop.permute.xlu1 %1260 }
 0x19c   : > { %v1259_v5 = vpop.permute.xlu0 %1258  ;;  %1340 = vst.msk [vmem:[#allocation2 + $0x28] sm:$0xff] %vm1334_vm14, %v1261_v4 }
 0x19d   : > { %1339 = vst.msk [vmem:[#allocation2 + $0x20] sm:$0xff] %vm1334_vm14, %v1259_v5  ;;  %1190 = vrot.lane.b32.xlu1 %v3145_v3, %s2250_s12 }
 0x19e   : > { %1188 = vrot.lane.b32.xlu0 %v3147_v59, %s2250_s12 }
 0x19f   : > { %v1293_v28 = vpop.permute.xlu1 %1292 }
 0x1a0   : > { %v1291_v30 = vpop.permute.xlu0 %1290  ;;  %1356 = vst.msk [vmem:[#allocation2 + $0xa8] sm:$0xff] %vm1334_vm14, %v1293_v28 }
 0x1a1   : > { %1355 = vst.msk [vmem:[#allocation2 + $0xa0] sm:$0xff] %vm1334_vm14, %v1291_v30  ;;  %1272 = vrot.lane.b32.xlu1 %v2468_v10, %s2251_s22 }
 0x1a2   : > { %1270 = vrot.lane.b32.xlu0 %v2480_v15, %s2251_s22 }
 0x1a3   : > { %v892_v9 = vpop.permute.xlu1 %891 }
 0x1a4   : > { %v890_v11 = vpop.permute.xlu0 %889  ;;  %981 = vst.msk [vmem:[#allocation2 + $0x38] sm:$0xff] %vm973_vm9, %v892_v9 }
 0x1a5   : > { %980 = vst.msk [vmem:[#allocation2 + $0x30] sm:$0xff] %vm973_vm9, %v890_v11  ;;  %1304 = vrot.lane.b32.xlu1 %v3145_v3, %s2251_s22 }
 0x1a6   : > { %1302 = vrot.lane.b32.xlu0 %v3147_v59, %s2251_s22 }
 0x1a7   : > { %v924_v12 = vpop.permute.xlu1 %923 }
 0x1a8   : > { %v922_v13 = vpop.permute.xlu0 %921  ;;  %997 = vst.msk [vmem:[#allocation2 + $0xb8] sm:$0xff] %vm973_vm9, %v924_v12 }
 0x1a9   : > { %996 = vst.msk [vmem:[#allocation2 + $0xb0] sm:$0xff] %vm973_vm9, %v922_v13  ;;  %903 = vrot.lane.b32.xlu1 %v2463_v7, %s2248_s10 }
 0x1aa   : > { %901 = vrot.lane.b32.xlu0 %v2465_v8, %s2248_s10 }
 0x1ab   : > { %v1374_v14 = vpop.permute.xlu1 %1373 }
 0x1ac   : > { %v1372_v16 = vpop.permute.xlu0 %1371  ;;  %1454 = vst.msk [vmem:[#allocation2 + $0x26] sm:$0xff] %vm1449_vm15, %v1374_v14 }
 0x1ad   : > { %1453 = vst.msk [vmem:[#allocation2 + $0x1e] sm:$0xfc] %vm1447_vm0, %v1372_v16  ;;  %1385 = vrot.lane.b32.xlu1 %v2468_v10, %s2252_s15 }
 0x1ae   : > { %1383 = vrot.lane.b32.xlu0 %v2480_v15, %s2252_s15 }
 0x1af   : > { %v1406_v17 = vpop.permute.xlu1 %1405 }
 0x1b0   : > { %v1404_v29 = vpop.permute.xlu0 %1403  ;;  %1470 = vst.msk [vmem:[#allocation2 + $0xa6] sm:$0xff] %vm1449_vm15, %v1406_v17 }
 0x1b1   : > { %1469 = vst.msk [vmem:[#allocation2 + $0x9e] sm:$0xfc] %vm1447_vm0, %v1404_v29  ;;  %1417 = vrot.lane.b32.xlu1 %v3145_v3, %s2252_s15 }
 0x1b2   : > { %1415 = vrot.lane.b32.xlu0 %v3147_v59, %s2252_s15 }
 0x1b3   : > { %v1021_v35 = vpop.permute.xlu1 %1020  ;;  %v1482_v20 = vld [vmem:[#allocation2 + $0x28] sm:$0xff] }
 0x1b4   : > { %v1019_v18 = vpop.permute.xlu0 %1018  ;;  %v1481_v19 = vld [vmem:[#allocation2 + $0x20] sm:$0xff]  ;;  %1111 = vst.msk [vmem:[#allocation2 + $0x36] sm:$0xff] %vm1104_vm10, %v1021_v35 }
 0x1b5   : > { %1110 = vst.msk [vmem:[#allocation2 + $0x2e] sm:$0xfc] %vm1102_vm11, %v1019_v18  ;;  %2157 = vmatprep.mubr.msk.f32.mxu0 %vm414_vm3, %v1481_v19  ;;  %1032 = vrot.lane.b32.xlu1 %v2463_v7, %s2249_s11 }
 0x1b6   : > { %1030 = vrot.lane.b32.xlu0 %v2465_v8, %s2249_s11  ;;  %2158 = vmatmul.mubr.msk.f32.gmra.mxu0 %vm414_vm3, %v1482_v20 }
 0x1b7   : > { %v1053_v21 = vpop.permute.xlu1 %1052  ;;  %v1498_v24 = vld [vmem:[#allocation2 + $0xa8] sm:$0xff] }
 0x1b8   : > { %v1051_v22 = vpop.permute.xlu0 %1050  ;;  %v1497_v23 = vld [vmem:[#allocation2 + $0xa0] sm:$0xff]  ;;  %1127 = vst.msk [vmem:[#allocation2 + $0xb6] sm:$0xff] %vm1104_vm10, %v1053_v21 }
 0x1b9   : > { %1126 = vst.msk [vmem:[#allocation2 + $0xae] sm:$0xfc] %vm1102_vm11, %v1051_v22  ;;  %2181 = vmatprep.mubr.msk.f32.mxu1 %vm414_vm3, %v1497_v23  ;;  %1162 = vrot.lane.b32.xlu1 %v2507_v27, %s2250_s12  ;;  %v3314_v23 = vld [vmem:[%s3504_s5] ss:$0 sm:$0xff] }
 0x1ba   : > { %1160 = vrot.lane.b32.xlu0 %v2509_v31, %s2250_s12  ;;  %2182 = vmatmul.mubr.msk.f32.gmra.mxu1 %vm414_vm3, %v1498_v24 }
 0x1bb   : > { %v1151_v7 = vpop.permute.xlu1 %1150 }
 0x1bc   : > { %v1149_v8 = vpop.permute.xlu0 %1148  ;;  %1229 = vst.msk [vmem:[#allocation2 + $0x3a] sm:$0x3f] %vm1222_vm12, %v1151_v7 }
 0x1bd   : > { %1228 = vst.msk [vmem:[#allocation2 + $0x32] sm:$0xff] %vm1220_vm13, %v1149_v8  ;;  %935 = vrot.lane.b32.xlu1 %v2762_v1, %s2248_s10 }
 0x1be   : > { %933 = vrot.lane.b32.xlu0 %v2764_v56, %s2248_s10 }
 0x1bf   : > { %v1183_v61 = vpop.permute.xlu1 %1182 }
 0x1c0   : > { %v1181_v62 = vpop.permute.xlu0 %1180  ;;  %1245 = vst.msk [vmem:[#allocation2 + $0xba] sm:$0x3f] %vm1222_vm12, %v1183_v61 }
 0x1c1   : > { %1244 = vst.msk [vmem:[#allocation2 + $0xb2] sm:$0xff] %vm1220_vm13, %v1181_v62  ;;  %1276 = vrot.lane.b32.xlu1 %v2507_v27, %s2251_s22 }
 0x1c2   : > { %1274 = vrot.lane.b32.xlu0 %v2509_v31, %s2251_s22 }
 0x1c3   : > { %v1265_v58 = vpop.permute.xlu1 %1264 }
 0x1c4   : > { %v1263_v60 = vpop.permute.xlu0 %1262  ;;  %1342 = vst.msk [vmem:[#allocation2 + $0x38] sm:$0xff] %vm1334_vm14, %v1265_v58 }
 0x1c5   : > { %1341 = vst.msk [vmem:[#allocation2 + $0x30] sm:$0xff] %vm1334_vm14, %v1263_v60  ;;  %907 = vrot.lane.b32.xlu1 %v2468_v10, %s2248_s10  ;;  %v1879_v60 = vld [vmem:[%s3320_s19 + $0x8] sm:$0xff] }
 0x1c6   : > { %905 = vrot.lane.b32.xlu0 %v2480_v15, %s2248_s10 }
 0x1c7   : > { %v1297_v25 = vpop.permute.xlu1 %1296 }
 0x1c8   : > { %v1295_v26 = vpop.permute.xlu0 %1294  ;;  %1358 = vst.msk [vmem:[#allocation2 + $0xb8] sm:$0xff] %vm1334_vm14, %v1297_v25 }
 0x1c9   : > { %1357 = vst.msk [vmem:[#allocation2 + $0xb0] sm:$0xff] %vm1334_vm14, %v1295_v26  ;;  %1064 = vrot.lane.b32.xlu1 %v2762_v1, %s2249_s11 }
 0x1ca   : > { %1062 = vrot.lane.b32.xlu0 %v2764_v56, %s2249_s11 }
 0x1cb   : > { %v896_v36 = vpop.permute.xlu1 %895 }
 0x1cc   : > { %v894_v37 = vpop.permute.xlu0 %893  ;;  %983 = vst.msk [vmem:[#allocation2 + $0x48] sm:$0xff] %vm973_vm9, %v896_v36 }
 0x1cd   : > { %982 = vst.msk [vmem:[#allocation2 + $0x40] sm:$0xff] %vm973_vm9, %v894_v37  ;;  %1389 = vrot.lane.b32.xlu1 %v2507_v27, %s2252_s15  ;;  %v1878_v37 = vld [vmem:[%s3320_s19] sm:$0xff] }
 0x1ce   : > { %1387 = vrot.lane.b32.xlu0 %v2509_v31, %s2252_s15 }
 0x1cf   : > { %v928_v38 = vpop.permute.xlu1 %927 }
 0x1d0   : > { %v926_v39 = vpop.permute.xlu0 %925  ;;  %999 = vst.msk [vmem:[#allocation2 + $0xc8] sm:$0xff] %vm973_vm9, %v928_v38 }
 0x1d1   : > { %998 = vst.msk [vmem:[#allocation2 + $0xc0] sm:$0xff] %vm973_vm9, %v926_v39  ;;  %1036 = vrot.lane.b32.xlu1 %v2468_v10, %s2249_s11 }
 0x1d2   : > { %1034 = vrot.lane.b32.xlu0 %v2480_v15, %s2249_s11 }
 0x1d3   : > { %v1378_v1 = vpop.permute.xlu1 %1377 }
 0x1d4   : > { %v1376_v56 = vpop.permute.xlu0 %1375  ;;  %1456 = vst.msk [vmem:[#allocation2 + $0x36] sm:$0xff] %vm1449_vm15, %v1378_v1 }
 0x1d5   : > { %1455 = vst.msk [vmem:[#allocation2 + $0x2e] sm:$0xfc] %vm1447_vm0, %v1376_v56  ;;  %809 = vrot.lane.b32.xlu1 %v3145_v3, %s2247_s9 }
 0x1d6   : > { %807 = vrot.lane.b32.xlu0 %v3147_v59, %s2247_s9 }
 0x1d7   : > { %v1410_v27 = vpop.permute.xlu1 %1409 }
 0x1d8   : > { %v1408_v31 = vpop.permute.xlu0 %1407  ;;  %1472 = vst.msk [vmem:[#allocation2 + $0xb6] sm:$0xff] %vm1449_vm15, %v1410_v27 }
 0x1d9   : > { %1471 = vst.msk [vmem:[#allocation2 + $0xae] sm:$0xfc] %vm1447_vm0, %v1408_v31  ;;  %1166 = vrot.lane.b32.xlu1 %v2511_v32, %s2250_s12 }
 0x1da   : > { %1164 = vrot.lane.b32.xlu0 %v2514_v34, %s2250_s12 }
 0x1db   : > { %v1025_v10 = vpop.permute.xlu1 %1024  ;;  %v1484_v41 = vld [vmem:[#allocation2 + $0x38] sm:$0xff] }
 0x1dc   : > { %v1023_v15 = vpop.permute.xlu0 %1022  ;;  %v1483_v33 = vld [vmem:[#allocation2 + $0x30] sm:$0xff]  ;;  %1113 = vst.msk [vmem:[#allocation2 + $0x46] sm:$0xff] %vm1104_vm10, %v1025_v10 }
 0x1dd   : > { %1112 = vst.msk [vmem:[#allocation2 + $0x3e] sm:$0xfc] %vm1102_vm11, %v1023_v15  ;;  %2160 = vmatprep.mubr.msk.f32.mxu0 %vm414_vm3, %v1483_v33  ;;  %939 = vrot.lane.b32.xlu1 %v3145_v3, %s2248_s10  ;;  %v1895_v33 = vld [vmem:[%s3320_s19 + $0x88] sm:$0xff] }
 0x1de   : > { %937 = vrot.lane.b32.xlu0 %v3147_v59, %s2248_s10  ;;  %2161 = vmatmul.mubr.msk.f32.gmra.mxu0 %vm414_vm3, %v1484_v41 }
 0x1df   : > { %v1057_v42 = vpop.permute.xlu1 %1056  ;;  %v1500_v48 = vld [vmem:[#allocation2 + $0xb8] sm:$0xff] }
 0x1e0   : > { %v1055_v46 = vpop.permute.xlu0 %1054  ;;  %v1499_v47 = vld [vmem:[#allocation2 + $0xb0] sm:$0xff]  ;;  %1129 = vst.msk [vmem:[#allocation2 + $0xc6] sm:$0xff] %vm1104_vm10, %v1057_v42 }
 0x1e1   : > { %1128 = vst.msk [vmem:[#allocation2 + $0xbe] sm:$0xfc] %vm1102_vm11, %v1055_v46  ;;  %2184 = vmatprep.mubr.msk.f32.mxu1 %vm414_vm3, %v1499_v47  ;;  %1280 = vrot.lane.b32.xlu1 %v2511_v32, %s2251_s22 }
 0x1e2   : > { %1278 = vrot.lane.b32.xlu0 %v2514_v34, %s2251_s22  ;;  %2185 = vmatmul.mubr.msk.f32.gmra.mxu1 %vm414_vm3, %v1500_v48  ;;  %v1894_v48 = vld [vmem:[%s3320_s19 + $0x80] sm:$0xff] }
 0x1e3   : > { %v1155_v49 = vpop.permute.xlu1 %1154 }
 0x1e4   : > { %v1153_v50 = vpop.permute.xlu0 %1152  ;;  %1231 = vst.msk [vmem:[#allocation2 + $0x4a] sm:$0x3f] %vm1222_vm12, %v1155_v49 }
 0x1e5   : > { %1230 = vst.msk [vmem:[#allocation2 + $0x42] sm:$0xff] %vm1220_vm13, %v1153_v50  ;;  %1068 = vrot.lane.b32.xlu1 %v3145_v3, %s2249_s11 }
 0x1e6   : > { %1066 = vrot.lane.b32.xlu0 %v3147_v59, %s2249_s11 }
 0x1e7   : > { %v1187_v51 = vpop.permute.xlu1 %1186 }
 0x1e8   : > { %v1185_v52 = vpop.permute.xlu0 %1184  ;;  %1247 = vst.msk [vmem:[#allocation2 + $0xca] sm:$0x3f] %vm1222_vm12, %v1187_v51 }
 0x1e9   : > { %1246 = vst.msk [vmem:[#allocation2 + $0xc2] sm:$0xff] %vm1220_vm13, %v1185_v52  ;;  %1393 = vrot.lane.b32.xlu1 %v2511_v32, %s2252_s15 }
 0x1ea   : > { %1391 = vrot.lane.b32.xlu0 %v2514_v34, %s2252_s15 }
 0x1eb   : > { %v1269_v53 = vpop.permute.xlu1 %1268 }
 0x1ec   : > { %v1267_v54 = vpop.permute.xlu0 %1266  ;;  %1344 = vst.msk [vmem:[#allocation2 + $0x48] sm:$0xff] %vm1334_vm14, %v1269_v53 }
 0x1ed   : > { %1343 = vst.msk [vmem:[#allocation2 + $0x40] sm:$0xff] %vm1334_vm14, %v1267_v54 }
 0x1ef   : > { %v1301_v55 = vpop.permute.xlu1 %1300 }
 0x1f0   : > { %v1299_v57 = vpop.permute.xlu0 %1298  ;;  %1360 = vst.msk [vmem:[#allocation2 + $0xc8] sm:$0xff] %vm1334_vm14, %v1301_v55 }
 0x1f1   : > { %1359 = vst.msk [vmem:[#allocation2 + $0xc0] sm:$0xff] %vm1334_vm14, %v1299_v57 }
 0x1f3   : > { %v900_v0 = vpop.permute.xlu1 %899 }
 0x1f4   : > { %v898_v2 = vpop.permute.xlu0 %897  ;;  %985 = vst.msk [vmem:[#allocation2 + $0x58] sm:$0xff] %vm973_vm9, %v900_v0 }
 0x1f5   : > { %984 = vst.msk [vmem:[#allocation2 + $0x50] sm:$0xff] %vm973_vm9, %v898_v2 }
 0x1f7   : > { %v932_v32 = vpop.permute.xlu1 %931 }
 0x1f8   : > { %v930_v34 = vpop.permute.xlu0 %929  ;;  %1001 = vst.msk [vmem:[#allocation2 + $0xd8] sm:$0xff] %vm973_vm9, %v932_v32 }
 0x1f9   : > { %1000 = vst.msk [vmem:[#allocation2 + $0xd0] sm:$0xff] %vm973_vm9, %v930_v34 }
 0x1fb   : > { %v1382_v40 = vpop.permute.xlu1 %1381 }
 0x1fc   : > { %v1380_v63 = vpop.permute.xlu0 %1379  ;;  %1458 = vst.msk [vmem:[#allocation2 + $0x46] sm:$0xff] %vm1449_vm15, %v1382_v40 }
 0x1fd   : > { %1457 = vst.msk [vmem:[#allocation2 + $0x3e] sm:$0xfc] %vm1447_vm0, %v1380_v63 }
 0x1ff   : > { %v1414_v6 = vpop.permute.xlu1 %1413 }
 0x200   : > { %v1412_v45 = vpop.permute.xlu0 %1411  ;;  %1474 = vst.msk [vmem:[#allocation2 + $0xc6] sm:$0xff] %vm1449_vm15, %v1414_v6 }
 0x201   : > { %1473 = vst.msk [vmem:[#allocation2 + $0xbe] sm:$0xfc] %vm1447_vm0, %v1412_v45 }
 0x203   : > { %v1029_v43 = vpop.permute.xlu1 %1028  ;;  %v1486_v59 = vld [vmem:[#allocation2 + $0x48] sm:$0xff] }
 0x204   : > { %v1027_v44 = vpop.permute.xlu0 %1026  ;;  %v1485_v3 = vld [vmem:[#allocation2 + $0x40] sm:$0xff]  ;;  %1115 = vst.msk [vmem:[#allocation2 + $0x56] sm:$0xff] %vm1104_vm10, %v1029_v43 }
 0x205   : > { %1114 = vst.msk [vmem:[#allocation2 + $0x4e] sm:$0xfc] %vm1102_vm11, %v1027_v44  ;;  %2163 = vmatprep.mubr.msk.f32.mxu0 %vm414_vm3, %v1485_v3 }
 0x206   : > { %2164 = vmatmul.mubr.msk.f32.gmra.mxu0 %vm414_vm3, %v1486_v59 }
 0x207   : > { %v1061_v4 = vpop.permute.xlu1 %1060  ;;  %v1502_v30 = vld [vmem:[#allocation2 + $0xc8] sm:$0xff] }
 0x208   : > { %v1059_v5 = vpop.permute.xlu0 %1058  ;;  %v1501_v28 = vld [vmem:[#allocation2 + $0xc0] sm:$0xff]  ;;  %1131 = vst.msk [vmem:[#allocation2 + $0xd6] sm:$0xff] %vm1104_vm10, %v1061_v4 }
 0x209   : > { %1130 = vst.msk [vmem:[#allocation2 + $0xce] sm:$0xfc] %vm1102_vm11, %v1059_v5  ;;  %2187 = vmatprep.mubr.msk.f32.mxu1 %vm414_vm3, %v1501_v28 }
 0x20a   : > { %2188 = vmatmul.mubr.msk.f32.gmra.mxu1 %vm414_vm3, %v1502_v30 }
 0x20b   : > { %v1159_v9 = vpop.permute.xlu1 %1158 }
 0x20c   : > { %v1157_v11 = vpop.permute.xlu0 %1156  ;;  %1233 = vst.msk [vmem:[#allocation2 + $0x5a] sm:$0x3f] %vm1222_vm12, %v1159_v9 }
 0x20d   : > { %1232 = vst.msk [vmem:[#allocation2 + $0x52] sm:$0xff] %vm1220_vm13, %v1157_v11 }
 0x20f   : > { %v1191_v12 = vpop.permute.xlu1 %1190 }
 0x210   : > { %v1189_v13 = vpop.permute.xlu0 %1188  ;;  %1249 = vst.msk [vmem:[#allocation2 + $0xda] sm:$0x3f] %vm1222_vm12, %v1191_v12 }
 0x211   : > { %1248 = vst.msk [vmem:[#allocation2 + $0xd2] sm:$0xff] %vm1220_vm13, %v1189_v13  ;;  %v1881_v13 = vld [vmem:[%s3320_s19 + $0x18] sm:$0xff] }
 0x213   : > { %v1273_v14 = vpop.permute.xlu1 %1272 }
 0x214   : > { %v1271_v16 = vpop.permute.xlu0 %1270  ;;  %1346 = vst.msk [vmem:[#allocation2 + $0x58] sm:$0xff] %vm1334_vm14, %v1273_v14 }
 0x215   : > { %1345 = vst.msk [vmem:[#allocation2 + $0x50] sm:$0xff] %vm1334_vm14, %v1271_v16 }
 0x217   : > { %v1305_v17 = vpop.permute.xlu1 %1304 }
 0x218   : > { %v1303_v29 = vpop.permute.xlu0 %1302  ;;  %1362 = vst.msk [vmem:[#allocation2 + $0xd8] sm:$0xff] %vm1334_vm14, %v1305_v17 }
 0x219   : > { %1361 = vst.msk [vmem:[#allocation2 + $0xd0] sm:$0xff] %vm1334_vm14, %v1303_v29  ;;  %v1880_v29 = vld [vmem:[%s3320_s19 + $0x10] sm:$0xff] }
 0x21b   : > { %v904_v35 = vpop.permute.xlu1 %903 }
 0x21c   : > { %v902_v18 = vpop.permute.xlu0 %901  ;;  %987 = vst.msk [vmem:[#allocation2 + $0x68] sm:$0xff] %vm973_vm9, %v904_v35 }
 0x21d   : > { %986 = vst.msk [vmem:[#allocation2 + $0x60] sm:$0xff] %vm973_vm9, %v902_v18 }
 0x21f   : > { %v1386_v19 = vpop.permute.xlu1 %1385 }
 0x220   : > { %v1384_v20 = vpop.permute.xlu0 %1383  ;;  %1460 = vst.msk [vmem:[#allocation2 + $0x56] sm:$0xff] %vm1449_vm15, %v1386_v19 }
 0x221   : > { %1459 = vst.msk [vmem:[#allocation2 + $0x4e] sm:$0xfc] %vm1447_vm0, %v1384_v20 }
 0x223   : > { %v1418_v21 = vpop.permute.xlu1 %1417 }
 0x224   : > { %v1416_v22 = vpop.permute.xlu0 %1415  ;;  %1476 = vst.msk [vmem:[#allocation2 + $0xd6] sm:$0xff] %vm1449_vm15, %v1418_v21 }
 0x225   : > { %1475 = vst.msk [vmem:[#allocation2 + $0xce] sm:$0xfc] %vm1447_vm0, %v1416_v22 }
 0x226   : > { %v2153_v24 = vpop.f32.mrf.mxu0 }
 0x227   : > { %v1693_v7 = vadd.f32 %v2153_v24, %v3314_v23  ;;  %v1033_v8 = vpop.permute.xlu1 %1032  ;;  %v1488_v58 = vld [vmem:[#allocation2 + $0x58] sm:$0xff] }
 0x228   : > { %v1031_v61 = vpop.permute.xlu0 %1030  ;;  %v1487_v62 = vld [vmem:[#allocation2 + $0x50] sm:$0xff]  ;;  %1117 = vst.msk [vmem:[#allocation2 + $0x66] sm:$0xff] %vm1104_vm10, %v1033_v8  ;;  %v1687_v25 = vpop.f32.mrf.mxu0  ;;  %v1897_v24 = vld [vmem:[%s3320_s19 + $0x98] sm:$0xff] }
 0x229   : > { %1116 = vst.msk [vmem:[#allocation2 + $0x5e] sm:$0xfc] %vm1102_vm11, %v1031_v61  ;;  %2166 = vmatprep.mubr.msk.f32.mxu0 %vm414_vm3, %v1487_v62  ;;  %v1847_v26 = vmax.f32 %v1693_v7, 0.0  ;;  %v1688_v36 = vadd.f32 %v3314_v23, %v1687_v25 }
 0x22a   : > { %2167 = vmatmul.mubr.msk.f32.gmra.mxu0 %vm414_vm3, %v1488_v58  ;;  %v2177_v38 = vpop.f32.mrf.mxu1  ;;  %v1896_v58 = vld [vmem:[%s3320_s19 + $0x90] sm:$0xff] }
 0x22b   : > { %v1911_v39 = vadd.f32 %v1879_v60, %v1847_v26  ;;  %v1846_v1 = vmax.f32 %v1688_v36, 0.0  ;;  %v1773_v56 = vadd.f32 %v2177_v38, %v3314_v23  ;;  %v1163_v27 = vpop.permute.xlu1 %1162  ;;  %v1504_v15 = vld [vmem:[#allocation2 + $0xd8] sm:$0xff] }
 0x22c   : > { %v1161_v31 = vpop.permute.xlu0 %1160  ;;  %v1503_v10 = vld [vmem:[#allocation2 + $0xd0] sm:$0xff]  ;;  %1235 = vst.msk [vmem:[#allocation2 + $0x6a] sm:$0x3f] %vm1222_vm12, %v1163_v27  ;;  %v1767_v41 = vpop.f32.mrf.mxu1 }
 0x22d   : > { %1234 = vst.msk [vmem:[#allocation2 + $0x62] sm:$0xff] %vm1220_vm13, %v1161_v31  ;;  %2190 = vmatprep.mubr.msk.f32.mxu1 %vm414_vm3, %v1503_v10  ;;  %v1910_v42 = vadd.f32 %v1878_v37, %v1846_v1  ;;  %v1863_v46 = vmax.f32 %v1773_v56, 0.0  ;;  %v1768_v47 = vadd.f32 %v3314_v23, %v1767_v41 }
 0x22e   : > { %1943 = vst.msk [vmem:[%s3333_s24 + $0x8] sm:$0xff] %vm458_vm1, %v1911_v39  ;;  %2191 = vmatmul.mubr.msk.f32.gmra.mxu1 %vm414_vm3, %v1504_v15 }
 0x22f   : > { %1942 = vst.msk [vmem:[%s3333_s24] sm:$0xff] %vm458_vm1, %v1910_v42  ;;  %v1927_v49 = vadd.f32 %v1895_v33, %v1863_v46  ;;  %v1862_v50 = vmax.f32 %v1768_v47, 0.0  ;;  %v936_v51 = vpop.permute.xlu1 %935  ;;  %v1883_v33 = vld [vmem:[%s3320_s19 + $0x28] sm:$0xff]  ;;  %v1882_v47 = vld [vmem:[%s3320_s19 + $0x20] sm:$0xff] }
 0x230   : > { %v934_v52 = vpop.permute.xlu0 %933  ;;  %1003 = vst.msk [vmem:[#allocation2 + $0xe8] sm:$0xff] %vm973_vm9, %v936_v51 }
 0x231   : > { %1002 = vst.msk [vmem:[#allocation2 + $0xe0] sm:$0xff] %vm973_vm9, %v934_v52  ;;  %v1926_v53 = vadd.f32 %v1894_v48, %v1862_v50  ;;  %v1899_v52 = vld [vmem:[%s3320_s19 + $0xa8] sm:$0xff] }
 0x232   : > { %1959 = vst.msk [vmem:[%s3333_s24 + $0x88] sm:$0xff] %vm458_vm1, %v1927_v49 }
 0x233   : > { %1958 = vst.msk [vmem:[%s3333_s24 + $0x80] sm:$0xff] %vm458_vm1, %v1926_v53  ;;  %v1277_v54 = vpop.permute.xlu1 %1276 }
 0x234   : > { %v1275_v55 = vpop.permute.xlu0 %1274  ;;  %1348 = vst.msk [vmem:[#allocation2 + $0x68] sm:$0xff] %vm1334_vm14, %v1277_v54 }
 0x235   : > { %1347 = vst.msk [vmem:[#allocation2 + $0x60] sm:$0xff] %vm1334_vm14, %v1275_v55 }
 0x237   : > { %v908_v57 = vpop.permute.xlu1 %907 }
 0x238   : > { %v906_v0 = vpop.permute.xlu0 %905  ;;  %989 = vst.msk [vmem:[#allocation2 + $0x78] sm:$0xff] %vm973_vm9, %v908_v57 }
 0x239   : > { %988 = vst.msk [vmem:[#allocation2 + $0x70] sm:$0xff] %vm973_vm9, %v906_v0  ;;  %v1898_v0 = vld [vmem:[%s3320_s19 + $0xa0] sm:$0xff] }
 0x23b   : > { %v1065_v2 = vpop.permute.xlu1 %1064 }
 0x23c   : > { %v1063_v32 = vpop.permute.xlu0 %1062  ;;  %1133 = vst.msk [vmem:[#allocation2 + $0xe6] sm:$0xff] %vm1104_vm10, %v1065_v2 }
 0x23d   : > { %1132 = vst.msk [vmem:[#allocation2 + $0xde] sm:$0xfc] %vm1102_vm11, %v1063_v32 }
 0x23f   : > { %v1390_v34 = vpop.permute.xlu1 %1389 }
 0x240   : > { %v1388_v40 = vpop.permute.xlu0 %1387  ;;  %1462 = vst.msk [vmem:[#allocation2 + $0x66] sm:$0xff] %vm1449_vm15, %v1390_v34 }
 0x241   : > { %1461 = vst.msk [vmem:[#allocation2 + $0x5e] sm:$0xfc] %vm1447_vm0, %v1388_v40 }
 0x243   : > { %v1037_v63 = vpop.permute.xlu1 %1036  ;;  %v1506_v43 = vld [vmem:[#allocation2 + $0xe8] sm:$0xff] }
 0x244   : > { %v1035_v6 = vpop.permute.xlu0 %1034  ;;  %v1505_v45 = vld [vmem:[#allocation2 + $0xe0] sm:$0xff]  ;;  %1119 = vst.msk [vmem:[#allocation2 + $0x76] sm:$0xff] %vm1104_vm10, %v1037_v63 }
 0x245   : > { %1118 = vst.msk [vmem:[#allocation2 + $0x6e] sm:$0xfc] %vm1102_vm11, %v1035_v6  ;;  %2193 = vmatprep.mubr.msk.f32.mxu1 %vm414_vm3, %v1505_v45  ;;  %v1885_v6 = vld [vmem:[%s3320_s19 + $0x38] sm:$0xff] }
 0x246   : > { %2194 = vmatmul.mubr.msk.f32.gmra.mxu1 %vm414_vm3, %v1506_v43 }
 0x247   : > { %v810_v44 = vpop.permute.xlu1 %809  ;;  %v1490_v4 = vld [vmem:[#allocation2 + $0x68] sm:$0xff] }
 0x248   : > { %v808_v3 = vpop.permute.xlu0 %807  ;;  %v1489_v59 = vld [vmem:[#allocation2 + $0x60] sm:$0xff]  ;;  %876 = vst.msk [vmem:[#allocation2 + $0xfa] sm:$0x3f] %vm845_vm7, %v810_v44 }
 0x249   : > { %875 = vst.msk [vmem:[#allocation2 + $0xf2] sm:$0xff] %vm843_vm8, %v808_v3  ;;  %2169 = vmatprep.mubr.msk.f32.mxu0 %vm414_vm3, %v1489_v59  ;;  %v1884_v3 = vld [vmem:[%s3320_s19 + $0x30] sm:$0xff] }
 0x24a   : > { %2170 = vmatmul.mubr.msk.f32.gmra.mxu0 %vm414_vm3, %v1490_v4 }
 0x24b   : > { %v1167_v5 = vpop.permute.xlu1 %1166 }
 0x24c   : > { %v1165_v28 = vpop.permute.xlu0 %1164  ;;  %1237 = vst.msk [vmem:[#allocation2 + $0x7a] sm:$0x3f] %vm1222_vm12, %v1167_v5 }
 0x24d   : > { %1236 = vst.msk [vmem:[#allocation2 + $0x72] sm:$0xff] %vm1220_vm13, %v1165_v28 }
 0x24e   : > { %v2156_v30 = vpop.f32.mrf.mxu0 }
 0x24f   : > { %v1703_v9 = vadd.f32 %v2156_v30, %v3314_v23  ;;  %v940_v11 = vpop.permute.xlu1 %939  ;;  %v1901_v30 = vld [vmem:[%s3320_s19 + $0xb8] sm:$0xff] }
 0x250   : > { %v938_v12 = vpop.permute.xlu0 %937  ;;  %1005 = vst.msk [vmem:[#allocation2 + $0xf8] sm:$0xff] %vm973_vm9, %v940_v11  ;;  %v1697_v14 = vpop.f32.mrf.mxu0 }
 0x251   : > { %1004 = vst.msk [vmem:[#allocation2 + $0xf0] sm:$0xff] %vm973_vm9, %v938_v12  ;;  %v1849_v16 = vmax.f32 %v1703_v9, 0.0  ;;  %v1698_v17 = vadd.f32 %v3314_v23, %v1697_v14  ;;  %v1900_v14 = vld [vmem:[%s3320_s19 + $0xb0] sm:$0xff] }
 0x252   : > { %v2180_v35 = vpop.f32.mrf.mxu1 }
 0x253   : > { %v1913_v18 = vadd.f32 %v1881_v13, %v1849_v16  ;;  %v1848_v19 = vmax.f32 %v1698_v17, 0.0  ;;  %v1783_v20 = vadd.f32 %v2180_v35, %v3314_v23  ;;  %v1281_v21 = vpop.permute.xlu1 %1280 }
 0x254   : > { %v1279_v22 = vpop.permute.xlu0 %1278  ;;  %1350 = vst.msk [vmem:[#allocation2 + $0x78] sm:$0xff] %vm1334_vm14, %v1281_v21  ;;  %v1777_v7 = vpop.f32.mrf.mxu1 }
 0x255   : > { %1349 = vst.msk [vmem:[#allocation2 + $0x70] sm:$0xff] %vm1334_vm14, %v1279_v22  ;;  %v1912_v8 = vadd.f32 %v1880_v29, %v1848_v19  ;;  %v1865_v61 = vmax.f32 %v1783_v20, 0.0  ;;  %v1778_v62 = vadd.f32 %v3314_v23, %v1777_v7  ;;  %v1887_v19 = vld [vmem:[%s3320_s19 + $0x48] sm:$0xff] }
 0x256   : > { %1945 = vst.msk [vmem:[%s3333_s24 + $0x18] sm:$0xff] %vm458_vm1, %v1913_v18 }
 0x257   : > { %1944 = vst.msk [vmem:[%s3333_s24 + $0x10] sm:$0xff] %vm458_vm1, %v1912_v8  ;;  %v1929_v60 = vadd.f32 %v1897_v24, %v1865_v61  ;;  %v1864_v25 = vmax.f32 %v1778_v62, 0.0  ;;  %v1069_v26 = vpop.permute.xlu1 %1068  ;;  %v1886_v24 = vld [vmem:[%s3320_s19 + $0x40] sm:$0xff] }
 0x258   : > { %v1067_v36 = vpop.permute.xlu0 %1066  ;;  %1135 = vst.msk [vmem:[#allocation2 + $0xf6] sm:$0xff] %vm1104_vm10, %v1069_v26 }
 0x259   : > { %1134 = vst.msk [vmem:[#allocation2 + $0xee] sm:$0xfc] %vm1102_vm11, %v1067_v36  ;;  %v1928_v37 = vadd.f32 %v1896_v58, %v1864_v25  ;;  %v1903_v58 = vld [vmem:[%s3320_s19 + $0xc8] sm:$0xff] }
 0x25a   : > { %1961 = vst.msk [vmem:[%s3333_s24 + $0x98] sm:$0xff] %vm458_vm1, %v1929_v60 }
 0x25b   : > { %1960 = vst.msk [vmem:[%s3333_s24 + $0x90] sm:$0xff] %vm458_vm1, %v1928_v37  ;;  %v1394_v38 = vpop.permute.xlu1 %1393  ;;  %v1902_v37 = vld [vmem:[%s3320_s19 + $0xc0] sm:$0xff] }
 0x25c   : > { %v1392_v39 = vpop.permute.xlu0 %1391  ;;  %1464 = vst.msk [vmem:[#allocation2 + $0x76] sm:$0xff] %vm1449_vm15, %v1394_v38 }
 0x25d   : > { %1463 = vst.msk [vmem:[#allocation2 + $0x6e] sm:$0xfc] %vm1447_vm0, %v1392_v39 }
 0x25f   : > { %v1508_v56 = vld [vmem:[#allocation2 + $0xf8] sm:$0xff] }
 0x260   : > { %v1507_v1 = vld [vmem:[#allocation2 + $0xf0] sm:$0xff] }
 0x261   : > { %2196 = vmatprep.mubr.msk.f32.mxu1 %vm414_vm3, %v1507_v1 }
 0x262   : > { %2197 = vmatmul.mubr.msk.f32.gmra.mxu1 %vm414_vm3, %v1508_v56 }
 0x263   : > { %v1492_v31 = vld [vmem:[#allocation2 + $0x78] sm:$0xff] }
 0x264   : > { %v1491_v27 = vld [vmem:[#allocation2 + $0x70] sm:$0xff] }
 0x265   : > { %2172 = vmatprep.mubr.msk.f32.mxu0 %vm414_vm3, %v1491_v27 }
 0x266   : > { %2173 = vmatmul.mubr.msk.f32.gmra.mxu0 %vm414_vm3, %v1492_v31  ;;  %v1889_v31 = vld [vmem:[%s3320_s19 + $0x58] sm:$0xff] }
 0x276   : > { %v2159_v10 = vpop.f32.mrf.mxu0 }
 0x277   : > { %v1713_v15 = vadd.f32 %v2159_v10, %v3314_v23 }
 0x278   : > { %v1707_v41 = vpop.f32.mrf.mxu0 }
 0x279   : > { %v1851_v42 = vmax.f32 %v1713_v15, 0.0  ;;  %v1708_v46 = vadd.f32 %v3314_v23, %v1707_v41  ;;  %v1888_v41 = vld [vmem:[%s3320_s19 + $0x50] sm:$0xff] }
 0x27a   : > { %v2183_v48 = vpop.f32.mrf.mxu1 }
 0x27b   : > { %v1915_v49 = vadd.f32 %v1883_v33, %v1851_v42  ;;  %v1850_v50 = vmax.f32 %v1708_v46, 0.0  ;;  %v1793_v51 = vadd.f32 %v2183_v48, %v3314_v23 }
 0x27c   : > { %v1787_v53 = vpop.f32.mrf.mxu1 }
 0x27d   : > { %1947 = vst.msk [vmem:[%s3333_s24 + $0x28] sm:$0xff] %vm458_vm1, %v1915_v49  ;;  %v1914_v54 = vadd.f32 %v1882_v47, %v1850_v50  ;;  %v1867_v55 = vmax.f32 %v1793_v51, 0.0  ;;  %v1788_v57 = vadd.f32 %v3314_v23, %v1787_v53  ;;  %v1905_v49 = vld [vmem:[%s3320_s19 + $0xd8] sm:$0xff] }
 0x27f   : > { %1946 = vst.msk [vmem:[%s3333_s24 + $0x20] sm:$0xff] %vm458_vm1, %v1914_v54  ;;  %v1931_v2 = vadd.f32 %v1899_v52, %v1867_v55  ;;  %v1866_v32 = vmax.f32 %v1788_v57, 0.0  ;;  %v1904_v54 = vld [vmem:[%s3320_s19 + $0xd0] sm:$0xff] }
 0x281   : > { %1963 = vst.msk [vmem:[%s3333_s24 + $0xa8] sm:$0xff] %vm458_vm1, %v1931_v2  ;;  %v1930_v34 = vadd.f32 %v1898_v0, %v1866_v32 }
 0x283   : > { %1962 = vst.msk [vmem:[%s3333_s24 + $0xa0] sm:$0xff] %vm458_vm1, %v1930_v34  ;;  %v1907_v34 = vld [vmem:[%s3320_s19 + $0xe8] sm:$0xff] }
 0x29e   : > { %v2162_v40 = vpop.f32.mrf.mxu0 }
 0x29f   : > { %v1723_v63 = vadd.f32 %v2162_v40, %v3314_v23 }
 0x2a0   : > { %v1717_v45 = vpop.f32.mrf.mxu0 }
 0x2a1   : > { %v1853_v43 = vmax.f32 %v1723_v63, 0.0  ;;  %v1718_v44 = vadd.f32 %v3314_v23, %v1717_v45  ;;  %v1906_v45 = vld [vmem:[%s3320_s19 + $0xe0] sm:$0xff] }
 0x2a2   : > { %v2186_v59 = vpop.f32.mrf.mxu1 }
 0x2a3   : > { %v1917_v4 = vadd.f32 %v1885_v6, %v1853_v43  ;;  %v1852_v5 = vmax.f32 %v1718_v44, 0.0  ;;  %v1803_v28 = vadd.f32 %v2186_v59, %v3314_v23 }
 0x2a4   : > { %v1797_v9 = vpop.f32.mrf.mxu1 }
 0x2a5   : > { %1949 = vst.msk [vmem:[%s3333_s24 + $0x38] sm:$0xff] %vm458_vm1, %v1917_v4  ;;  %v1916_v11 = vadd.f32 %v1884_v3, %v1852_v5  ;;  %v1869_v12 = vmax.f32 %v1803_v28, 0.0  ;;  %v1798_v13 = vadd.f32 %v3314_v23, %v1797_v9  ;;  %v1891_v4 = vld [vmem:[%s3320_s19 + $0x68] sm:$0xff] }
 0x2a7   : > { %1948 = vst.msk [vmem:[%s3333_s24 + $0x30] sm:$0xff] %vm458_vm1, %v1916_v11  ;;  %v1933_v16 = vadd.f32 %v1901_v30, %v1869_v12  ;;  %v1868_v17 = vmax.f32 %v1798_v13, 0.0  ;;  %v1890_v11 = vld [vmem:[%s3320_s19 + $0x60] sm:$0xff] }
 0x2a9   : > { %1965 = vst.msk [vmem:[%s3333_s24 + $0xb8] sm:$0xff] %vm458_vm1, %v1933_v16  ;;  %v1932_v29 = vadd.f32 %v1900_v14, %v1868_v17 }
 0x2ab   : > { %1964 = vst.msk [vmem:[%s3333_s24 + $0xb0] sm:$0xff] %vm458_vm1, %v1932_v29  ;;  %v1909_v29 = vld [vmem:[%s3320_s19 + $0xf8] sm:$0xff] }
 0x2c6   : > { %v2165_v35 = vpop.f32.mrf.mxu0 }
 0x2c7   : > { %v1733_v18 = vadd.f32 %v2165_v35, %v3314_v23 }
 0x2c8   : > { %v1727_v20 = vpop.f32.mrf.mxu0 }
 0x2c9   : > { %v1855_v21 = vmax.f32 %v1733_v18, 0.0  ;;  %v1728_v22 = vadd.f32 %v3314_v23, %v1727_v20  ;;  %v1908_v20 = vld [vmem:[%s3320_s19 + $0xf0] sm:$0xff] }
 0x2ca   : > { %v2189_v7 = vpop.f32.mrf.mxu1 }
 0x2cb   : > { %v1919_v8 = vadd.f32 %v1887_v19, %v1855_v21  ;;  %v1854_v61 = vmax.f32 %v1728_v22, 0.0  ;;  %v1813_v62 = vadd.f32 %v2189_v7, %v3314_v23 }
 0x2cc   : > { %v1807_v60 = vpop.f32.mrf.mxu1 }
 0x2cd   : > { %1951 = vst.msk [vmem:[%s3333_s24 + $0x48] sm:$0xff] %vm458_vm1, %v1919_v8  ;;  %v1918_v25 = vadd.f32 %v1886_v24, %v1854_v61  ;;  %v1871_v26 = vmax.f32 %v1813_v62, 0.0  ;;  %v1808_v36 = vadd.f32 %v3314_v23, %v1807_v60  ;;  %v1893_v8 = vld [vmem:[%s3320_s19 + $0x78] sm:$0xff] }
 0x2cf   : > { %1950 = vst.msk [vmem:[%s3333_s24 + $0x40] sm:$0xff] %vm458_vm1, %v1918_v25  ;;  %v1935_v38 = vadd.f32 %v1903_v58, %v1871_v26  ;;  %v1870_v39 = vmax.f32 %v1808_v36, 0.0  ;;  %v1892_v25 = vld [vmem:[%s3320_s19 + $0x70] sm:$0xff] }
 0x2d1   : > { %1967 = vst.msk [vmem:[%s3333_s24 + $0xc8] sm:$0xff] %vm458_vm1, %v1935_v38  ;;  %v1934_v1 = vadd.f32 %v1902_v37, %v1870_v39 }
 0x2d3   : > { %1966 = vst.msk [vmem:[%s3333_s24 + $0xc0] sm:$0xff] %vm458_vm1, %v1934_v1 }
 0x2ea   : > { %v2168_v56 = vpop.f32.mrf.mxu0 }
 0x2eb   : > { %v1743_v27 = vadd.f32 %v2168_v56, %v3314_v23 }
 0x2ec   : > { %v1737_v10 = vpop.f32.mrf.mxu0 }
 0x2ed   : > { %v1857_v15 = vmax.f32 %v1743_v27, 0.0  ;;  %v1738_v33 = vadd.f32 %v3314_v23, %v1737_v10 }
 0x2ee   : > { %v2192_v42 = vpop.f32.mrf.mxu1 }
 0x2ef   : > { %v1921_v46 = vadd.f32 %v1889_v31, %v1857_v15  ;;  %v1856_v47 = vmax.f32 %v1738_v33, 0.0  ;;  %v1823_v48 = vadd.f32 %v2192_v42, %v3314_v23 }
 0x2f0   : > { %v1817_v50 = vpop.f32.mrf.mxu1 }
 0x2f1   : > { %1953 = vst.msk [vmem:[%s3333_s24 + $0x58] sm:$0xff] %vm458_vm1, %v1921_v46  ;;  %v1920_v51 = vadd.f32 %v1888_v41, %v1856_v47  ;;  %v1873_v52 = vmax.f32 %v1823_v48, 0.0  ;;  %v1818_v53 = vadd.f32 %v3314_v23, %v1817_v50 }
 0x2f3   : > { %1952 = vst.msk [vmem:[%s3333_s24 + $0x50] sm:$0xff] %vm458_vm1, %v1920_v51  ;;  %v1937_v55 = vadd.f32 %v1905_v49, %v1873_v52  ;;  %v1872_v57 = vmax.f32 %v1818_v53, 0.0 }
 0x2f5   : > { %1969 = vst.msk [vmem:[%s3333_s24 + $0xd8] sm:$0xff] %vm458_vm1, %v1937_v55  ;;  %v1936_v0 = vadd.f32 %v1904_v54, %v1872_v57 }
 0x2f7   : > { %1968 = vst.msk [vmem:[%s3333_s24 + $0xd0] sm:$0xff] %vm458_vm1, %v1936_v0 }
 0x306   : > { %v2195_v2 = vpop.f32.mrf.mxu1 }
 0x307   : > { %v1833_v32 = vadd.f32 %v2195_v2, %v3314_v23 }
 0x308   : > { %v1827_v40 = vpop.f32.mrf.mxu1 }
 0x309   : > { %v1875_v63 = vmax.f32 %v1833_v32, 0.0  ;;  %v1828_v6 = vadd.f32 %v3314_v23, %v1827_v40 }
 0x30a   : > { %v2171_v43 = vpop.f32.mrf.mxu0 }
 0x30b   : > { %v1939_v44 = vadd.f32 %v1907_v34, %v1875_v63  ;;  %v1874_v3 = vmax.f32 %v1828_v6, 0.0  ;;  %v1753_v59 = vadd.f32 %v2171_v43, %v3314_v23 }
 0x30c   : > { %v1747_v5 = vpop.f32.mrf.mxu0 }
 0x30d   : > { %1971 = vst.msk [vmem:[%s3333_s24 + $0xe8] sm:$0xff] %vm458_vm1, %v1939_v44  ;;  %v1938_v28 = vadd.f32 %v1906_v45, %v1874_v3  ;;  %v1859_v30 = vmax.f32 %v1753_v59, 0.0  ;;  %v1748_v9 = vadd.f32 %v3314_v23, %v1747_v5 }
 0x30f   : > { %1970 = vst.msk [vmem:[%s3333_s24 + $0xe0] sm:$0xff] %vm458_vm1, %v1938_v28  ;;  %v1923_v12 = vadd.f32 %v1891_v4, %v1859_v30  ;;  %v1858_v13 = vmax.f32 %v1748_v9, 0.0 }
 0x311   : > { %1955 = vst.msk [vmem:[%s3333_s24 + $0x68] sm:$0xff] %vm458_vm1, %v1923_v12  ;;  %v1922_v14 = vadd.f32 %v1890_v11, %v1858_v13 }
 0x313   : > { %1954 = vst.msk [vmem:[%s3333_s24 + $0x60] sm:$0xff] %vm458_vm1, %v1922_v14 }
 0x322   : > { %v2198_v16 = vpop.f32.mrf.mxu1 }
 0x323   : > { %v1843_v17 = vadd.f32 %v2198_v16, %v3314_v23 }
 0x324   : > { %v1837_v35 = vpop.f32.mrf.mxu1 }
 0x325   : > { %v1877_v18 = vmax.f32 %v1843_v17, 0.0  ;;  %v1838_v19 = vadd.f32 %v3314_v23, %v1837_v35 }
 0x326   : > { %v2174_v21 = vpop.f32.mrf.mxu0 }
 0x327   : > { %v1941_v22 = vadd.f32 %v1909_v29, %v1877_v18  ;;  %v1876_v24 = vmax.f32 %v1838_v19, 0.0  ;;  %v1763_v7 = vadd.f32 %v2174_v21, %v3314_v23 }
 0x328   : > { %v1757_v61 = vpop.f32.mrf.mxu0 }
 0x329   : > { %1973 = vst.msk [vmem:[%s3333_s24 + $0xf8] sm:$0xff] %vm458_vm1, %v1941_v22  ;;  %v1940_v62 = vadd.f32 %v1908_v20, %v1876_v24  ;;  %v1861_v58 = vmax.f32 %v1763_v7, 0.0  ;;  %v1758_v60 = vadd.f32 %v3314_v23, %v1757_v61 }
 0x32b   : > { %1972 = vst.msk [vmem:[%s3333_s24 + $0xf0] sm:$0xff] %vm458_vm1, %v1940_v62  ;;  %v1925_v26 = vadd.f32 %v1893_v8, %v1861_v58  ;;  %v1860_v36 = vmax.f32 %v1758_v60, 0.0 }
 0x32d   : > { %1957 = vst.msk [vmem:[%s3333_s24 + $0x78] sm:$0xff] %vm458_vm1, %v1925_v26  ;;  %v1924_v37 = vadd.f32 %v1892_v25, %v1860_v36 }
 0x32f   : > { %1956 = vst.msk [vmem:[%s3333_s24 + $0x70] sm:$0xff] %vm458_vm1, %v1924_v37 }
 0x330 PF: > { %s16_s21 = sadd.s32 1, %s2242_s21  }
 0x331   : > { %p13_p4 = scmp.ge.s32.totalorder %s16_s21, 4  }
 0x333   :  { %15 = sbr.rel (!%p13_p4) target bundleno = 1 (0x1), region = 79 }

// kernel: resblock_cbrdr.2
= control target key start
LH: loop header
LB: loop body
LE: loop exit
PB: predicated region body
PF: predicated region fallthrough
CT: control target
= control target key end

     0   :  { %s2782_s15 = smov 0   ;;  %s3944_s0 = inlined_call_operand.vmem [shape: f32[2,16,16,8], index: 0, kind: input, shape index: {}]   ;;  %s3945_s1 = inlined_call_operand.vmem [shape: f32[72,8], index: 1, kind: input, shape index: {}]   ;;  %s3946_s2 = inlined_call_operand.vmem [shape: f32[1,8], index: 2, kind: input, shape index: {}]   ;;  %s3947_s3 = inlined_call_operand.vmem [shape: f32[2,16,16,8], index: 3, kind: output, shape index: {0}]   ;;  %s3948_s4 = inlined_call_operand.vmem [shape: f32[2,2,8], index: 4, kind: output, shape index: {1}]  }
   0x1 LB: > { %s2461_s16 = sadd.s32 4294967295, %s2746_s15   ;;  %p2465_p0 = scmp.ge.s32.totalorder %s2746_s15, 1  ;;  %s2746_s15 = sphi %s2782_s15, %s15_s15  }
   0x2   : > { %p165_p1 = scmp.lt.s32.totalorder %s2746_s15, 3 }
   0x4   : > { %p166_p2 = pnand %p2465_p0, %p165_p1 }
   0x5   : > { %p2792_p3 = scmp.lt.s32.totalorder (!%p166_p2), %s2461_s16, 1  ;;  %s2749_s22 = smov (!%p166_p2), 8  }
   0x6   : > { %169 = sbr.rel (%p166_p2) target bundleno = 845 (0x34d), region = 32  ;;  %s2750_s23 = smov (!%p166_p2), 16  }
   0x7   : > { %s2751_s24 = smov (!%p166_p2), 24   ;;  %s2752_s25 = smov (!%p166_p2), 32  }
   0x8   : > { %s2753_s26 = smov (!%p166_p2), 40   ;;  %s2754_s5 = smov (!%p166_p2), 48  }
   0x9   : > { %s2755_s10 = smov (!%p166_p2), 56   ;;  %s2756_s20 = smov (!%p166_p2), 64  }
   0xb   : > { %vm215_vm0 = vcmask 581632   ;;  %v2748_v0 = vmov 0.0   ;;  %s3951_s16 = smov (!%p2792_p3, %s2461_s16), 1  ;;  %vm279_vm1 = vcmask 64512   ;;  %vm281_vm2 = vcmask 63488  }
   0xc   : > { %218 = vst.msk [vmem:[#allocation2 + $0x20] sm:$0x1] %vm215_vm0, %v2748_v0  ;;  %217 = vst.msk [vmem:[#allocation2 + $0x10] sm:$0x1] %vm215_vm0, %v2748_v0  ;;  %s2596_s18 = sshll.u32 %s3951_s16, 8  ;;  %vm209_vm3 = vcmask 588800  }
   0xd   : > { %219 = vst.msk [vmem:[#allocation2 + $0x30] sm:$0x1] %vm215_vm0, %v2748_v0  ;;  %220 = vst.msk [vmem:[#allocation2 + $0x40] sm:$0x1] %vm215_vm0, %v2748_v0  ;;  %s2864_s21 = scalar_lea.vmem %s3944_s0, %s2596_s18  ;;  %vm461_vm4 = vcmask 130112   ;;  %vm644_vm5 = vcmask 194688   ;;  %s3701_s6 = scalar_lea.vmem %s3947_s3, %s2596_s18 }
   0xe   : > { %221 = vst.msk [vmem:[#allocation2 + $0x50] sm:$0x1] %vm215_vm0, %v2748_v0  ;;  %222 = vst.msk [vmem:[#allocation2 + $0x60] sm:$0x1] %vm215_vm0, %v2748_v0  ;;  %v2867_v1 = vld [vmem:[%s2864_s21 + $0x10] sm:$0xff]  ;;  %v2870_v2 = vld [vmem:[%s2864_s21] sm:$0xff] }
   0xf   : > { %223 = vst.msk [vmem:[#allocation2 + $0x70] sm:$0x1] %vm215_vm0, %v2748_v0  ;;  %224 = vst.msk [vmem:[#allocation2 + $0x80] sm:$0x1] %vm215_vm0, %v2748_v0  ;;  %375 = vrot.lane.b32.xlu1 %v2867_v1, %s2749_s22  ;;  %371 = vrot.lane.b32.xlu0 %v2870_v2, %s2749_s22  ;;  %v2877_v3 = vld [vmem:[%s2864_s21 + $0x18] sm:$0xff]  ;;  %v2884_v4 = vld [vmem:[%s2864_s21 + $0x8] sm:$0xff] }
  0x10   : > { %225 = vst.msk [vmem:[#allocation2 + $0x90] sm:$0x1] %vm215_vm0, %v2748_v0  ;;  %226 = vst.msk [vmem:[#allocation2 + $0xa0] sm:$0x1] %vm215_vm0, %v2748_v0  ;;  %v2887_v5 = vld [vmem:[%s2864_s21 + $0x20] sm:$0xff]  ;;  %v2890_v6 = vld [vmem:[%s2864_s21 + $0x30] sm:$0xff] }
  0x11   : > { %227 = vst.msk [vmem:[#allocation2 + $0xb0] sm:$0x1] %vm215_vm0, %v2748_v0  ;;  %228 = vst.msk [vmem:[#allocation2 + $0xc0] sm:$0x1] %vm215_vm0, %v2748_v0  ;;  %v2893_v7 = vld [vmem:[%s2864_s21 + $0x40] sm:$0xff]  ;;  %v2900_v8 = vld [vmem:[%s2864_s21 + $0x50] sm:$0xff] }
  0x12   : > { %229 = vst.msk [vmem:[#allocation2 + $0xd0] sm:$0x1] %vm215_vm0, %v2748_v0  ;;  %230 = vst.msk [vmem:[#allocation2 + $0xe0] sm:$0x1] %vm215_vm0, %v2748_v0  ;;  %v2903_v9 = vld [vmem:[%s2864_s21 + $0x60] sm:$0xff]  ;;  %v325_v10 = vld [vmem:[%s2864_s21 + $0x70] sm:$0xff] }
  0x13   : > { %233 = vst.msk [vmem:[#allocation2 + $0x1f] sm:$0x1] %vm215_vm0, %v2748_v0  ;;  %234 = vst.msk [vmem:[#allocation2 + $0x2f] sm:$0x1] %vm215_vm0, %v2748_v0  ;;  %377 = vrot.lane.b32.xlu1 %v2877_v3, %s2749_s22  ;;  %373 = vrot.lane.b32.xlu0 %v2884_v4, %s2749_s22  ;;  %v2917_v11 = vld [vmem:[%s2864_s21 + $0x28] sm:$0xff]  ;;  %v327_v12 = vld [vmem:[%s2864_s21 + $0x80] sm:$0xff] }
  0x14   : > { %235 = vst.msk [vmem:[#allocation2 + $0x3f] sm:$0x1] %vm215_vm0, %v2748_v0  ;;  %236 = vst.msk [vmem:[#allocation2 + $0x4f] sm:$0x1] %vm215_vm0, %v2748_v0  ;;  %v329_v13 = vld [vmem:[%s2864_s21 + $0x90] sm:$0xff]  ;;  %v2923_v14 = vld [vmem:[%s2864_s21 + $0xa0] sm:$0xff] }
  0x15   : > { %237 = vst.msk [vmem:[#allocation2 + $0x5f] sm:$0x1] %vm215_vm0, %v2748_v0  ;;  %238 = vst.msk [vmem:[#allocation2 + $0x6f] sm:$0x1] %vm215_vm0, %v2748_v0  ;;  %v2927_v15 = vld [vmem:[%s2864_s21 + $0xb0] sm:$0xff]  ;;  %v2937_v16 = vld [vmem:[%s2864_s21 + $0xc0] sm:$0xff] }
  0x16   : > { %239 = vst.msk [vmem:[#allocation2 + $0x7f] sm:$0x1] %vm215_vm0, %v2748_v0  ;;  %240 = vst.msk [vmem:[#allocation2 + $0x8f] sm:$0x1] %vm215_vm0, %v2748_v0  ;;  %v2942_v17 = vld [vmem:[%s2864_s21 + $0x38] sm:$0xff]  ;;  %v2945_v18 = vld [vmem:[%s2864_s21 + $0xd0] sm:$0xff] }
  0x17   : > { %241 = vst.msk [vmem:[#allocation2 + $0x9f] sm:$0x1] %vm215_vm0, %v2748_v0  ;;  %242 = vst.msk [vmem:[#allocation2 + $0xaf] sm:$0x1] %vm215_vm0, %v2748_v0  ;;  %381 = vrot.lane.b32.xlu1 %v2917_v11, %s2749_s22  ;;  %379 = vrot.lane.b32.xlu0 %v2887_v5, %s2749_s22  ;;  %v2956_v19 = vld [vmem:[%s2864_s21 + $0x48] sm:$0xff]  ;;  %v2963_v20 = vld [vmem:[%s2864_s21 + $0x58] sm:$0xff] }
  0x18   : > { %243 = vst.msk [vmem:[#allocation2 + $0xbf] sm:$0x1] %vm215_vm0, %v2748_v0  ;;  %244 = vst.msk [vmem:[#allocation2 + $0xcf] sm:$0x1] %vm215_vm0, %v2748_v0  ;;  %v2970_v21 = vld [vmem:[%s2864_s21 + $0x68] sm:$0xff]  ;;  %v326_v28 = vld [vmem:[%s2864_s21 + $0x78] sm:$0xff] }
  0x19   : > { %245 = vst.msk [vmem:[#allocation2 + $0xdf] sm:$0x1] %vm215_vm0, %v2748_v0  ;;  %246 = vst.msk [vmem:[#allocation2 + $0xef] sm:$0x1] %vm215_vm0, %v2748_v0  ;;  %v251_v22 = vld [vmem:[%s2864_s21 + $0x18] sm:$0x7f] }
  0x1a   : > { %283 = vst.msk [vmem:[#allocation2 + $0x21] sm:$0xff] %vm279_vm1, %v2867_v1  ;;  %280 = vst.msk [vmem:[#allocation2 + $0x11] sm:$0xff] %vm279_vm1, %v2870_v2  ;;  %v249_v23 = vld [vmem:[%s2864_s21 + $0x8] sm:$0x7f]  ;;  %v255_v25 = vld [vmem:[%s2864_s21 + $0x38] sm:$0x7f] }
  0x1b   : > { %285 = vst.msk [vmem:[#allocation2 + $0x31] sm:$0xff] %vm279_vm1, %v2887_v5  ;;  %287 = vst.msk [vmem:[#allocation2 + $0x41] sm:$0xff] %vm279_vm1, %v2890_v6  ;;  %385 = vrot.lane.b32.xlu1 %v2942_v17, %s2749_s22  ;;  %383 = vrot.lane.b32.xlu0 %v2890_v6, %s2749_s22  ;;  %v253_v24 = vld [vmem:[%s2864_s21 + $0x28] sm:$0x7f]  ;;  %v259_v27 = vld [vmem:[%s2864_s21 + $0x58] sm:$0x7f] }
  0x1c   : > { %289 = vst.msk [vmem:[#allocation2 + $0x51] sm:$0xff] %vm279_vm1, %v2893_v7  ;;  %291 = vst.msk [vmem:[#allocation2 + $0x61] sm:$0xff] %vm279_vm1, %v2900_v8  ;;  %v257_v26 = vld [vmem:[%s2864_s21 + $0x48] sm:$0x7f]  ;;  %v263_v30 = vld [vmem:[%s2864_s21 + $0x78] sm:$0x7f] }
  0x1d   : > { %293 = vst.msk [vmem:[#allocation2 + $0x71] sm:$0xff] %vm279_vm1, %v2903_v9  ;;  %295 = vst.msk [vmem:[#allocation2 + $0x81] sm:$0xff] %vm279_vm1, %v325_v10  ;;  %v261_v29 = vld [vmem:[%s2864_s21 + $0x68] sm:$0x7f]  ;;  %v267_v32 = vld [vmem:[%s2864_s21 + $0x98] sm:$0x7f] }
  0x1e   : > { %297 = vst.msk [vmem:[#allocation2 + $0x91] sm:$0xff] %vm279_vm1, %v327_v12  ;;  %299 = vst.msk [vmem:[#allocation2 + $0xa1] sm:$0xff] %vm279_vm1, %v329_v13  ;;  %v265_v31 = vld [vmem:[%s2864_s21 + $0x88] sm:$0x7f]  ;;  %v271_v35 = vld [vmem:[%s2864_s21 + $0xb8] sm:$0x7f] }
  0x1f   : > { %301 = vst.msk [vmem:[#allocation2 + $0xb1] sm:$0xff] %vm279_vm1, %v2923_v14  ;;  %303 = vst.msk [vmem:[#allocation2 + $0xc1] sm:$0xff] %vm279_vm1, %v2927_v15  ;;  %389 = vrot.lane.b32.xlu1 %v2956_v19, %s2749_s22  ;;  %387 = vrot.lane.b32.xlu0 %v2893_v7, %s2749_s22  ;;  %v269_v33 = vld [vmem:[%s2864_s21 + $0xa8] sm:$0x7f]  ;;  %v330_v36 = vld [vmem:[%s2864_s21 + $0x98] sm:$0xff]  ;;  %vm642_vm6 = vcmask 195712  }
  0x20   : > { %305 = vst.msk [vmem:[#allocation2 + $0xd1] sm:$0xff] %vm279_vm1, %v2937_v16  ;;  %307 = vst.msk [vmem:[#allocation2 + $0xe1] sm:$0xff] %vm279_vm1, %v2945_v18  ;;  %v328_v34 = vld [vmem:[%s2864_s21 + $0x88] sm:$0xff]  ;;  %v275_v39 = vld [vmem:[%s2864_s21 + $0xd8] sm:$0x7f]  ;;  %vm836_vm7 = vcmask 260288  }
  0x21   : > { %284 = vst.msk [vmem:[#allocation2 + $0x29] sm:$0x7f] %vm281_vm2, %v251_v22  ;;  %282 = vst.msk [vmem:[#allocation2 + $0x19] sm:$0x7f] %vm281_vm2, %v249_v23  ;;  %v273_v37 = vld [vmem:[%s2864_s21 + $0xc8] sm:$0x7f] }
  0x22   : > { %286 = vst.msk [vmem:[#allocation2 + $0x39] sm:$0x7f] %vm281_vm2, %v253_v24  ;;  %288 = vst.msk [vmem:[#allocation2 + $0x49] sm:$0x7f] %vm281_vm2, %v255_v25  ;;  %v332_v38 = vld [vmem:[%s2864_s21 + $0xa8] sm:$0xff]  ;;  %v334_v40 = vld [vmem:[%s2864_s21 + $0xb8] sm:$0xff] }
  0x23   : > { %393 = vrot.lane.b32.xlu1 %v2963_v20, %s2749_s22  ;;  %391 = vrot.lane.b32.xlu0 %v2900_v8, %s2749_s22  ;;  %290 = vst.msk [vmem:[#allocation2 + $0x59] sm:$0x7f] %vm281_vm2, %v257_v26  ;;  %292 = vst.msk [vmem:[#allocation2 + $0x69] sm:$0x7f] %vm281_vm2, %v259_v27  ;;  %v339_v41 = vld [vmem:[%s2864_s21 + $0xe0] sm:$0xff]  ;;  %v336_v43 = vld [vmem:[%s2864_s21 + $0xc8] sm:$0xff] }
  0x24   : > { %294 = vst.msk [vmem:[#allocation2 + $0x79] sm:$0x7f] %vm281_vm2, %v261_v29  ;;  %296 = vst.msk [vmem:[#allocation2 + $0x89] sm:$0x7f] %vm281_vm2, %v263_v30  ;;  %v277_v42 = vld [vmem:[%s2864_s21 + $0xe8] sm:$0x7f] }
  0x25   : > { %298 = vst.msk [vmem:[#allocation2 + $0x99] sm:$0x7f] %vm281_vm2, %v265_v31  ;;  %300 = vst.msk [vmem:[#allocation2 + $0xa9] sm:$0x7f] %vm281_vm2, %v267_v32  ;;  %v338_v44 = vld [vmem:[%s2864_s21 + $0xd8] sm:$0xff]  ;;  %v340_v45 = vld [vmem:[%s2864_s21 + $0xe8] sm:$0xff] }
  0x26   : > { %302 = vst.msk [vmem:[#allocation2 + $0xb9] sm:$0x7f] %vm281_vm2, %v269_v33  ;;  %304 = vst.msk [vmem:[#allocation2 + $0xc9] sm:$0x7f] %vm281_vm2, %v271_v35  ;;  %v493_v46 = vld [vmem:[%s2864_s21 + $0x9] sm:$0x7f] }
  0x27   : > { %397 = vrot.lane.b32.xlu1 %v2970_v21, %s2749_s22  ;;  %395 = vrot.lane.b32.xlu0 %v2903_v9, %s2749_s22  ;;  %306 = vst.msk [vmem:[#allocation2 + $0xd9] sm:$0x7f] %vm281_vm2, %v273_v37  ;;  %308 = vst.msk [vmem:[#allocation2 + $0xe9] sm:$0x7f] %vm281_vm2, %v275_v39  ;;  %v3054_v47 = vld [vmem:[%s2864_s21 + $0x1] sm:$0xff]  ;;  %v3061_v49 = vld [vmem:[%s2864_s21 + $0x11] sm:$0xff] }
  0x28   : > { %213 = vst.msk [vmem:[#allocation2 + $0xf0] sm:$0xff] %vm209_vm3, %v2748_v0  ;;  %214 = vst.msk [vmem:[#allocation2 + $0xf8] sm:$0xff] %vm209_vm3, %v2748_v0  ;;  %v495_v48 = vld [vmem:[%s2864_s21 + $0x19] sm:$0x7f]  ;;  %v497_v50 = vld [vmem:[%s2864_s21 + $0x29] sm:$0x7f] }
  0x29   : > { %210 = vst.msk [vmem:[#allocation2] sm:$0xff] %vm209_vm3, %v2748_v0  ;;  %211 = vst.msk [vmem:[#allocation2 + $0x8] sm:$0xff] %vm209_vm3, %v2748_v0  ;;  %v3068_v51 = vld [vmem:[%s2864_s21 + $0x21] sm:$0xff]  ;;  %v499_v52 = vld [vmem:[%s2864_s21 + $0x39] sm:$0x7f]  ;;  %vm834_vm8 = vcmask 261312  }
  0x2a   : > { %247 = vst.msk [vmem:[#allocation2 + $0xff] sm:$0x1] %vm215_vm0, %v2748_v0  ;;  %231 = vst.msk [vmem:[#allocation2 + $0xf0] sm:$0x1] %vm215_vm0, %v2748_v0  ;;  %v3075_v53 = vld [vmem:[%s2864_s21 + $0x31] sm:$0xff]  ;;  %v3082_v55 = vld [vmem:[%s2864_s21 + $0x41] sm:$0xff] }
  0x2b   : > { %401 = vrot.lane.b32.xlu1 %v326_v28, %s2749_s22  ;;  %399 = vrot.lane.b32.xlu0 %v325_v10, %s2749_s22  ;;  %309 = vst.msk [vmem:[#allocation2 + $0xf1] sm:$0xff] %vm279_vm1, %v339_v41  ;;  %v501_v54 = vld [vmem:[%s2864_s21 + $0x49] sm:$0x7f]  ;;  %v503_v56 = vld [vmem:[%s2864_s21 + $0x59] sm:$0x7f]  ;;  %vm1028_vm9 = vcmask 326912  }
  0x2c   : > { %216 = vst.msk [vmem:[#allocation2] sm:$0x1] %vm215_vm0, %v2748_v0  ;;  %232 = vst.msk [vmem:[#allocation2 + $0xf] sm:$0x1] %vm215_vm0, %v2748_v0  ;;  %v3089_v57 = vld [vmem:[%s2864_s21 + $0x51] sm:$0xff]  ;;  %v3096_v59 = vld [vmem:[%s2864_s21 + $0x61] sm:$0xff] }
  0x2d   : > { %310 = vst.msk [vmem:[#allocation2 + $0xf9] sm:$0x7f] %vm281_vm2, %v277_v42  ;;  %v505_v58 = vld [vmem:[%s2864_s21 + $0x69] sm:$0x7f]  ;;  %v507_v60 = vld [vmem:[%s2864_s21 + $0x79] sm:$0x7f] }
  0x2e   : > { %v506_v61 = vld [vmem:[%s2864_s21 + $0x71] sm:$0xff]  ;;  %v509_v62 = vld [vmem:[%s2864_s21 + $0x89] sm:$0x7f]  ;;  %v508_v63 = vld [vmem:[%s2864_s21 + $0x81] sm:$0xff]  ;;  %vm1221_vm10 = vcmask 392512   ;;  %vm1223_vm11 = vcmask 391488  }
  0x2f   : > { %405 = vrot.lane.b32.xlu1 %v328_v34, %s2749_s22  ;;  %403 = vrot.lane.b32.xlu0 %v327_v12, %s2749_s22  ;;  %v511_v0 = vld [vmem:[%s2864_s21 + $0x99] sm:$0x7f]  ;;  %v510_v10 = vld [vmem:[%s2864_s21 + $0x91] sm:$0xff]  ;;  %vm1406_vm12 = vcmask 458112   ;;  %vm1588_vm13 = vcmask 523712   ;;  %vm1408_vm14 = vcmask 457088  }
  0x30   : > { %v513_v12 = vld [vmem:[%s2864_s21 + $0xa9] sm:$0x7f]  ;;  %v519_v22 = vld [vmem:[%s2864_s21 + $0xd9] sm:$0x7f]  ;;  %v518_v23 = vld [vmem:[%s2864_s21 + $0xd1] sm:$0xff]  ;;  %vm1769_vm15 = vcmask 589312  }
  0x31   : > { %v521_v24 = vld [vmem:[%s2864_s21 + $0xe9] sm:$0x7f]  ;;  %v520_v25 = vld [vmem:[%s2864_s21 + $0xe1] sm:$0xff]  ;;  %v677_v31 = vld [vmem:[%s2864_s21 + $0x18] sm:$0x7f]  ;;  %vm1771_vm0 = vcmask 588288  }
  0x32   : > { %v675_v28 = vld [vmem:[%s2864_s21 + $0x8] sm:$0x7f]  ;;  %v681_v37 = vld [vmem:[%s2864_s21 + $0x38] sm:$0x7f]  ;;  %s2470_s18 = sshll.u32 %s3951_s16, 1  ;;  %vm2239_vm2 = vcmask 57344  }
  0x33   : > { %409 = vrot.lane.b32.xlu1 %v330_v36, %s2749_s22  ;;  %407 = vrot.lane.b32.xlu0 %v329_v13, %s2749_s22  ;;  %v512_v13 = vld [vmem:[%s2864_s21 + $0xa1] sm:$0xff] }
  0x34   : > { %v679_v34 = vld [vmem:[%s2864_s21 + $0x28] sm:$0x7f] }
  0x37   : > { %413 = vrot.lane.b32.xlu1 %v332_v38, %s2749_s22  ;;  %411 = vrot.lane.b32.xlu0 %v2923_v14, %s2749_s22  ;;  %v515_v14 = vld [vmem:[%s2864_s21 + $0xb9] sm:$0x7f] }
  0x3b   : > { %417 = vrot.lane.b32.xlu1 %v334_v40, %s2749_s22  ;;  %415 = vrot.lane.b32.xlu0 %v2927_v15, %s2749_s22  ;;  %v514_v15 = vld [vmem:[%s2864_s21 + $0xb1] sm:$0xff]  ;;  %v683_v40 = vld [vmem:[%s2864_s21 + $0x48] sm:$0x7f] }
  0x3f   : > { %421 = vrot.lane.b32.xlu1 %v336_v43, %s2749_s22  ;;  %419 = vrot.lane.b32.xlu0 %v2937_v16, %s2749_s22  ;;  %v517_v16 = vld [vmem:[%s2864_s21 + $0xc9] sm:$0x7f]  ;;  %v685_v43 = vld [vmem:[%s2864_s21 + $0x58] sm:$0x7f] }
  0x43   : > { %425 = vrot.lane.b32.xlu1 %v338_v44, %s2749_s22  ;;  %423 = vrot.lane.b32.xlu0 %v2945_v18, %s2749_s22  ;;  %v516_v18 = vld [vmem:[%s2864_s21 + $0xc1] sm:$0xff] }
  0x47   : > { %429 = vrot.lane.b32.xlu1 %v340_v45, %s2749_s22  ;;  %427 = vrot.lane.b32.xlu0 %v339_v41, %s2749_s22 }
  0x4b   : > { %554 = vrot.lane.b32.xlu1 %v493_v46, %s2750_s23  ;;  %552 = vrot.lane.b32.xlu0 %v3054_v47, %s2750_s23 }
  0x4f   : > { %558 = vrot.lane.b32.xlu1 %v495_v48, %s2750_s23  ;;  %556 = vrot.lane.b32.xlu0 %v3061_v49, %s2750_s23 }
  0x53   : > { %562 = vrot.lane.b32.xlu1 %v497_v50, %s2750_s23  ;;  %560 = vrot.lane.b32.xlu0 %v3068_v51, %s2750_s23 }
  0x57   : > { %566 = vrot.lane.b32.xlu1 %v499_v52, %s2750_s23  ;;  %564 = vrot.lane.b32.xlu0 %v3075_v53, %s2750_s23 }
  0x5b   : > { %570 = vrot.lane.b32.xlu1 %v501_v54, %s2750_s23  ;;  %568 = vrot.lane.b32.xlu0 %v3082_v55, %s2750_s23  ;;  %v1062_v54 = vld [vmem:[%s2864_s21 + $0x9] sm:$0x7f] }
  0x5f   : > { %574 = vrot.lane.b32.xlu1 %v503_v56, %s2750_s23  ;;  %572 = vrot.lane.b32.xlu0 %v3089_v57, %s2750_s23 }
  0x63   : > { %578 = vrot.lane.b32.xlu1 %v505_v58, %s2750_s23  ;;  %576 = vrot.lane.b32.xlu0 %v3096_v59, %s2750_s23 }
  0x67   : > { %582 = vrot.lane.b32.xlu1 %v507_v60, %s2750_s23  ;;  %580 = vrot.lane.b32.xlu0 %v506_v61, %s2750_s23  ;;  %v1840_v60 = vld [vmem:[%s3945_s1 + $0x38] sm:$0xff] }
  0x6b   : > { %586 = vrot.lane.b32.xlu1 %v509_v62, %s2750_s23  ;;  %584 = vrot.lane.b32.xlu0 %v508_v63, %s2750_s23  ;;  %v1838_v63 = vld [vmem:[%s3945_s1 + $0x28] sm:$0xff] }
  0x6f   : > { %590 = vrot.lane.b32.xlu1 %v511_v0, %s2750_s23  ;;  %588 = vrot.lane.b32.xlu0 %v510_v10, %s2750_s23  ;;  %v1837_v0 = vld [vmem:[%s3945_s1 + $0x20] sm:$0xff] }
  0x73   : > { %594 = vrot.lane.b32.xlu1 %v513_v12, %s2750_s23  ;;  %592 = vrot.lane.b32.xlu0 %v512_v13, %s2750_s23  ;;  %v1836_v13 = vld [vmem:[%s3945_s1 + $0x18] sm:$0xff] }
  0x77   : > { %598 = vrot.lane.b32.xlu1 %v515_v14, %s2750_s23  ;;  %596 = vrot.lane.b32.xlu0 %v514_v15, %s2750_s23 }
  0x7b   : > { %602 = vrot.lane.b32.xlu1 %v517_v16, %s2750_s23  ;;  %600 = vrot.lane.b32.xlu0 %v516_v18, %s2750_s23  ;;  %v1835_v16 = vld [vmem:[%s3945_s1 + $0x10] sm:$0xff]  ;;  %v1064_v18 = vld [vmem:[%s2864_s21 + $0x19] sm:$0x7f] }
  0x7f   : > { %606 = vrot.lane.b32.xlu1 %v519_v22, %s2750_s23  ;;  %604 = vrot.lane.b32.xlu0 %v518_v23, %s2750_s23 }
  0x81   : > { %v376_v26 = vpop.permute.xlu1 %375  ;;  %v372_v27 = vpop.permute.xlu0 %371 }
  0x82   : > { %464 = vst.msk [vmem:[#allocation2 + $0x20] sm:$0xff] %vm461_vm4, %v376_v26  ;;  %462 = vst.msk [vmem:[#allocation2 + $0x10] sm:$0xff] %vm461_vm4, %v372_v27 }
  0x83   : > { %610 = vrot.lane.b32.xlu1 %v521_v24, %s2750_s23  ;;  %608 = vrot.lane.b32.xlu0 %v520_v25, %s2750_s23  ;;  %v2532_v24 = vld [vmem:[%s2864_s21 + $0x19] sm:$0x7f] }
  0x85   : > { %v378_v29 = vpop.permute.xlu1 %377  ;;  %v374_v30 = vpop.permute.xlu0 %373 }
  0x86   : > { %465 = vst.msk [vmem:[#allocation2 + $0x28] sm:$0xff] %vm461_vm4, %v378_v29  ;;  %463 = vst.msk [vmem:[#allocation2 + $0x18] sm:$0xff] %vm461_vm4, %v374_v30 }
  0x87   : > { %740 = vrot.lane.b32.xlu1 %v675_v28, %s2751_s24  ;;  %738 = vrot.lane.b32.xlu0 %v2870_v2, %s2751_s24 }
  0x89   : > { %v382_v32 = vpop.permute.xlu1 %381  ;;  %v380_v33 = vpop.permute.xlu0 %379 }
  0x8a   : > { %467 = vst.msk [vmem:[#allocation2 + $0x38] sm:$0xff] %vm461_vm4, %v382_v32  ;;  %466 = vst.msk [vmem:[#allocation2 + $0x30] sm:$0xff] %vm461_vm4, %v380_v33  ;;  %v1066_v33 = vld [vmem:[%s2864_s21 + $0x29] sm:$0x7f] }
  0x8b   : > { %744 = vrot.lane.b32.xlu1 %v677_v31, %s2751_s24  ;;  %742 = vrot.lane.b32.xlu0 %v2867_v1, %s2751_s24 }
  0x8d   : > { %v386_v35 = vpop.permute.xlu1 %385  ;;  %v384_v36 = vpop.permute.xlu0 %383 }
  0x8e   : > { %469 = vst.msk [vmem:[#allocation2 + $0x48] sm:$0xff] %vm461_vm4, %v386_v35  ;;  %468 = vst.msk [vmem:[#allocation2 + $0x40] sm:$0xff] %vm461_vm4, %v384_v36 }
  0x8f   : > { %748 = vrot.lane.b32.xlu1 %v679_v34, %s2751_s24  ;;  %746 = vrot.lane.b32.xlu0 %v2887_v5, %s2751_s24 }
  0x91   : > { %v390_v38 = vpop.permute.xlu1 %389  ;;  %v388_v39 = vpop.permute.xlu0 %387 }
  0x92   : > { %471 = vst.msk [vmem:[#allocation2 + $0x58] sm:$0xff] %vm461_vm4, %v390_v38  ;;  %470 = vst.msk [vmem:[#allocation2 + $0x50] sm:$0xff] %vm461_vm4, %v388_v39 }
  0x93   : > { %752 = vrot.lane.b32.xlu1 %v681_v37, %s2751_s24  ;;  %750 = vrot.lane.b32.xlu0 %v2890_v6, %s2751_s24 }
  0x95   : > { %v394_v41 = vpop.permute.xlu1 %393  ;;  %v392_v42 = vpop.permute.xlu0 %391 }
  0x96   : > { %473 = vst.msk [vmem:[#allocation2 + $0x68] sm:$0xff] %vm461_vm4, %v394_v41  ;;  %472 = vst.msk [vmem:[#allocation2 + $0x60] sm:$0xff] %vm461_vm4, %v392_v42 }
  0x97   : > { %756 = vrot.lane.b32.xlu1 %v683_v40, %s2751_s24  ;;  %754 = vrot.lane.b32.xlu0 %v2893_v7, %s2751_s24 }
  0x99   : > { %v398_v44 = vpop.permute.xlu1 %397  ;;  %v396_v45 = vpop.permute.xlu0 %395 }
  0x9a   : > { %475 = vst.msk [vmem:[#allocation2 + $0x78] sm:$0xff] %vm461_vm4, %v398_v44  ;;  %474 = vst.msk [vmem:[#allocation2 + $0x70] sm:$0xff] %vm461_vm4, %v396_v45 }
  0x9b   : > { %760 = vrot.lane.b32.xlu1 %v685_v43, %s2751_s24  ;;  %758 = vrot.lane.b32.xlu0 %v2900_v8, %s2751_s24  ;;  %v1068_v43 = vld [vmem:[%s2864_s21 + $0x39] sm:$0x7f] }
  0x9d   : > { %v402_v46 = vpop.permute.xlu1 %401  ;;  %v400_v48 = vpop.permute.xlu0 %399 }
  0x9e   : > { %477 = vst.msk [vmem:[#allocation2 + $0x88] sm:$0xff] %vm461_vm4, %v402_v46  ;;  %476 = vst.msk [vmem:[#allocation2 + $0x80] sm:$0xff] %vm461_vm4, %v400_v48 }
  0x9f   : > { %932 = vrot.lane.b32.xlu1 %v2870_v2, %s2752_s25  ;;  %762 = vrot.lane.b32.xlu0 %v2903_v9, %s2751_s24  ;;  %v1841_v2 = vld [vmem:[%s3945_s1 + $0x40] sm:$0xff] }
  0xa0   : > { %2639 = vmatprep.subr.mxu0 %v1841_v2  ;;  %2705 = vmatprep.subr.mxu1 %v1841_v2 }
  0xa1   : > { %v406_v50 = vpop.permute.xlu1 %405  ;;  %v404_v52 = vpop.permute.xlu0 %403  ;;  %2640 = vmatpush3.msra.mxu0 %v1841_v2  ;;  %2714 = vmatpush3.msra.mxu1 %v1841_v2 }
  0xa2   : > { %479 = vst.msk [vmem:[#allocation2 + $0x98] sm:$0xff] %vm461_vm4, %v406_v50  ;;  %478 = vst.msk [vmem:[#allocation2 + $0x90] sm:$0xff] %vm461_vm4, %v404_v52  ;;  %2641 = vmatprep.subr.mxu0 %v1840_v60  ;;  %2706 = vmatprep.subr.mxu1 %v1840_v60 }
  0xa3   : > { %1125 = vrot.lane.b32.xlu1 %v3054_v47, %s2753_s26  ;;  %934 = vrot.lane.b32.xlu0 %v2884_v4, %s2752_s25  ;;  %v1839_v4 = vld [vmem:[%s3945_s1 + $0x30] sm:$0xff]  ;;  %v2472_v47 = vld [vmem:[%s2864_s21 + $0x18] sm:$0x7f] }
  0xa4   : > { %2642 = vmatpush3.msra.mxu0 %v1840_v60  ;;  %2715 = vmatpush3.msra.mxu1 %v1840_v60 }
  0xa5   : > { %v410_v56 = vpop.permute.xlu1 %409  ;;  %v408_v58 = vpop.permute.xlu0 %407  ;;  %2643 = vmatprep.subr.mxu0 %v1839_v4  ;;  %2707 = vmatprep.subr.mxu1 %v1839_v4 }
  0xa6   : > { %481 = vst.msk [vmem:[#allocation2 + $0xa8] sm:$0xff] %vm461_vm4, %v410_v56  ;;  %480 = vst.msk [vmem:[#allocation2 + $0xa0] sm:$0xff] %vm461_vm4, %v408_v58  ;;  %2644 = vmatpush3.msra.mxu0 %v1839_v4  ;;  %2716 = vmatpush3.msra.mxu1 %v1839_v4  ;;  %v1070_v58 = vld [vmem:[%s2864_s21 + $0x49] sm:$0x7f] }
  0xa7   : > { %1316 = vrot.lane.b32.xlu1 %v2867_v1, %s2754_s5  ;;  %1127 = vrot.lane.b32.xlu0 %v1062_v54, %s2753_s26 }
  0xa8   : > { %2645 = vmatprep.subr.mxu0 %v1838_v63  ;;  %2708 = vmatprep.subr.mxu1 %v1838_v63 }
  0xa9   : > { %v414_v61 = vpop.permute.xlu1 %413  ;;  %v412_v62 = vpop.permute.xlu0 %411  ;;  %2646 = vmatpush3.msra.mxu0 %v1838_v63  ;;  %2717 = vmatpush3.msra.mxu1 %v1838_v63 }
  0xaa   : > { %483 = vst.msk [vmem:[#allocation2 + $0xb8] sm:$0xff] %vm461_vm4, %v414_v61  ;;  %482 = vst.msk [vmem:[#allocation2 + $0xb0] sm:$0xff] %vm461_vm4, %v412_v62  ;;  %2647 = vmatprep.subr.mxu0 %v1837_v0  ;;  %2709 = vmatprep.subr.mxu1 %v1837_v0 }
  0xab   : > { %1498 = vrot.lane.b32.xlu1 %v2867_v1, %s2755_s10  ;;  %1318 = vrot.lane.b32.xlu0 %v2472_v47, %s2754_s5 }
  0xac   : > { %2648 = vmatpush3.msra.mxu0 %v1837_v0  ;;  %2718 = vmatpush3.msra.mxu1 %v1837_v0 }
  0xad   : > { %v418_v10 = vpop.permute.xlu1 %417  ;;  %v416_v12 = vpop.permute.xlu0 %415  ;;  %2649 = vmatprep.subr.mxu0 %v1836_v13  ;;  %2710 = vmatprep.subr.mxu1 %v1836_v13 }
  0xae   : > { %485 = vst.msk [vmem:[#allocation2 + $0xc8] sm:$0xff] %vm461_vm4, %v418_v10  ;;  %484 = vst.msk [vmem:[#allocation2 + $0xc0] sm:$0xff] %vm461_vm4, %v416_v12  ;;  %2650 = vmatpush3.msra.mxu0 %v1836_v13  ;;  %2719 = vmatpush3.msra.mxu1 %v1836_v13  ;;  %v1072_v13 = vld [vmem:[%s2864_s21 + $0x59] sm:$0x7f] }
  0xaf   : > { %938 = vrot.lane.b32.xlu1 %v2877_v3, %s2752_s25  ;;  %936 = vrot.lane.b32.xlu0 %v2867_v1, %s2752_s25  ;;  %v1834_v1 = vld [vmem:[%s3945_s1 + $0x8] sm:$0xff] }
  0xb0   : > { %2651 = vmatprep.subr.mxu0 %v1835_v16  ;;  %2711 = vmatprep.subr.mxu1 %v1835_v16 }
  0xb1   : > { %v422_v14 = vpop.permute.xlu1 %421  ;;  %v420_v15 = vpop.permute.xlu0 %419  ;;  %2652 = vmatpush3.msra.mxu0 %v1835_v16  ;;  %2720 = vmatpush3.msra.mxu1 %v1835_v16 }
  0xb2   : > { %487 = vst.msk [vmem:[#allocation2 + $0xd8] sm:$0xff] %vm461_vm4, %v422_v14  ;;  %486 = vst.msk [vmem:[#allocation2 + $0xd0] sm:$0xff] %vm461_vm4, %v420_v15  ;;  %2653 = vmatprep.subr.mxu0 %v1834_v1  ;;  %2712 = vmatprep.subr.mxu1 %v1834_v1 }
  0xb3   : > { %1679 = vrot.lane.b32.xlu1 %v3061_v49, %s2756_s20  ;;  %1500 = vrot.lane.b32.xlu0 %v2877_v3, %s2755_s10  ;;  %v1833_v3 = vld [vmem:[%s3945_s1] sm:$0xff] }
  0xb4   : > { %2654 = vmatpush3.msra.mxu0 %v1834_v1  ;;  %2721 = vmatpush3.msra.mxu1 %v1834_v1 }
  0xb5   : > { %v426_v22 = vpop.permute.xlu1 %425  ;;  %v424_v23 = vpop.permute.xlu0 %423  ;;  %2655 = vmatprep.subr.mxu0 %v1833_v3  ;;  %2713 = vmatprep.subr.mxu1 %v1833_v3 }
  0xb6   : > { %489 = vst.msk [vmem:[#allocation2 + $0xe8] sm:$0xff] %vm461_vm4, %v426_v22  ;;  %488 = vst.msk [vmem:[#allocation2 + $0xe0] sm:$0xff] %vm461_vm4, %v424_v23  ;;  %2656 = vmatpush3.msra.mxu0 %v1833_v3  ;;  %2722 = vmatpush3.msra.mxu1 %v1833_v3 }
  0xb7   : > { %1131 = vrot.lane.b32.xlu1 %v1064_v18, %s2753_s26  ;;  %1129 = vrot.lane.b32.xlu0 %v3061_v49, %s2753_s26  ;;  %v2474_v49 = vld [vmem:[%s2864_s21 + $0x28] sm:$0x7f] }
  0xb8   : > { %v687_v18 = vld [vmem:[%s2864_s21 + $0x68] sm:$0x7f] }
  0xb9   : > { %v430_v25 = vpop.permute.xlu1 %429  ;;  %v428_v26 = vpop.permute.xlu0 %427 }
  0xba   : > { %491 = vst.msk [vmem:[#allocation2 + $0xf8] sm:$0xff] %vm461_vm4, %v430_v25  ;;  %490 = vst.msk [vmem:[#allocation2 + $0xf0] sm:$0xff] %vm461_vm4, %v428_v26 }
  0xbb   : > { %1320 = vrot.lane.b32.xlu1 %v2887_v5, %s2754_s5  ;;  %1681 = vrot.lane.b32.xlu0 %v2532_v24, %s2756_s20 }
  0xbd   : > { %v555_v27 = vpop.permute.xlu1 %554  ;;  %v553_v28 = vpop.permute.xlu0 %552 }
  0xbe   : > { %645 = vst.msk [vmem:[#allocation2 + $0x18] sm:$0x7f] %vm644_vm5, %v555_v27 }
  0xbf   : > { %643 = vst.msk [vmem:[#allocation2 + $0x10] sm:$0xff] %vm642_vm6, %v553_v28  ;;  %1502 = vrot.lane.b32.xlu1 %v2887_v5, %s2755_s10  ;;  %1322 = vrot.lane.b32.xlu0 %v2474_v49, %s2754_s5  ;;  %v2542_v49 = vld [vmem:[%s2864_s21 + $0x69] sm:$0x7f] }
  0xc1   : > { %v559_v29 = vpop.permute.xlu1 %558  ;;  %v557_v30 = vpop.permute.xlu0 %556 }
  0xc2   : > { %647 = vst.msk [vmem:[#allocation2 + $0x28] sm:$0x7f] %vm644_vm5, %v559_v29  ;;  %v688_v29 = vld [vmem:[%s2864_s21 + $0x70] sm:$0xff] }
  0xc3   : > { %646 = vst.msk [vmem:[#allocation2 + $0x20] sm:$0xff] %vm642_vm6, %v557_v30  ;;  %942 = vrot.lane.b32.xlu1 %v2917_v11, %s2752_s25  ;;  %940 = vrot.lane.b32.xlu0 %v2887_v5, %s2752_s25  ;;  %v2534_v5 = vld [vmem:[%s2864_s21 + $0x29] sm:$0x7f] }
  0xc5   : > { %v563_v31 = vpop.permute.xlu1 %562  ;;  %v561_v32 = vpop.permute.xlu0 %560 }
  0xc6   : > { %649 = vst.msk [vmem:[#allocation2 + $0x38] sm:$0x7f] %vm644_vm5, %v563_v31 }
  0xc7   : > { %648 = vst.msk [vmem:[#allocation2 + $0x30] sm:$0xff] %vm642_vm6, %v561_v32  ;;  %1683 = vrot.lane.b32.xlu1 %v3068_v51, %s2756_s20  ;;  %1504 = vrot.lane.b32.xlu0 %v2917_v11, %s2755_s10  ;;  %v2476_v11 = vld [vmem:[%s2864_s21 + $0x38] sm:$0x7f] }
  0xc8   : > { %v689_v32 = vld [vmem:[%s2864_s21 + $0x78] sm:$0x7f] }
  0xc9   : > { %v567_v34 = vpop.permute.xlu1 %566  ;;  %v565_v35 = vpop.permute.xlu0 %564 }
  0xca   : > { %651 = vst.msk [vmem:[#allocation2 + $0x48] sm:$0x7f] %vm644_vm5, %v567_v34 }
  0xcb   : > { %650 = vst.msk [vmem:[#allocation2 + $0x40] sm:$0xff] %vm642_vm6, %v565_v35  ;;  %1135 = vrot.lane.b32.xlu1 %v1066_v33, %s2753_s26  ;;  %1133 = vrot.lane.b32.xlu0 %v3068_v51, %s2753_s26 }
  0xcd   : > { %v571_v36 = vpop.permute.xlu1 %570  ;;  %v569_v37 = vpop.permute.xlu0 %568 }
  0xce   : > { %653 = vst.msk [vmem:[#allocation2 + $0x58] sm:$0x7f] %vm644_vm5, %v571_v36  ;;  %v2514_v36 = vld [vmem:[%s2864_s21 + $0x78] sm:$0xff] }
  0xcf   : > { %652 = vst.msk [vmem:[#allocation2 + $0x50] sm:$0xff] %vm642_vm6, %v569_v37  ;;  %1324 = vrot.lane.b32.xlu1 %v2890_v6, %s2754_s5  ;;  %1685 = vrot.lane.b32.xlu0 %v2534_v5, %s2756_s20 }
  0xd1   : > { %v575_v38 = vpop.permute.xlu1 %574  ;;  %v573_v39 = vpop.permute.xlu0 %572 }
  0xd2   : > { %655 = vst.msk [vmem:[#allocation2 + $0x68] sm:$0x7f] %vm644_vm5, %v575_v38 }
  0xd3   : > { %654 = vst.msk [vmem:[#allocation2 + $0x60] sm:$0xff] %vm642_vm6, %v573_v39  ;;  %1506 = vrot.lane.b32.xlu1 %v2890_v6, %s2755_s10  ;;  %1326 = vrot.lane.b32.xlu0 %v2476_v11, %s2754_s5  ;;  %v1075_v39 = vld [vmem:[%s2864_s21 + $0x71] sm:$0xff] }
  0xd5   : > { %v579_v51 = vpop.permute.xlu1 %578  ;;  %v577_v40 = vpop.permute.xlu0 %576 }
  0xd6   : > { %657 = vst.msk [vmem:[#allocation2 + $0x78] sm:$0x7f] %vm644_vm5, %v579_v51 }
  0xd7   : > { %656 = vst.msk [vmem:[#allocation2 + $0x70] sm:$0xff] %vm642_vm6, %v577_v40  ;;  %946 = vrot.lane.b32.xlu1 %v2942_v17, %s2752_s25  ;;  %944 = vrot.lane.b32.xlu0 %v2890_v6, %s2752_s25  ;;  %v2536_v6 = vld [vmem:[%s2864_s21 + $0x39] sm:$0x7f] }
  0xd9   : > { %v583_v41 = vpop.permute.xlu1 %582  ;;  %v581_v42 = vpop.permute.xlu0 %580 }
  0xda   : > { %659 = vst.msk [vmem:[#allocation2 + $0x88] sm:$0x7f] %vm644_vm5, %v583_v41  ;;  %v2544_v41 = vld [vmem:[%s2864_s21 + $0x79] sm:$0x7f] }
  0xdb   : > { %658 = vst.msk [vmem:[#allocation2 + $0x80] sm:$0xff] %vm642_vm6, %v581_v42  ;;  %1687 = vrot.lane.b32.xlu1 %v3075_v53, %s2756_s20  ;;  %1508 = vrot.lane.b32.xlu0 %v2942_v17, %s2755_s10  ;;  %v2478_v17 = vld [vmem:[%s2864_s21 + $0x48] sm:$0x7f]  ;;  %v1076_v42 = vld [vmem:[%s2864_s21 + $0x79] sm:$0x7f] }
  0xdd   : > { %v587_v44 = vpop.permute.xlu1 %586  ;;  %v585_v45 = vpop.permute.xlu0 %584 }
  0xde   : > { %661 = vst.msk [vmem:[#allocation2 + $0x98] sm:$0x7f] %vm644_vm5, %v587_v44 }
  0xdf   : > { %660 = vst.msk [vmem:[#allocation2 + $0x90] sm:$0xff] %vm642_vm6, %v585_v45  ;;  %1139 = vrot.lane.b32.xlu1 %v1068_v43, %s2753_s26  ;;  %1137 = vrot.lane.b32.xlu0 %v3075_v53, %s2753_s26 }
  0xe1   : > { %v591_v46 = vpop.permute.xlu1 %590  ;;  %v589_v48 = vpop.permute.xlu0 %588 }
  0xe2   : > { %663 = vst.msk [vmem:[#allocation2 + $0xa8] sm:$0x7f] %vm644_vm5, %v591_v46 }
  0xe3   : > { %662 = vst.msk [vmem:[#allocation2 + $0xa0] sm:$0xff] %vm642_vm6, %v589_v48  ;;  %1328 = vrot.lane.b32.xlu1 %v2893_v7, %s2754_s5  ;;  %1689 = vrot.lane.b32.xlu0 %v2536_v6, %s2756_s20  ;;  %v690_v6 = vld [vmem:[%s2864_s21 + $0x80] sm:$0xff] }
  0xe5   : > { %v595_v50 = vpop.permute.xlu1 %594  ;;  %v593_v52 = vpop.permute.xlu0 %592 }
  0xe6   : > { %665 = vst.msk [vmem:[#allocation2 + $0xb8] sm:$0x7f] %vm644_vm5, %v595_v50  ;;  %v691_v50 = vld [vmem:[%s2864_s21 + $0x88] sm:$0x7f] }
  0xe7   : > { %664 = vst.msk [vmem:[#allocation2 + $0xb0] sm:$0xff] %vm642_vm6, %v593_v52  ;;  %1510 = vrot.lane.b32.xlu1 %v2893_v7, %s2755_s10  ;;  %1330 = vrot.lane.b32.xlu0 %v2478_v17, %s2754_s5  ;;  %v2486_v17 = vld [vmem:[%s2864_s21 + $0x88] sm:$0x7f] }
  0xe9   : > { %v599_v53 = vpop.permute.xlu1 %598  ;;  %v597_v2 = vpop.permute.xlu0 %596 }
  0xea   : > { %667 = vst.msk [vmem:[#allocation2 + $0xc8] sm:$0x7f] %vm644_vm5, %v599_v53 }
  0xeb   : > { %666 = vst.msk [vmem:[#allocation2 + $0xc0] sm:$0xff] %vm642_vm6, %v597_v2  ;;  %950 = vrot.lane.b32.xlu1 %v2956_v19, %s2752_s25  ;;  %948 = vrot.lane.b32.xlu0 %v2893_v7, %s2752_s25  ;;  %v2538_v7 = vld [vmem:[%s2864_s21 + $0x49] sm:$0x7f] }
  0xed   : > { %v603_v54 = vpop.permute.xlu1 %602  ;;  %v601_v56 = vpop.permute.xlu0 %600 }
  0xee   : > { %669 = vst.msk [vmem:[#allocation2 + $0xd8] sm:$0x7f] %vm644_vm5, %v603_v54 }
  0xef   : > { %668 = vst.msk [vmem:[#allocation2 + $0xd0] sm:$0xff] %vm642_vm6, %v601_v56  ;;  %1691 = vrot.lane.b32.xlu1 %v3082_v55, %s2756_s20  ;;  %1512 = vrot.lane.b32.xlu0 %v2956_v19, %s2755_s10  ;;  %v2480_v19 = vld [vmem:[%s2864_s21 + $0x58] sm:$0x7f] }
  0xf1   : > { %v607_v60 = vpop.permute.xlu1 %606  ;;  %v605_v4 = vpop.permute.xlu0 %604 }
  0xf2   : > { %671 = vst.msk [vmem:[#allocation2 + $0xe8] sm:$0x7f] %vm644_vm5, %v607_v60 }
  0xf3   : > { %670 = vst.msk [vmem:[#allocation2 + $0xe0] sm:$0xff] %vm642_vm6, %v605_v4  ;;  %1143 = vrot.lane.b32.xlu1 %v1070_v58, %s2753_s26  ;;  %1141 = vrot.lane.b32.xlu0 %v3082_v55, %s2753_s26  ;;  %v2516_v58 = vld [vmem:[%s2864_s21 + $0x88] sm:$0xff] }
  0xf5   : > { %v611_v47 = vpop.permute.xlu1 %610  ;;  %v609_v61 = vpop.permute.xlu0 %608 }
  0xf6   : > { %673 = vst.msk [vmem:[#allocation2 + $0xf8] sm:$0x7f] %vm644_vm5, %v611_v47 }
  0xf7   : > { %672 = vst.msk [vmem:[#allocation2 + $0xf0] sm:$0xff] %vm642_vm6, %v609_v61  ;;  %1332 = vrot.lane.b32.xlu1 %v2900_v8, %s2754_s5  ;;  %1693 = vrot.lane.b32.xlu0 %v2538_v7, %s2756_s20  ;;  %v1077_v7 = vld [vmem:[%s2864_s21 + $0x81] sm:$0xff] }
  0xf9   : > { %v741_v62 = vpop.permute.xlu1 %740  ;;  %v739_v63 = vpop.permute.xlu0 %738 }
  0xfa   : > { %837 = vst.msk [vmem:[#allocation2 + $0x9] sm:$0x7f] %vm836_vm7, %v741_v62  ;;  %v2546_v62 = vld [vmem:[%s2864_s21 + $0x89] sm:$0x7f] }
  0xfb   : > { %835 = vst.msk [vmem:[#allocation2 + $0x1] sm:$0xff] %vm834_vm8, %v739_v63  ;;  %1514 = vrot.lane.b32.xlu1 %v2900_v8, %s2755_s10  ;;  %1334 = vrot.lane.b32.xlu0 %v2480_v19, %s2754_s5  ;;  %v1078_v63 = vld [vmem:[%s2864_s21 + $0x89] sm:$0x7f] }
  0xfd   : > { %v745_v55 = vpop.permute.xlu1 %744  ;;  %v743_v0 = vpop.permute.xlu0 %742 }
  0xfe   : > { %839 = vst.msk [vmem:[#allocation2 + $0x19] sm:$0x7f] %vm836_vm7, %v745_v55 }
  0xff   : > { %838 = vst.msk [vmem:[#allocation2 + $0x11] sm:$0xff] %vm834_vm8, %v743_v0  ;;  %954 = vrot.lane.b32.xlu1 %v2963_v20, %s2752_s25  ;;  %952 = vrot.lane.b32.xlu0 %v2900_v8, %s2752_s25  ;;  %v2540_v8 = vld [vmem:[%s2864_s21 + $0x59] sm:$0x7f] }
 0x101   : > { %v749_v10 = vpop.permute.xlu1 %748  ;;  %v747_v12 = vpop.permute.xlu0 %746 }
 0x102   : > { %841 = vst.msk [vmem:[#allocation2 + $0x29] sm:$0x7f] %vm836_vm7, %v749_v10  ;;  %v692_v10 = vld [vmem:[%s2864_s21 + $0x90] sm:$0xff] }
 0x103   : > { %840 = vst.msk [vmem:[#allocation2 + $0x21] sm:$0xff] %vm834_vm8, %v747_v12  ;;  %1695 = vrot.lane.b32.xlu1 %v3089_v57, %s2756_s20  ;;  %1516 = vrot.lane.b32.xlu0 %v2963_v20, %s2755_s10  ;;  %v2482_v20 = vld [vmem:[%s2864_s21 + $0x68] sm:$0x7f] }
 0x105   : > { %v753_v14 = vpop.permute.xlu1 %752  ;;  %v751_v15 = vpop.permute.xlu0 %750 }
 0x106   : > { %843 = vst.msk [vmem:[#allocation2 + $0x39] sm:$0x7f] %vm836_vm7, %v753_v14  ;;  %v2488_v14 = vld [vmem:[%s2864_s21 + $0x98] sm:$0x7f] }
 0x107   : > { %842 = vst.msk [vmem:[#allocation2 + $0x31] sm:$0xff] %vm834_vm8, %v751_v15  ;;  %1147 = vrot.lane.b32.xlu1 %v1072_v13, %s2753_s26  ;;  %1145 = vrot.lane.b32.xlu0 %v3089_v57, %s2753_s26  ;;  %v693_v15 = vld [vmem:[%s2864_s21 + $0x98] sm:$0x7f] }
 0x109   : > { %v757_v16 = vpop.permute.xlu1 %756  ;;  %v755_v1 = vpop.permute.xlu0 %754 }
 0x10a   : > { %845 = vst.msk [vmem:[#allocation2 + $0x49] sm:$0x7f] %vm836_vm7, %v757_v16 }
 0x10b   : > { %844 = vst.msk [vmem:[#allocation2 + $0x41] sm:$0xff] %vm834_vm8, %v755_v1  ;;  %1336 = vrot.lane.b32.xlu1 %v2903_v9, %s2754_s5  ;;  %1697 = vrot.lane.b32.xlu0 %v2540_v8, %s2756_s20 }
 0x10d   : > { %v761_v22 = vpop.permute.xlu1 %760  ;;  %v759_v23 = vpop.permute.xlu0 %758 }
 0x10e   : > { %847 = vst.msk [vmem:[#allocation2 + $0x59] sm:$0x7f] %vm836_vm7, %v761_v22  ;;  %v2518_v22 = vld [vmem:[%s2864_s21 + $0x98] sm:$0xff] }
 0x10f   : > { %846 = vst.msk [vmem:[#allocation2 + $0x51] sm:$0xff] %vm834_vm8, %v759_v23  ;;  %1338 = vrot.lane.b32.xlu1 %v2482_v20, %s2754_s5  ;;  %764 = vrot.lane.b32.xlu0 %v687_v18, %s2751_s24 }
 0x111   : > { %v933_v57 = vpop.permute.xlu1 %932  ;;  %v763_v3 = vpop.permute.xlu0 %762 }
 0x112   : > { %1029 = vst.msk [vmem:[#allocation2] sm:$0xff] %vm1028_vm9, %v933_v57 }
 0x113   : > { %848 = vst.msk [vmem:[#allocation2 + $0x61] sm:$0xff] %vm834_vm8, %v763_v3  ;;  %956 = vrot.lane.b32.xlu1 %v2903_v9, %s2752_s25  ;;  %1518 = vrot.lane.b32.xlu0 %v2903_v9, %s2755_s10 }
 0x115   : > { %v1126_v24 = vpop.permute.xlu1 %1125  ;;  %v935_v25 = vpop.permute.xlu0 %934 }
 0x116   : > { %1222 = vst.msk [vmem:[#allocation2] sm:$0xff] %vm1221_vm10, %v1126_v24  ;;  %v1079_v24 = vld [vmem:[%s2864_s21 + $0x91] sm:$0xff] }
 0x117   : > { %1030 = vst.msk [vmem:[#allocation2 + $0x8] sm:$0xff] %vm1028_vm9, %v935_v25  ;;  %1520 = vrot.lane.b32.xlu1 %v2970_v21, %s2755_s10  ;;  %958 = vrot.lane.b32.xlu0 %v2970_v21, %s2752_s25  ;;  %v1074_v21 = vld [vmem:[%s2864_s21 + $0x69] sm:$0x7f] }
 0x119   : > { %v1317_v26 = vpop.permute.xlu1 %1316  ;;  %v1128_v9 = vpop.permute.xlu0 %1127 }
 0x11a   : > { %1224 = vst.msk [vmem:[#allocation2 + $0x8] sm:$0x7f] %vm1223_vm11, %v1128_v9  ;;  %v2548_v9 = vld [vmem:[%s2864_s21 + $0x99] sm:$0x7f] }
 0x11b   : > { %1407 = vst.msk [vmem:[#allocation2 + $0x1] sm:$0xff] %vm1406_vm12, %v1317_v26  ;;  %1149 = vrot.lane.b32.xlu1 %v3096_v59, %s2753_s26  ;;  %1699 = vrot.lane.b32.xlu0 %v3096_v59, %s2756_s20  ;;  %v2484_v59 = vld [vmem:[%s2864_s21 + $0x78] sm:$0x7f] }
 0x11d   : > { %v1499_v27 = vpop.permute.xlu1 %1498  ;;  %v1319_v28 = vpop.permute.xlu0 %1318 }
 0x11e   : > { %1589 = vst.msk [vmem:[#allocation2] sm:$0xff] %vm1588_vm13, %v1499_v27 }
 0x11f   : > { %1409 = vst.msk [vmem:[#allocation2 + $0x9] sm:$0x7f] %vm1408_vm14, %v1319_v28  ;;  %1701 = vrot.lane.b32.xlu1 %v2542_v49, %s2756_s20  ;;  %1151 = vrot.lane.b32.xlu0 %v1074_v21, %s2753_s26  ;;  %v1080_v49 = vld [vmem:[%s2864_s21 + $0x99] sm:$0x7f]  ;;  %v694_v28 = vld [vmem:[%s2864_s21 + $0xa0] sm:$0xff] }
 0x121   : > { %v939_v30 = vpop.permute.xlu1 %938  ;;  %v937_v31 = vpop.permute.xlu0 %936 }
 0x122   : > { %1032 = vst.msk [vmem:[#allocation2 + $0x18] sm:$0xff] %vm1028_vm9, %v939_v30  ;;  %1031 = vst.msk [vmem:[#allocation2 + $0x10] sm:$0xff] %vm1028_vm9, %v937_v31 }
 0x123   : > { %766 = vrot.lane.b32.xlu1 %v688_v29, %s2751_s24  ;;  %1340 = vrot.lane.b32.xlu0 %v688_v29, %s2754_s5 }
 0x125   : > { %v1680_v33 = vpop.permute.xlu1 %1679  ;;  %v1501_v34 = vpop.permute.xlu0 %1500 }
 0x126   : > { %1770 = vst.msk [vmem:[#allocation2] sm:$0xff] %vm1769_vm15, %v1680_v33 }
 0x127   : > { %1590 = vst.msk [vmem:[#allocation2 + $0x8] sm:$0xff] %vm1588_vm13, %v1501_v34  ;;  %1342 = vrot.lane.b32.xlu1 %v2484_v59, %s2754_s5  ;;  %768 = vrot.lane.b32.xlu0 %v689_v32, %s2751_s24  ;;  %v2490_v59 = vld [vmem:[%s2864_s21 + $0xa8] sm:$0x7f] }
 0x128   : > { %v695_v32 = vld [vmem:[%s2864_s21 + $0xa8] sm:$0x7f] }
 0x129   : > { %v1132_v35 = vpop.permute.xlu1 %1131  ;;  %v1130_v5 = vpop.permute.xlu0 %1129 }
 0x12a   : > { %1226 = vst.msk [vmem:[#allocation2 + $0x18] sm:$0x7f] %vm1223_vm11, %v1132_v35 }
 0x12b   : > { %1225 = vst.msk [vmem:[#allocation2 + $0x10] sm:$0xff] %vm1221_vm10, %v1130_v5  ;;  %960 = vrot.lane.b32.xlu1 %v688_v29, %s2752_s25  ;;  %1522 = vrot.lane.b32.xlu0 %v688_v29, %s2755_s10 }
 0x12d   : > { %v1321_v37 = vpop.permute.xlu1 %1320  ;;  %v1682_v11 = vpop.permute.xlu0 %1681  ;;  %v1801_v38 = vld [vmem:[#allocation2] sm:$0xff] }
 0x12e   : > { %1410 = vst.msk [vmem:[#allocation2 + $0x11] sm:$0xff] %vm1406_vm12, %v1321_v37  ;;  %2657 = vmatprep.mubr.msk.f32.mxu0 %vm209_vm3, %v1801_v38  ;;  %v2520_v37 = vld [vmem:[%s2864_s21 + $0xa8] sm:$0xff] }
 0x12f   : > { %1772 = vst.msk [vmem:[#allocation2 + $0x8] sm:$0x7f] %vm1771_vm0, %v1682_v11  ;;  %1524 = vrot.lane.b32.xlu1 %v2514_v36, %s2755_s10  ;;  %962 = vrot.lane.b32.xlu0 %v2514_v36, %s2752_s25 }
 0x131   : > { %v1503_v51 = vpop.permute.xlu1 %1502  ;;  %v1323_v40 = vpop.permute.xlu0 %1322 }
 0x132   : > { %1591 = vst.msk [vmem:[#allocation2 + $0x10] sm:$0xff] %vm1588_vm13, %v1503_v51 }
 0x133   : > { %1411 = vst.msk [vmem:[#allocation2 + $0x19] sm:$0x7f] %vm1408_vm14, %v1323_v40  ;;  %1153 = vrot.lane.b32.xlu1 %v1075_v39, %s2753_s26  ;;  %1703 = vrot.lane.b32.xlu0 %v1075_v39, %s2756_s20  ;;  %v1081_v39 = vld [vmem:[%s2864_s21 + $0xa1] sm:$0xff] }
 0x135   : > { %v943_v43 = vpop.permute.xlu1 %942  ;;  %v941_v44 = vpop.permute.xlu0 %940 }
 0x136   : > { %v1802_v45 = vld [vmem:[#allocation2 + $0x8] sm:$0xff]  ;;  %1034 = vst.msk [vmem:[#allocation2 + $0x28] sm:$0xff] %vm1028_vm9, %v943_v43  ;;  %1033 = vst.msk [vmem:[#allocation2 + $0x20] sm:$0xff] %vm1028_vm9, %v941_v44 }
 0x137   : > { %2658 = vmatmul.mubr.msk.f32.vlgmr.msra.gmra.mxu0 %vm209_vm3, %v1802_v45  ;;  %1705 = vrot.lane.b32.xlu1 %v2544_v41, %s2756_s20  ;;  %v2550_v41 = vld [vmem:[%s2864_s21 + $0xa9] sm:$0x7f] }
 0x138   : > { %1155 = vrot.lane.b32.xlu0 %v1076_v42, %s2753_s26  ;;  %v1082_v42 = vld [vmem:[%s2864_s21 + $0xa9] sm:$0x7f] }
 0x139   : > { %v1684_v46 = vpop.permute.xlu1 %1683  ;;  %v1505_v48 = vpop.permute.xlu0 %1504 }
 0x13a   : > { %1773 = vst.msk [vmem:[#allocation2 + $0x10] sm:$0xff] %vm1769_vm15, %v1684_v46 }
 0x13b   : > { %1592 = vst.msk [vmem:[#allocation2 + $0x18] sm:$0xff] %vm1588_vm13, %v1505_v48  ;;  %770 = vrot.lane.b32.xlu1 %v690_v6, %s2751_s24 }
 0x13c   : > { %1344 = vrot.lane.b32.xlu0 %v690_v6, %s2754_s5 }
 0x13d   : > { %v1136_v52 = vpop.permute.xlu1 %1135  ;;  %v1134_v53 = vpop.permute.xlu0 %1133 }
 0x13e   : > { %1228 = vst.msk [vmem:[#allocation2 + $0x28] sm:$0x7f] %vm1223_vm11, %v1136_v52 }
 0x13f   : > { %1227 = vst.msk [vmem:[#allocation2 + $0x20] sm:$0xff] %vm1221_vm10, %v1134_v53  ;;  %1346 = vrot.lane.b32.xlu1 %v2486_v17, %s2754_s5  ;;  %v2492_v17 = vld [vmem:[%s2864_s21 + $0xb8] sm:$0x7f] }
 0x140   : > { %772 = vrot.lane.b32.xlu0 %v691_v50, %s2751_s24  ;;  %v697_v50 = vld [vmem:[%s2864_s21 + $0xb8] sm:$0x7f] }
 0x141   : > { %v1325_v2 = vpop.permute.xlu1 %1324  ;;  %v1686_v54 = vpop.permute.xlu0 %1685  ;;  %v1803_v56 = vld [vmem:[#allocation2 + $0x10] sm:$0xff] }
 0x142   : > { %1412 = vst.msk [vmem:[#allocation2 + $0x21] sm:$0xff] %vm1406_vm12, %v1325_v2  ;;  %2660 = vmatprep.mubr.msk.f32.mxu0 %vm209_vm3, %v1803_v56 }
 0x143   : > { %1774 = vst.msk [vmem:[#allocation2 + $0x18] sm:$0x7f] %vm1771_vm0, %v1686_v54  ;;  %964 = vrot.lane.b32.xlu1 %v690_v6, %s2752_s25 }
 0x144   : > { %1526 = vrot.lane.b32.xlu0 %v690_v6, %s2755_s10  ;;  %v696_v6 = vld [vmem:[%s2864_s21 + $0xb0] sm:$0xff] }
 0x145   : > { %v1507_v60 = vpop.permute.xlu1 %1506  ;;  %v1327_v4 = vpop.permute.xlu0 %1326 }
 0x146   : > { %1593 = vst.msk [vmem:[#allocation2 + $0x20] sm:$0xff] %vm1588_vm13, %v1507_v60 }
 0x147   : > { %1413 = vst.msk [vmem:[#allocation2 + $0x29] sm:$0x7f] %vm1408_vm14, %v1327_v4  ;;  %1528 = vrot.lane.b32.xlu1 %v2516_v58, %s2755_s10 }
 0x148   : > { %966 = vrot.lane.b32.xlu0 %v2516_v58, %s2752_s25  ;;  %v2522_v58 = vld [vmem:[%s2864_s21 + $0xb8] sm:$0xff] }
 0x149   : > { %v947_v47 = vpop.permute.xlu1 %946  ;;  %v945_v61 = vpop.permute.xlu0 %944 }
 0x14a   : > { %v1804_v19 = vld [vmem:[#allocation2 + $0x18] sm:$0xff]  ;;  %1036 = vst.msk [vmem:[#allocation2 + $0x38] sm:$0xff] %vm1028_vm9, %v947_v47  ;;  %1035 = vst.msk [vmem:[#allocation2 + $0x30] sm:$0xff] %vm1028_vm9, %v945_v61 }
 0x14b   : > { %2661 = vmatmul.mubr.msk.f32.gmra.mxu0 %vm209_vm3, %v1804_v19  ;;  %1157 = vrot.lane.b32.xlu1 %v1077_v7, %s2753_s26  ;;  %v2552_v19 = vld [vmem:[%s2864_s21 + $0xb9] sm:$0x7f] }
 0x14c   : > { %1707 = vrot.lane.b32.xlu0 %v1077_v7, %s2756_s20  ;;  %v1083_v7 = vld [vmem:[%s2864_s21 + $0xb1] sm:$0xff] }
 0x14d   : > { %v1688_v55 = vpop.permute.xlu1 %1687  ;;  %v1509_v0 = vpop.permute.xlu0 %1508 }
 0x14e   : > { %1775 = vst.msk [vmem:[#allocation2 + $0x20] sm:$0xff] %vm1769_vm15, %v1688_v55 }
 0x14f   : > { %1594 = vst.msk [vmem:[#allocation2 + $0x28] sm:$0xff] %vm1588_vm13, %v1509_v0  ;;  %1709 = vrot.lane.b32.xlu1 %v2546_v62, %s2756_s20  ;;  %v1084_v62 = vld [vmem:[%s2864_s21 + $0xb9] sm:$0x7f] }
 0x150   : > { %1159 = vrot.lane.b32.xlu0 %v1078_v63, %s2753_s26 }
 0x151   : > { %v1140_v12 = vpop.permute.xlu1 %1139  ;;  %v1138_v13 = vpop.permute.xlu0 %1137 }
 0x152   : > { %1230 = vst.msk [vmem:[#allocation2 + $0x38] sm:$0x7f] %vm1223_vm11, %v1140_v12 }
 0x153   : > { %1229 = vst.msk [vmem:[#allocation2 + $0x30] sm:$0xff] %vm1221_vm10, %v1138_v13  ;;  %774 = vrot.lane.b32.xlu1 %v692_v10, %s2751_s24 }
 0x154   : > { %1348 = vrot.lane.b32.xlu0 %v692_v10, %s2754_s5 }
 0x155   : > { %v1329_v8 = vpop.permute.xlu1 %1328  ;;  %v1690_v16 = vpop.permute.xlu0 %1689  ;;  %v1805_v1 = vld [vmem:[#allocation2 + $0x20] sm:$0xff] }
 0x156   : > { %1414 = vst.msk [vmem:[#allocation2 + $0x31] sm:$0xff] %vm1406_vm12, %v1329_v8  ;;  %2663 = vmatprep.mubr.msk.f32.mxu0 %vm209_vm3, %v1805_v1  ;;  %v699_v8 = vld [vmem:[%s2864_s21 + $0xc8] sm:$0x7f] }
 0x157   : > { %1776 = vst.msk [vmem:[#allocation2 + $0x28] sm:$0x7f] %vm1771_vm0, %v1690_v16  ;;  %1350 = vrot.lane.b32.xlu1 %v2488_v14, %s2754_s5 }
 0x158   : > { %776 = vrot.lane.b32.xlu0 %v693_v15, %s2751_s24  ;;  %v2494_v15 = vld [vmem:[%s2864_s21 + $0xc8] sm:$0x7f] }
 0x159   : > { %v1511_v20 = vpop.permute.xlu1 %1510  ;;  %v1331_v18 = vpop.permute.xlu0 %1330 }
 0x15a   : > { %1595 = vst.msk [vmem:[#allocation2 + $0x30] sm:$0xff] %vm1588_vm13, %v1511_v20 }
 0x15b   : > { %1415 = vst.msk [vmem:[#allocation2 + $0x39] sm:$0x7f] %vm1408_vm14, %v1331_v18  ;;  %968 = vrot.lane.b32.xlu1 %v692_v10, %s2752_s25 }
 0x15c   : > { %1530 = vrot.lane.b32.xlu0 %v692_v10, %s2755_s10  ;;  %v698_v10 = vld [vmem:[%s2864_s21 + $0xc0] sm:$0xff] }
 0x15d   : > { %v951_v23 = vpop.permute.xlu1 %950  ;;  %v949_v57 = vpop.permute.xlu0 %948 }
 0x15e   : > { %v1806_v3 = vld [vmem:[#allocation2 + $0x28] sm:$0xff]  ;;  %1038 = vst.msk [vmem:[#allocation2 + $0x48] sm:$0xff] %vm1028_vm9, %v951_v23  ;;  %1037 = vst.msk [vmem:[#allocation2 + $0x40] sm:$0xff] %vm1028_vm9, %v949_v57 }
 0x15f   : > { %2664 = vmatmul.mubr.msk.f32.gmra.mxu0 %vm209_vm3, %v1806_v3  ;;  %1532 = vrot.lane.b32.xlu1 %v2518_v22, %s2755_s10  ;;  %v1085_v3 = vld [vmem:[%s2864_s21 + $0xc1] sm:$0xff] }
 0x160   : > { %970 = vrot.lane.b32.xlu0 %v2518_v22, %s2752_s25  ;;  %v2524_v22 = vld [vmem:[%s2864_s21 + $0xc8] sm:$0xff] }
 0x161   : > { %v1692_v25 = vpop.permute.xlu1 %1691  ;;  %v1513_v26 = vpop.permute.xlu0 %1512 }
 0x162   : > { %1777 = vst.msk [vmem:[#allocation2 + $0x30] sm:$0xff] %vm1769_vm15, %v1692_v25 }
 0x163   : > { %1596 = vst.msk [vmem:[#allocation2 + $0x38] sm:$0xff] %vm1588_vm13, %v1513_v26  ;;  %1161 = vrot.lane.b32.xlu1 %v1079_v24, %s2753_s26  ;;  %v2554_v26 = vld [vmem:[%s2864_s21 + $0xc9] sm:$0x7f] }
 0x164   : > { %1711 = vrot.lane.b32.xlu0 %v1079_v24, %s2756_s20 }
 0x165   : > { %v1144_v21 = vpop.permute.xlu1 %1143  ;;  %v1142_v27 = vpop.permute.xlu0 %1141 }
 0x166   : > { %1232 = vst.msk [vmem:[#allocation2 + $0x48] sm:$0x7f] %vm1223_vm11, %v1144_v21 }
 0x167   : > { %1231 = vst.msk [vmem:[#allocation2 + $0x40] sm:$0xff] %vm1221_vm10, %v1142_v27  ;;  %1713 = vrot.lane.b32.xlu1 %v2548_v9, %s2756_s20  ;;  %v1086_v9 = vld [vmem:[%s2864_s21 + $0xc9] sm:$0x7f] }
 0x168   : > { %1163 = vrot.lane.b32.xlu0 %v1080_v49, %s2753_s26 }
 0x169   : > { %v1333_v29 = vpop.permute.xlu1 %1332  ;;  %v1694_v30 = vpop.permute.xlu0 %1693  ;;  %v1807_v31 = vld [vmem:[#allocation2 + $0x30] sm:$0xff] }
 0x16a   : > { %1416 = vst.msk [vmem:[#allocation2 + $0x41] sm:$0xff] %vm1406_vm12, %v1333_v29  ;;  %2666 = vmatprep.mubr.msk.f32.mxu0 %vm209_vm3, %v1807_v31 }
 0x16b   : > { %1778 = vst.msk [vmem:[#allocation2 + $0x38] sm:$0x7f] %vm1771_vm0, %v1694_v30  ;;  %778 = vrot.lane.b32.xlu1 %v694_v28, %s2751_s24 }
 0x16c   : > { %1352 = vrot.lane.b32.xlu0 %v694_v28, %s2754_s5 }
 0x16d   : > { %v1515_v33 = vpop.permute.xlu1 %1514  ;;  %v1335_v34 = vpop.permute.xlu0 %1334 }
 0x16e   : > { %1597 = vst.msk [vmem:[#allocation2 + $0x40] sm:$0xff] %vm1588_vm13, %v1515_v33 }
 0x16f   : > { %1417 = vst.msk [vmem:[#allocation2 + $0x49] sm:$0x7f] %vm1408_vm14, %v1335_v34  ;;  %1354 = vrot.lane.b32.xlu1 %v2490_v59, %s2754_s5  ;;  %v2496_v59 = vld [vmem:[%s2864_s21 + $0xd8] sm:$0x7f] }
 0x170   : > { %780 = vrot.lane.b32.xlu0 %v695_v32, %s2751_s24  ;;  %v701_v32 = vld [vmem:[%s2864_s21 + $0xd8] sm:$0x7f] }
 0x171   : > { %v955_v35 = vpop.permute.xlu1 %954  ;;  %v953_v5 = vpop.permute.xlu0 %952 }
 0x172   : > { %v1808_v36 = vld [vmem:[#allocation2 + $0x38] sm:$0xff]  ;;  %1040 = vst.msk [vmem:[#allocation2 + $0x58] sm:$0xff] %vm1028_vm9, %v955_v35  ;;  %1039 = vst.msk [vmem:[#allocation2 + $0x50] sm:$0xff] %vm1028_vm9, %v953_v5 }
 0x173   : > { %2667 = vmatmul.mubr.msk.f32.gmra.mxu0 %vm209_vm3, %v1808_v36  ;;  %972 = vrot.lane.b32.xlu1 %v694_v28, %s2752_s25  ;;  %v2526_v36 = vld [vmem:[%s2864_s21 + $0xd8] sm:$0xff] }
 0x174   : > { %1534 = vrot.lane.b32.xlu0 %v694_v28, %s2755_s10  ;;  %v700_v28 = vld [vmem:[%s2864_s21 + $0xd0] sm:$0xff] }
 0x175   : > { %v1696_v11 = vpop.permute.xlu1 %1695  ;;  %v1517_v38 = vpop.permute.xlu0 %1516 }
 0x176   : > { %1779 = vst.msk [vmem:[#allocation2 + $0x40] sm:$0xff] %vm1769_vm15, %v1696_v11 }
 0x177   : > { %1598 = vst.msk [vmem:[#allocation2 + $0x48] sm:$0xff] %vm1588_vm13, %v1517_v38  ;;  %1536 = vrot.lane.b32.xlu1 %v2520_v37, %s2755_s10  ;;  %v1087_v38 = vld [vmem:[%s2864_s21 + $0xd1] sm:$0xff] }
 0x178   : > { %974 = vrot.lane.b32.xlu0 %v2520_v37, %s2752_s25 }
 0x179   : > { %v1148_v51 = vpop.permute.xlu1 %1147  ;;  %v1146_v40 = vpop.permute.xlu0 %1145 }
 0x17a   : > { %1234 = vst.msk [vmem:[#allocation2 + $0x58] sm:$0x7f] %vm1223_vm11, %v1148_v51 }
 0x17b   : > { %1233 = vst.msk [vmem:[#allocation2 + $0x50] sm:$0xff] %vm1221_vm10, %v1146_v40  ;;  %1165 = vrot.lane.b32.xlu1 %v1081_v39, %s2753_s26  ;;  %v2556_v40 = vld [vmem:[%s2864_s21 + $0xd9] sm:$0x7f] }
 0x17c   : > { %1715 = vrot.lane.b32.xlu0 %v1081_v39, %s2756_s20 }
 0x17d   : > { %v1337_v43 = vpop.permute.xlu1 %1336  ;;  %v1698_v44 = vpop.permute.xlu0 %1697  ;;  %v1809_v45 = vld [vmem:[#allocation2 + $0x40] sm:$0xff] }
 0x17e   : > { %1418 = vst.msk [vmem:[#allocation2 + $0x51] sm:$0xff] %vm1406_vm12, %v1337_v43  ;;  %2669 = vmatprep.mubr.msk.f32.mxu0 %vm209_vm3, %v1809_v45  ;;  %v702_v45 = vld [vmem:[%s2864_s21 + $0xe0] sm:$0xff] }
 0x17f   : > { %1780 = vst.msk [vmem:[#allocation2 + $0x48] sm:$0x7f] %vm1771_vm0, %v1698_v44  ;;  %1717 = vrot.lane.b32.xlu1 %v2550_v41, %s2756_s20  ;;  %v1088_v41 = vld [vmem:[%s2864_s21 + $0xd9] sm:$0x7f] }
 0x180   : > { %1167 = vrot.lane.b32.xlu0 %v1082_v42, %s2753_s26 }
 0x181   : > { %v1339_v46 = vpop.permute.xlu1 %1338  ;;  %v765_v48 = vpop.permute.xlu0 %764 }
 0x182   : > { %1419 = vst.msk [vmem:[#allocation2 + $0x59] sm:$0x7f] %vm1408_vm14, %v1339_v46 }
 0x183   : > { %849 = vst.msk [vmem:[#allocation2 + $0x69] sm:$0x7f] %vm836_vm7, %v765_v48  ;;  %782 = vrot.lane.b32.xlu1 %v696_v6, %s2751_s24 }
 0x184   : > { %1356 = vrot.lane.b32.xlu0 %v696_v6, %s2754_s5 }
 0x185   : > { %v957_v52 = vpop.permute.xlu1 %956  ;;  %v1519_v53 = vpop.permute.xlu0 %1518 }
 0x186   : > { %v1810_v2 = vld [vmem:[#allocation2 + $0x48] sm:$0xff]  ;;  %1041 = vst.msk [vmem:[#allocation2 + $0x60] sm:$0xff] %vm1028_vm9, %v957_v52 }
 0x187   : > { %1599 = vst.msk [vmem:[#allocation2 + $0x50] sm:$0xff] %vm1588_vm13, %v1519_v53  ;;  %2670 = vmatmul.mubr.msk.f32.gmra.mxu0 %vm209_vm3, %v1810_v2  ;;  %1358 = vrot.lane.b32.xlu1 %v2492_v17, %s2754_s5  ;;  %v2498_v17 = vld [vmem:[%s2864_s21 + $0xe8] sm:$0x7f] }
 0x188   : > { %784 = vrot.lane.b32.xlu0 %v697_v50, %s2751_s24  ;;  %v703_v50 = vld [vmem:[%s2864_s21 + $0xe8] sm:$0x7f] }
 0x189   : > { %v1521_v54 = vpop.permute.xlu1 %1520  ;;  %v959_v56 = vpop.permute.xlu0 %958 }
 0x18a   : > { %1600 = vst.msk [vmem:[#allocation2 + $0x58] sm:$0xff] %vm1588_vm13, %v1521_v54 }
 0x18b   : > { %1042 = vst.msk [vmem:[#allocation2 + $0x68] sm:$0xff] %vm1028_vm9, %v959_v56  ;;  %976 = vrot.lane.b32.xlu1 %v696_v6, %s2752_s25  ;;  %v2528_v56 = vld [vmem:[%s2864_s21 + $0xe8] sm:$0xff] }
 0x18c   : > { %1538 = vrot.lane.b32.xlu0 %v696_v6, %s2755_s10 }
 0x18d   : > { %v1150_v60 = vpop.permute.xlu1 %1149  ;;  %v1700_v4 = vpop.permute.xlu0 %1699 }
 0x18e   : > { %1235 = vst.msk [vmem:[#allocation2 + $0x60] sm:$0xff] %vm1221_vm10, %v1150_v60 }
 0x18f   : > { %1781 = vst.msk [vmem:[#allocation2 + $0x50] sm:$0xff] %vm1769_vm15, %v1700_v4  ;;  %1540 = vrot.lane.b32.xlu1 %v2522_v58, %s2755_s10  ;;  %v1089_v4 = vld [vmem:[%s2864_s21 + $0xe1] sm:$0xff] }
 0x190   : > { %978 = vrot.lane.b32.xlu0 %v2522_v58, %s2752_s25 }
 0x191   : > { %v1702_v47 = vpop.permute.xlu1 %1701  ;;  %v1152_v61 = vpop.permute.xlu0 %1151 }
 0x192   : > { %1782 = vst.msk [vmem:[#allocation2 + $0x58] sm:$0x7f] %vm1771_vm0, %v1702_v47 }
 0x193   : > { %1236 = vst.msk [vmem:[#allocation2 + $0x68] sm:$0x7f] %vm1223_vm11, %v1152_v61  ;;  %1169 = vrot.lane.b32.xlu1 %v1083_v7, %s2753_s26  ;;  %v2558_v61 = vld [vmem:[%s2864_s21 + $0xe9] sm:$0x7f] }
 0x194   : > { %1719 = vrot.lane.b32.xlu0 %v1083_v7, %s2756_s20 }
 0x195   : > { %v767_v63 = vpop.permute.xlu1 %766  ;;  %v1341_v55 = vpop.permute.xlu0 %1340 }
 0x196   : > { %v1811_v0 = vld [vmem:[#allocation2 + $0x50] sm:$0xff]  ;;  %850 = vst.msk [vmem:[#allocation2 + $0x71] sm:$0xff] %vm834_vm8, %v767_v63 }
 0x197   : > { %1420 = vst.msk [vmem:[#allocation2 + $0x61] sm:$0xff] %vm1406_vm12, %v1341_v55  ;;  %2672 = vmatprep.mubr.msk.f32.mxu0 %vm209_vm3, %v1811_v0  ;;  %1721 = vrot.lane.b32.xlu1 %v2552_v19, %s2756_s20  ;;  %v1090_v19 = vld [vmem:[%s2864_s21 + $0xe9] sm:$0x7f]  ;;  %v2500_v0 = vld [vmem:[%s2864_s21 + $0xf8] sm:$0x7f] }
 0x198   : > { %1171 = vrot.lane.b32.xlu0 %v1084_v62, %s2753_s26 }
 0x199   : > { %v1343_v12 = vpop.permute.xlu1 %1342  ;;  %v769_v13 = vpop.permute.xlu0 %768  ;;  %v1812_v14 = vld [vmem:[#allocation2 + $0x58] sm:$0xff] }
 0x19a   : > { %1421 = vst.msk [vmem:[#allocation2 + $0x69] sm:$0x7f] %vm1408_vm14, %v1343_v12  ;;  %2673 = vmatmul.mubr.msk.f32.gmra.mxu0 %vm209_vm3, %v1812_v14 }
 0x19b   : > { %851 = vst.msk [vmem:[#allocation2 + $0x79] sm:$0x7f] %vm836_vm7, %v769_v13  ;;  %786 = vrot.lane.b32.xlu1 %v698_v10, %s2751_s24 }
 0x19c   : > { %1360 = vrot.lane.b32.xlu0 %v698_v10, %s2754_s5 }
 0x19d   : > { %v961_v16 = vpop.permute.xlu1 %960  ;;  %v1523_v1 = vpop.permute.xlu0 %1522 }
 0x19e   : > { %1043 = vst.msk [vmem:[#allocation2 + $0x70] sm:$0xff] %vm1028_vm9, %v961_v16 }
 0x19f   : > { %1601 = vst.msk [vmem:[#allocation2 + $0x60] sm:$0xff] %vm1588_vm13, %v1523_v1  ;;  %1362 = vrot.lane.b32.xlu1 %v2494_v15, %s2754_s5  ;;  %v2530_v15 = vld [vmem:[%s2864_s21 + $0xf8] sm:$0xff] }
 0x1a0   : > { %788 = vrot.lane.b32.xlu0 %v699_v8, %s2751_s24  ;;  %v2560_v1 = vld [vmem:[%s2864_s21 + $0xf9] sm:$0x7f] }
 0x1a1   : > { %v1525_v20 = vpop.permute.xlu1 %1524  ;;  %v963_v18 = vpop.permute.xlu0 %962 }
 0x1a2   : > { %1602 = vst.msk [vmem:[#allocation2 + $0x68] sm:$0xff] %vm1588_vm13, %v1525_v20  ;;  %v2559_v20 = vld [vmem:[%s2864_s21 + $0xf1] sm:$0xff] }
 0x1a3   : > { %1044 = vst.msk [vmem:[#allocation2 + $0x78] sm:$0xff] %vm1028_vm9, %v963_v18  ;;  %980 = vrot.lane.b32.xlu1 %v698_v10, %s2752_s25 }
 0x1a4   : > { %1542 = vrot.lane.b32.xlu0 %v698_v10, %s2755_s10  ;;  %v2499_v10 = vld [vmem:[%s2864_s21 + $0xf0] sm:$0xff] }
 0x1a5   : > { %v1154_v23 = vpop.permute.xlu1 %1153  ;;  %v1704_v57 = vpop.permute.xlu0 %1703 }
 0x1a6   : > { %1237 = vst.msk [vmem:[#allocation2 + $0x70] sm:$0xff] %vm1221_vm10, %v1154_v23  ;;  %v705_v23 = vld [vmem:[%s2864_s21 + $0xf8] sm:$0x7f] }
 0x1a7   : > { %1783 = vst.msk [vmem:[#allocation2 + $0x60] sm:$0xff] %vm1769_vm15, %v1704_v57  ;;  %1544 = vrot.lane.b32.xlu1 %v2524_v22, %s2755_s10 }
 0x1a8   : > { %982 = vrot.lane.b32.xlu0 %v2524_v22, %s2752_s25 }
 0x1a9   : > { %v1706_v24 = vpop.permute.xlu1 %1705 }
 0x1aa   : > { %v1156_v25 = vpop.permute.xlu0 %1155  ;;  %1784 = vst.msk [vmem:[#allocation2 + $0x68] sm:$0x7f] %vm1771_vm0, %v1706_v24 }
 0x1ab   : > { %1238 = vst.msk [vmem:[#allocation2 + $0x78] sm:$0x7f] %vm1223_vm11, %v1156_v25  ;;  %1173 = vrot.lane.b32.xlu1 %v1085_v3, %s2753_s26 }
 0x1ac   : > { %1723 = vrot.lane.b32.xlu0 %v1085_v3, %s2756_s20 }
 0x1ad   : > { %v771_v49 = vpop.permute.xlu1 %770 }
 0x1ae   : > { %v1345_v21 = vpop.permute.xlu0 %1344  ;;  %v1813_v27 = vld [vmem:[#allocation2 + $0x60] sm:$0xff]  ;;  %852 = vst.msk [vmem:[#allocation2 + $0x81] sm:$0xff] %vm834_vm8, %v771_v49 }
 0x1af   : > { %1422 = vst.msk [vmem:[#allocation2 + $0x71] sm:$0xff] %vm1406_vm12, %v1345_v21  ;;  %2675 = vmatprep.mubr.msk.f32.mxu0 %vm209_vm3, %v1813_v27  ;;  %1725 = vrot.lane.b32.xlu1 %v2554_v26, %s2756_s20  ;;  %v3691_v26 = vld [vmem:[%s3946_s2] ss:$0 sm:$0xff] }
 0x1b0   : > { %1175 = vrot.lane.b32.xlu0 %v1086_v9, %s2753_s26  ;;  %v1092_v9 = vld [vmem:[%s2864_s21 + $0xf9] sm:$0x7f] }
 0x1b1   : > { %v1347_v29 = vpop.permute.xlu1 %1346  ;;  %v1814_v31 = vld [vmem:[#allocation2 + $0x68] sm:$0xff] }
 0x1b2   : > { %v773_v30 = vpop.permute.xlu0 %772  ;;  %1423 = vst.msk [vmem:[#allocation2 + $0x79] sm:$0x7f] %vm1408_vm14, %v1347_v29  ;;  %2676 = vmatmul.mubr.msk.f32.gmra.mxu0 %vm209_vm3, %v1814_v31 }
 0x1b3   : > { %853 = vst.msk [vmem:[#allocation2 + $0x89] sm:$0x7f] %vm836_vm7, %v773_v30  ;;  %790 = vrot.lane.b32.xlu1 %v700_v28, %s2751_s24 }
 0x1b4   : > { %1364 = vrot.lane.b32.xlu0 %v700_v28, %s2754_s5 }
 0x1b5   : > { %v965_v33 = vpop.permute.xlu1 %964 }
 0x1b6   : > { %v1527_v34 = vpop.permute.xlu0 %1526  ;;  %1045 = vst.msk [vmem:[#allocation2 + $0x80] sm:$0xff] %vm1028_vm9, %v965_v33 }
 0x1b7   : > { %1603 = vst.msk [vmem:[#allocation2 + $0x70] sm:$0xff] %vm1588_vm13, %v1527_v34  ;;  %1366 = vrot.lane.b32.xlu1 %v2496_v59, %s2754_s5 }
 0x1b8   : > { %792 = vrot.lane.b32.xlu0 %v701_v32, %s2751_s24 }
 0x1b9   : > { %v1529_v35 = vpop.permute.xlu1 %1528 }
 0x1ba   : > { %v967_v5 = vpop.permute.xlu0 %966  ;;  %1604 = vst.msk [vmem:[#allocation2 + $0x78] sm:$0xff] %vm1588_vm13, %v1529_v35 }
 0x1bb   : > { %1046 = vst.msk [vmem:[#allocation2 + $0x88] sm:$0xff] %vm1028_vm9, %v967_v5  ;;  %984 = vrot.lane.b32.xlu1 %v700_v28, %s2752_s25 }
 0x1bc   : > { %1546 = vrot.lane.b32.xlu0 %v700_v28, %s2755_s10 }
 0x1bd   : > { %v1158_v37 = vpop.permute.xlu1 %1157 }
 0x1be   : > { %v1708_v11 = vpop.permute.xlu0 %1707  ;;  %1239 = vst.msk [vmem:[#allocation2 + $0x80] sm:$0xff] %vm1221_vm10, %v1158_v37 }
 0x1bf   : > { %1785 = vst.msk [vmem:[#allocation2 + $0x70] sm:$0xff] %vm1769_vm15, %v1708_v11  ;;  %1548 = vrot.lane.b32.xlu1 %v2526_v36, %s2755_s10 }
 0x1c0   : > { %986 = vrot.lane.b32.xlu0 %v2526_v36, %s2752_s25 }
 0x1c1   : > { %v1710_v39 = vpop.permute.xlu1 %1709 }
 0x1c2   : > { %v1160_v51 = vpop.permute.xlu0 %1159  ;;  %1786 = vst.msk [vmem:[#allocation2 + $0x78] sm:$0x7f] %vm1771_vm0, %v1710_v39 }
 0x1c3   : > { %1240 = vst.msk [vmem:[#allocation2 + $0x88] sm:$0x7f] %vm1223_vm11, %v1160_v51  ;;  %1177 = vrot.lane.b32.xlu1 %v1087_v38, %s2753_s26 }
 0x1c4   : > { %1727 = vrot.lane.b32.xlu0 %v1087_v38, %s2756_s20 }
 0x1c5   : > { %v775_v42 = vpop.permute.xlu1 %774 }
 0x1c6   : > { %v1349_v43 = vpop.permute.xlu0 %1348  ;;  %v1815_v44 = vld [vmem:[#allocation2 + $0x70] sm:$0xff]  ;;  %854 = vst.msk [vmem:[#allocation2 + $0x91] sm:$0xff] %vm834_vm8, %v775_v42 }
 0x1c7   : > { %1424 = vst.msk [vmem:[#allocation2 + $0x81] sm:$0xff] %vm1406_vm12, %v1349_v43  ;;  %2678 = vmatprep.mubr.msk.f32.mxu0 %vm209_vm3, %v1815_v44  ;;  %1729 = vrot.lane.b32.xlu1 %v2556_v40, %s2756_s20 }
 0x1c8   : > { %1179 = vrot.lane.b32.xlu0 %v1088_v41, %s2753_s26 }
 0x1c9   : > { %v1351_v6 = vpop.permute.xlu1 %1350  ;;  %v1816_v48 = vld [vmem:[#allocation2 + $0x78] sm:$0xff] }
 0x1ca   : > { %v777_v46 = vpop.permute.xlu0 %776  ;;  %1425 = vst.msk [vmem:[#allocation2 + $0x89] sm:$0x7f] %vm1408_vm14, %v1351_v6  ;;  %2679 = vmatmul.mubr.msk.f32.gmra.mxu0 %vm209_vm3, %v1816_v48 }
 0x1cb   : > { %855 = vst.msk [vmem:[#allocation2 + $0x99] sm:$0x7f] %vm836_vm7, %v777_v46  ;;  %794 = vrot.lane.b32.xlu1 %v702_v45, %s2751_s24 }
 0x1cc   : > { %1368 = vrot.lane.b32.xlu0 %v702_v45, %s2754_s5 }
 0x1cd   : > { %v969_v52 = vpop.permute.xlu1 %968 }
 0x1ce   : > { %v1531_v53 = vpop.permute.xlu0 %1530  ;;  %1047 = vst.msk [vmem:[#allocation2 + $0x90] sm:$0xff] %vm1028_vm9, %v969_v52 }
 0x1cf   : > { %1605 = vst.msk [vmem:[#allocation2 + $0x80] sm:$0xff] %vm1588_vm13, %v1531_v53  ;;  %1370 = vrot.lane.b32.xlu1 %v2498_v17, %s2754_s5 }
 0x1d0   : > { %796 = vrot.lane.b32.xlu0 %v703_v50, %s2751_s24 }
 0x1d1   : > { %v1533_v2 = vpop.permute.xlu1 %1532 }
 0x1d2   : > { %v971_v54 = vpop.permute.xlu0 %970  ;;  %1606 = vst.msk [vmem:[#allocation2 + $0x88] sm:$0xff] %vm1588_vm13, %v1533_v2 }
 0x1d3   : > { %1048 = vst.msk [vmem:[#allocation2 + $0x98] sm:$0xff] %vm1028_vm9, %v971_v54  ;;  %988 = vrot.lane.b32.xlu1 %v702_v45, %s2752_s25 }
 0x1d4   : > { %1550 = vrot.lane.b32.xlu0 %v702_v45, %s2755_s10 }
 0x1d5   : > { %v1162_v58 = vpop.permute.xlu1 %1161 }
 0x1d6   : > { %v1712_v60 = vpop.permute.xlu0 %1711  ;;  %1241 = vst.msk [vmem:[#allocation2 + $0x90] sm:$0xff] %vm1221_vm10, %v1162_v58 }
 0x1d7   : > { %1787 = vst.msk [vmem:[#allocation2 + $0x80] sm:$0xff] %vm1769_vm15, %v1712_v60  ;;  %1552 = vrot.lane.b32.xlu1 %v2528_v56, %s2755_s10 }
 0x1d8   : > { %990 = vrot.lane.b32.xlu0 %v2528_v56, %s2752_s25 }
 0x1d9   : > { %v1714_v7 = vpop.permute.xlu1 %1713 }
 0x1da   : > { %v1164_v47 = vpop.permute.xlu0 %1163  ;;  %1788 = vst.msk [vmem:[#allocation2 + $0x88] sm:$0x7f] %vm1771_vm0, %v1714_v7 }
 0x1db   : > { %1242 = vst.msk [vmem:[#allocation2 + $0x98] sm:$0x7f] %vm1223_vm11, %v1164_v47  ;;  %1181 = vrot.lane.b32.xlu1 %v1089_v4, %s2753_s26 }
 0x1dc   : > { %1731 = vrot.lane.b32.xlu0 %v1089_v4, %s2756_s20 }
 0x1dd   : > { %v779_v62 = vpop.permute.xlu1 %778 }
 0x1de   : > { %v1353_v63 = vpop.permute.xlu0 %1352  ;;  %v1817_v55 = vld [vmem:[#allocation2 + $0x80] sm:$0xff]  ;;  %856 = vst.msk [vmem:[#allocation2 + $0xa1] sm:$0xff] %vm834_vm8, %v779_v62 }
 0x1df   : > { %1426 = vst.msk [vmem:[#allocation2 + $0x91] sm:$0xff] %vm1406_vm12, %v1353_v63  ;;  %2681 = vmatprep.mubr.msk.f32.mxu1 %vm209_vm3, %v1817_v55  ;;  %1733 = vrot.lane.b32.xlu1 %v2558_v61, %s2756_s20 }
 0x1e0   : > { %1183 = vrot.lane.b32.xlu0 %v1090_v19, %s2753_s26 }
 0x1e1   : > { %v1355_v12 = vpop.permute.xlu1 %1354  ;;  %v1818_v14 = vld [vmem:[#allocation2 + $0x88] sm:$0xff] }
 0x1e2   : > { %v781_v13 = vpop.permute.xlu0 %780  ;;  %1427 = vst.msk [vmem:[#allocation2 + $0x99] sm:$0x7f] %vm1408_vm14, %v1355_v12  ;;  %2682 = vmatmul.mubr.msk.f32.vlgmr.msra.gmra.mxu1 %vm209_vm3, %v1818_v14 }
 0x1e3   : > { %857 = vst.msk [vmem:[#allocation2 + $0xa9] sm:$0x7f] %vm836_vm7, %v781_v13  ;;  %1374 = vrot.lane.b32.xlu1 %v2500_v0, %s2754_s5 }
 0x1e4   : > { %1372 = vrot.lane.b32.xlu0 %v2499_v10, %s2754_s5 }
 0x1e5   : > { %v973_v8 = vpop.permute.xlu1 %972 }
 0x1e6   : > { %v1535_v16 = vpop.permute.xlu0 %1534  ;;  %1049 = vst.msk [vmem:[#allocation2 + $0xa0] sm:$0xff] %vm1028_vm9, %v973_v8 }
 0x1e7   : > { %1607 = vst.msk [vmem:[#allocation2 + $0x90] sm:$0xff] %vm1588_vm13, %v1535_v16  ;;  %1556 = vrot.lane.b32.xlu1 %v2530_v15, %s2755_s10 }
 0x1e8   : > { %1554 = vrot.lane.b32.xlu0 %v2499_v10, %s2755_s10 }
 0x1e9   : > { %v1537_v18 = vpop.permute.xlu1 %1536 }
 0x1ea   : > { %v975_v22 = vpop.permute.xlu0 %974  ;;  %1608 = vst.msk [vmem:[#allocation2 + $0x98] sm:$0xff] %vm1588_vm13, %v1537_v18 }
 0x1eb   : > { %1050 = vst.msk [vmem:[#allocation2 + $0xa8] sm:$0xff] %vm1028_vm9, %v975_v22  ;;  %1737 = vrot.lane.b32.xlu1 %v2560_v1, %s2756_s20 }
 0x1ec   : > { %1735 = vrot.lane.b32.xlu0 %v2559_v20, %s2756_s20 }
 0x1ed   : > { %v1166_v57 = vpop.permute.xlu1 %1165 }
 0x1ee   : > { %v1716_v3 = vpop.permute.xlu0 %1715  ;;  %1243 = vst.msk [vmem:[#allocation2 + $0xa0] sm:$0xff] %vm1221_vm10, %v1166_v57 }
 0x1ef   : > { %1789 = vst.msk [vmem:[#allocation2 + $0x90] sm:$0xff] %vm1769_vm15, %v1716_v3  ;;  %800 = vrot.lane.b32.xlu1 %v705_v23, %s2751_s24 }
 0x1f0   : > { %798 = vrot.lane.b32.xlu0 %v2499_v10, %s2751_s24 }
 0x1f1   : > { %v1718_v24 = vpop.permute.xlu1 %1717 }
 0x1f2   : > { %v1168_v25 = vpop.permute.xlu0 %1167  ;;  %1790 = vst.msk [vmem:[#allocation2 + $0x98] sm:$0x7f] %vm1771_vm0, %v1718_v24 }
 0x1f3   : > { %1244 = vst.msk [vmem:[#allocation2 + $0xa8] sm:$0x7f] %vm1223_vm11, %v1168_v25  ;;  %994 = vrot.lane.b32.xlu1 %v2530_v15, %s2752_s25 }
 0x1f4   : > { %992 = vrot.lane.b32.xlu0 %v2499_v10, %s2752_s25 }
 0x1f5   : > { %v783_v49 = vpop.permute.xlu1 %782 }
 0x1f6   : > { %v1357_v21 = vpop.permute.xlu0 %1356  ;;  %v1819_v27 = vld [vmem:[#allocation2 + $0x90] sm:$0xff]  ;;  %858 = vst.msk [vmem:[#allocation2 + $0xb1] sm:$0xff] %vm834_vm8, %v783_v49 }
 0x1f7   : > { %1428 = vst.msk [vmem:[#allocation2 + $0xa1] sm:$0xff] %vm1406_vm12, %v1357_v21  ;;  %v2659_v28 = vpop.f32.mrf.mxu0  ;;  %2684 = vmatprep.mubr.msk.f32.mxu1 %vm209_vm3, %v1819_v27  ;;  %1187 = vrot.lane.b32.xlu1 %v1092_v9, %s2753_s26 }
 0x1f8   : > { %v2017_v29 = vadd.f32 %v2659_v28, %v3691_v26  ;;  %1185 = vrot.lane.b32.xlu0 %v2559_v20, %s2753_s26  ;;  %s208_s26 = scalar_lea.vmem %s3948_s4, %s2470_s18 }
 0x1f9   : > { %v2011_v30 = vpop.f32.mrf.mxu0  ;;  %v1359_v32 = vpop.permute.xlu1 %1358  ;;  %v1820_v34 = vld [vmem:[#allocation2 + $0x98] sm:$0xff] }
 0x1fa   : > { %v2242_v31 = vmul.f32 %v2017_v29, %v2017_v29  ;;  %2344 = vst.msk [vmem:[%s3701_s6 + $0x8] sm:$0xff] %vm279_vm1, %v2017_v29  ;;  %v2012_v59 = vadd.f32 %v3691_v26, %v2011_v30  ;;  %v785_v33 = vpop.permute.xlu0 %784  ;;  %2685 = vmatmul.mubr.msk.f32.gmra.mxu1 %vm209_vm3, %v1820_v34  ;;  %v2171_v35 = vsel %vm279_vm1, %v2017_v29, 0.0 }
 0x1fb   : > { %1429 = vst.msk [vmem:[#allocation2 + $0xa9] sm:$0x7f] %vm1408_vm14, %v1359_v32 }
 0x1fc   : > { %859 = vst.msk [vmem:[#allocation2 + $0xb9] sm:$0x7f] %vm836_vm7, %v785_v33  ;;  %v2170_v5 = vsel %vm279_vm1, %v2012_v59, 0.0  ;;  %v2241_v36 = vmul.f32 %v2012_v59, %v2012_v59  ;;  %v2274_v11 = vsel %vm279_vm1, %v2242_v31, 0.0 }
 0x1fd   : > { %2343 = vst.msk [vmem:[%s3701_s6] sm:$0xff] %vm279_vm1, %v2012_v59  ;;  %v2172_v37 = vadd.f32 %v2171_v35, %v2170_v5  ;;  %v977_v39 = vpop.permute.xlu1 %976 }
 0x1fe   : > { %v2273_v38 = vsel %vm279_vm1, %v2241_v36, 0.0  ;;  %v1539_v51 = vpop.permute.xlu0 %1538  ;;  %1051 = vst.msk [vmem:[#allocation2 + $0xb0] sm:$0xff] %vm1028_vm9, %v977_v39 }
 0x1ff   : > { %v2275_v40 = vadd.f32 %v2274_v11, %v2273_v38  ;;  %1609 = vst.msk [vmem:[#allocation2 + $0xa0] sm:$0xff] %vm1588_vm13, %v1539_v51 }
 0x201   : > { %v1541_v41 = vpop.permute.xlu1 %1540 }
 0x202   : > { %v979_v42 = vpop.permute.xlu0 %978  ;;  %1610 = vst.msk [vmem:[#allocation2 + $0xa8] sm:$0xff] %vm1588_vm13, %v1541_v41 }
 0x203   : > { %1052 = vst.msk [vmem:[#allocation2 + $0xb8] sm:$0xff] %vm1028_vm9, %v979_v42 }
 0x205   : > { %v1170_v43 = vpop.permute.xlu1 %1169 }
 0x206   : > { %v1720_v44 = vpop.permute.xlu0 %1719  ;;  %1245 = vst.msk [vmem:[#allocation2 + $0xb0] sm:$0xff] %vm1221_vm10, %v1170_v43 }
 0x207   : > { %1791 = vst.msk [vmem:[#allocation2 + $0xa0] sm:$0xff] %vm1769_vm15, %v1720_v44 }
 0x209   : > { %v1722_v45 = vpop.permute.xlu1 %1721 }
 0x20a   : > { %v1172_v6 = vpop.permute.xlu0 %1171  ;;  %1792 = vst.msk [vmem:[#allocation2 + $0xa8] sm:$0x7f] %vm1771_vm0, %v1722_v45 }
 0x20b   : > { %1246 = vst.msk [vmem:[#allocation2 + $0xb8] sm:$0x7f] %vm1223_vm11, %v1172_v6  ;;  %v2662_v46 = vpop.f32.mrf.mxu0 }
 0x20c   : > { %v2027_v48 = vadd.f32 %v2662_v46, %v3691_v26 }
 0x20d   : > { %v2021_v17 = vpop.f32.mrf.mxu0  ;;  %v787_v52 = vpop.permute.xlu1 %786 }
 0x20e   : > { %2346 = vst.msk [vmem:[%s3701_s6 + $0x18] sm:$0xff] %vm279_vm1, %v2027_v48  ;;  %v2022_v50 = vadd.f32 %v3691_v26, %v2021_v17  ;;  %v1361_v53 = vpop.permute.xlu0 %1360  ;;  %v1821_v2 = vld [vmem:[#allocation2 + $0xa0] sm:$0xff]  ;;  %v2244_v54 = vmul.f32 %v2027_v48, %v2027_v48  ;;  %v2175_v4 = vsel %vm279_vm1, %v2027_v48, 0.0 }
 0x20f   : > { %860 = vst.msk [vmem:[#allocation2 + $0xc1] sm:$0xff] %vm834_vm8, %v787_v52  ;;  %2687 = vmatprep.mubr.msk.f32.mxu1 %vm209_vm3, %v1821_v2 }
 0x210   : > { %1430 = vst.msk [vmem:[#allocation2 + $0xb1] sm:$0xff] %vm1406_vm12, %v1361_v53  ;;  %v2173_v56 = vsel %vm279_vm1, %v2022_v50, 0.0  ;;  %v2243_v58 = vmul.f32 %v2022_v50, %v2022_v50  ;;  %v2278_v55 = vsel %vm279_vm1, %v2244_v54, 0.0 }
 0x211   : > { %2345 = vst.msk [vmem:[%s3701_s6 + $0x10] sm:$0xff] %vm279_vm1, %v2022_v50  ;;  %v2174_v60 = vadd.f32 %v2173_v56, %v2172_v37  ;;  %v1363_v47 = vpop.permute.xlu1 %1362  ;;  %v1822_v19 = vld [vmem:[#allocation2 + $0xa8] sm:$0xff] }
 0x212   : > { %v2276_v7 = vsel %vm279_vm1, %v2243_v58, 0.0  ;;  %v789_v61 = vpop.permute.xlu0 %788  ;;  %1431 = vst.msk [vmem:[#allocation2 + $0xb9] sm:$0x7f] %vm1408_vm14, %v1363_v47  ;;  %2688 = vmatmul.mubr.msk.f32.gmra.mxu1 %vm209_vm3, %v1822_v19 }
 0x213   : > { %v2277_v62 = vadd.f32 %v2276_v7, %v2275_v40  ;;  %861 = vst.msk [vmem:[#allocation2 + $0xc9] sm:$0x7f] %vm836_vm7, %v789_v61  ;;  %v2176_v63 = vadd.f32 %v2175_v4, %v2174_v60 }
 0x215   : > { %v2279_v0 = vadd.f32 %v2278_v55, %v2277_v62  ;;  %v981_v10 = vpop.permute.xlu1 %980 }
 0x216   : > { %v1543_v12 = vpop.permute.xlu0 %1542  ;;  %1053 = vst.msk [vmem:[#allocation2 + $0xc0] sm:$0xff] %vm1028_vm9, %v981_v10 }
 0x217   : > { %1611 = vst.msk [vmem:[#allocation2 + $0xb0] sm:$0xff] %vm1588_vm13, %v1543_v12 }
 0x219   : > { %v1545_v13 = vpop.permute.xlu1 %1544 }
 0x21a   : > { %v983_v14 = vpop.permute.xlu0 %982  ;;  %1612 = vst.msk [vmem:[#allocation2 + $0xb8] sm:$0xff] %vm1588_vm13, %v1545_v13 }
 0x21b   : > { %1054 = vst.msk [vmem:[#allocation2 + $0xc8] sm:$0xff] %vm1028_vm9, %v983_v14 }
 0x21d   : > { %v1174_v15 = vpop.permute.xlu1 %1173 }
 0x21e   : > { %v1724_v8 = vpop.permute.xlu0 %1723  ;;  %1247 = vst.msk [vmem:[#allocation2 + $0xc0] sm:$0xff] %vm1221_vm10, %v1174_v15 }
 0x21f   : > { %1793 = vst.msk [vmem:[#allocation2 + $0xb0] sm:$0xff] %vm1769_vm15, %v1724_v8  ;;  %v2665_v16 = vpop.f32.mrf.mxu0 }
 0x220   : > { %v2037_v1 = vadd.f32 %v2665_v16, %v3691_v26 }
 0x221   : > { %v2031_v20 = vpop.f32.mrf.mxu0  ;;  %v1726_v22 = vpop.permute.xlu1 %1725 }
 0x222   : > { %2348 = vst.msk [vmem:[%s3701_s6 + $0x28] sm:$0xff] %vm279_vm1, %v2037_v1  ;;  %v2032_v18 = vadd.f32 %v3691_v26, %v2031_v20  ;;  %v1176_v23 = vpop.permute.xlu0 %1175  ;;  %v2246_v57 = vmul.f32 %v2037_v1, %v2037_v1  ;;  %v2179_v9 = vsel %vm279_vm1, %v2037_v1, 0.0 }
 0x223   : > { %1794 = vst.msk [vmem:[#allocation2 + $0xb8] sm:$0x7f] %vm1771_vm0, %v1726_v22 }
 0x224   : > { %1248 = vst.msk [vmem:[#allocation2 + $0xc8] sm:$0x7f] %vm1223_vm11, %v1176_v23  ;;  %v2177_v3 = vsel %vm279_vm1, %v2032_v18, 0.0  ;;  %v2245_v24 = vmul.f32 %v2032_v18, %v2032_v18  ;;  %v2282_v31 = vsel %vm279_vm1, %v2246_v57, 0.0 }
 0x225   : > { %2347 = vst.msk [vmem:[%s3701_s6 + $0x20] sm:$0xff] %vm279_vm1, %v2032_v18  ;;  %v2178_v25 = vadd.f32 %v2177_v3, %v2176_v63  ;;  %v791_v21 = vpop.permute.xlu1 %790 }
 0x226   : > { %v2280_v49 = vsel %vm279_vm1, %v2245_v24, 0.0  ;;  %v1365_v27 = vpop.permute.xlu0 %1364  ;;  %v1823_v28 = vld [vmem:[#allocation2 + $0xb0] sm:$0xff]  ;;  %862 = vst.msk [vmem:[#allocation2 + $0xd1] sm:$0xff] %vm834_vm8, %v791_v21 }
 0x227   : > { %v2281_v29 = vadd.f32 %v2280_v49, %v2279_v0  ;;  %1432 = vst.msk [vmem:[#allocation2 + $0xc1] sm:$0xff] %vm1406_vm12, %v1365_v27  ;;  %2690 = vmatprep.mubr.msk.f32.mxu1 %vm209_vm3, %v1823_v28  ;;  %v2180_v30 = vadd.f32 %v2179_v9, %v2178_v25 }
 0x229   : > { %v2283_v59 = vadd.f32 %v2282_v31, %v2281_v29  ;;  %v1367_v32 = vpop.permute.xlu1 %1366 }
 0x22a   : > { %v793_v33 = vpop.permute.xlu0 %792  ;;  %v1824_v34 = vld [vmem:[#allocation2 + $0xb8] sm:$0xff]  ;;  %1433 = vst.msk [vmem:[#allocation2 + $0xc9] sm:$0x7f] %vm1408_vm14, %v1367_v32 }
 0x22b   : > { %863 = vst.msk [vmem:[#allocation2 + $0xd9] sm:$0x7f] %vm836_vm7, %v793_v33  ;;  %2691 = vmatmul.mubr.msk.f32.gmra.mxu1 %vm209_vm3, %v1824_v34 }
 0x22d   : > { %v985_v35 = vpop.permute.xlu1 %984 }
 0x22e   : > { %v1547_v5 = vpop.permute.xlu0 %1546  ;;  %1055 = vst.msk [vmem:[#allocation2 + $0xd0] sm:$0xff] %vm1028_vm9, %v985_v35 }
 0x22f   : > { %1613 = vst.msk [vmem:[#allocation2 + $0xc0] sm:$0xff] %vm1588_vm13, %v1547_v5 }
 0x231   : > { %v1549_v36 = vpop.permute.xlu1 %1548 }
 0x232   : > { %v987_v37 = vpop.permute.xlu0 %986  ;;  %1614 = vst.msk [vmem:[#allocation2 + $0xc8] sm:$0xff] %vm1588_vm13, %v1549_v36 }
 0x233   : > { %1056 = vst.msk [vmem:[#allocation2 + $0xd8] sm:$0xff] %vm1028_vm9, %v987_v37  ;;  %v2668_v11 = vpop.f32.mrf.mxu0 }
 0x234   : > { %v2047_v38 = vadd.f32 %v2668_v11, %v3691_v26 }
 0x235   : > { %v2041_v39 = vpop.f32.mrf.mxu0  ;;  %v1178_v40 = vpop.permute.xlu1 %1177 }
 0x236   : > { %2350 = vst.msk [vmem:[%s3701_s6 + $0x38] sm:$0xff] %vm279_vm1, %v2047_v38  ;;  %v2042_v51 = vadd.f32 %v3691_v26, %v2041_v39  ;;  %v1728_v41 = vpop.permute.xlu0 %1727  ;;  %v2248_v42 = vmul.f32 %v2047_v38, %v2047_v38  ;;  %v2183_v6 = vsel %vm279_vm1, %v2047_v38, 0.0 }
 0x237   : > { %1249 = vst.msk [vmem:[#allocation2 + $0xd0] sm:$0xff] %vm1221_vm10, %v1178_v40 }
 0x238   : > { %1795 = vst.msk [vmem:[#allocation2 + $0xc0] sm:$0xff] %vm1769_vm15, %v1728_v41  ;;  %v2181_v43 = vsel %vm279_vm1, %v2042_v51, 0.0  ;;  %v2247_v44 = vmul.f32 %v2042_v51, %v2042_v51  ;;  %v2286_v53 = vsel %vm279_vm1, %v2248_v42, 0.0 }
 0x239   : > { %2349 = vst.msk [vmem:[%s3701_s6 + $0x30] sm:$0xff] %vm279_vm1, %v2042_v51  ;;  %v2182_v45 = vadd.f32 %v2181_v43, %v2180_v30  ;;  %v1730_v48 = vpop.permute.xlu1 %1729 }
 0x23a   : > { %v2284_v46 = vsel %vm279_vm1, %v2247_v44, 0.0  ;;  %v1180_v17 = vpop.permute.xlu0 %1179  ;;  %1796 = vst.msk [vmem:[#allocation2 + $0xc8] sm:$0x7f] %vm1771_vm0, %v1730_v48 }
 0x23b   : > { %v2285_v50 = vadd.f32 %v2284_v46, %v2283_v59  ;;  %1250 = vst.msk [vmem:[#allocation2 + $0xd8] sm:$0x7f] %vm1223_vm11, %v1180_v17  ;;  %v2184_v52 = vadd.f32 %v2183_v6, %v2182_v45 }
 0x23d   : > { %v2287_v2 = vadd.f32 %v2286_v53, %v2285_v50  ;;  %v795_v54 = vpop.permute.xlu1 %794 }
 0x23e   : > { %v1369_v56 = vpop.permute.xlu0 %1368  ;;  %864 = vst.msk [vmem:[#allocation2 + $0xe1] sm:$0xff] %vm834_vm8, %v795_v54 }
 0x23f   : > { %v1825_v58 = vld [vmem:[#allocation2 + $0xc0] sm:$0xff]  ;;  %1434 = vst.msk [vmem:[#allocation2 + $0xd1] sm:$0xff] %vm1406_vm12, %v1369_v56 }
 0x240   : > { %2693 = vmatprep.mubr.msk.f32.mxu1 %vm209_vm3, %v1825_v58 }
 0x241   : > { %v1371_v60 = vpop.permute.xlu1 %1370  ;;  %v1826_v7 = vld [vmem:[#allocation2 + $0xc8] sm:$0xff] }
 0x242   : > { %v797_v4 = vpop.permute.xlu0 %796  ;;  %1435 = vst.msk [vmem:[#allocation2 + $0xd9] sm:$0x7f] %vm1408_vm14, %v1371_v60  ;;  %2694 = vmatmul.mubr.msk.f32.gmra.mxu1 %vm209_vm3, %v1826_v7 }
 0x243   : > { %865 = vst.msk [vmem:[#allocation2 + $0xe9] sm:$0x7f] %vm836_vm7, %v797_v4 }
 0x245   : > { %v989_v47 = vpop.permute.xlu1 %988 }
 0x246   : > { %v1551_v61 = vpop.permute.xlu0 %1550  ;;  %1057 = vst.msk [vmem:[#allocation2 + $0xe0] sm:$0xff] %vm1028_vm9, %v989_v47 }
 0x247   : > { %1615 = vst.msk [vmem:[#allocation2 + $0xd0] sm:$0xff] %vm1588_vm13, %v1551_v61  ;;  %v2671_v19 = vpop.f32.mrf.mxu0 }
 0x248   : > { %v2057_v62 = vadd.f32 %v2671_v19, %v3691_v26 }
 0x249   : > { %v2051_v63 = vpop.f32.mrf.mxu0  ;;  %v1553_v0 = vpop.permute.xlu1 %1552 }
 0x24a   : > { %2352 = vst.msk [vmem:[%s3701_s6 + $0x48] sm:$0xff] %vm279_vm1, %v2057_v62  ;;  %v2052_v55 = vadd.f32 %v3691_v26, %v2051_v63  ;;  %v991_v10 = vpop.permute.xlu0 %990  ;;  %v2250_v12 = vmul.f32 %v2057_v62, %v2057_v62  ;;  %v2187_v8 = vsel %vm279_vm1, %v2057_v62, 0.0 }
 0x24b   : > { %1616 = vst.msk [vmem:[#allocation2 + $0xd8] sm:$0xff] %vm1588_vm13, %v1553_v0 }
 0x24c   : > { %1058 = vst.msk [vmem:[#allocation2 + $0xe8] sm:$0xff] %vm1028_vm9, %v991_v10  ;;  %v2185_v13 = vsel %vm279_vm1, %v2052_v55, 0.0  ;;  %v2249_v14 = vmul.f32 %v2052_v55, %v2052_v55  ;;  %v2290_v23 = vsel %vm279_vm1, %v2250_v12, 0.0 }
 0x24d   : > { %2351 = vst.msk [vmem:[%s3701_s6 + $0x40] sm:$0xff] %vm279_vm1, %v2052_v55  ;;  %v2186_v15 = vadd.f32 %v2185_v13, %v2184_v52  ;;  %v1182_v1 = vpop.permute.xlu1 %1181 }
 0x24e   : > { %v2288_v16 = vsel %vm279_vm1, %v2249_v14, 0.0  ;;  %v1732_v20 = vpop.permute.xlu0 %1731  ;;  %1251 = vst.msk [vmem:[#allocation2 + $0xe0] sm:$0xff] %vm1221_vm10, %v1182_v1 }
 0x24f   : > { %v2289_v18 = vadd.f32 %v2288_v16, %v2287_v2  ;;  %1797 = vst.msk [vmem:[#allocation2 + $0xd0] sm:$0xff] %vm1769_vm15, %v1732_v20  ;;  %v2188_v22 = vadd.f32 %v2187_v8, %v2186_v15 }
 0x251   : > { %v2291_v57 = vadd.f32 %v2290_v23, %v2289_v18  ;;  %v1734_v3 = vpop.permute.xlu1 %1733 }
 0x252   : > { %v1184_v24 = vpop.permute.xlu0 %1183  ;;  %1798 = vst.msk [vmem:[#allocation2 + $0xd8] sm:$0x7f] %vm1771_vm0, %v1734_v3 }
 0x253   : > { %1252 = vst.msk [vmem:[#allocation2 + $0xe8] sm:$0x7f] %vm1223_vm11, %v1184_v24 }
 0x255   : > { %v1375_v25 = vpop.permute.xlu1 %1374 }
 0x256   : > { %v1373_v9 = vpop.permute.xlu0 %1372  ;;  %v1827_v49 = vld [vmem:[#allocation2 + $0xd0] sm:$0xff]  ;;  %1437 = vst.msk [vmem:[#allocation2 + $0xe9] sm:$0x7f] %vm1408_vm14, %v1375_v25 }
 0x257   : > { %1436 = vst.msk [vmem:[#allocation2 + $0xe1] sm:$0xff] %vm1406_vm12, %v1373_v9  ;;  %2696 = vmatprep.mubr.msk.f32.mxu1 %vm209_vm3, %v1827_v49 }
 0x259   : > { %v1557_v21 = vpop.permute.xlu1 %1556  ;;  %v1828_v28 = vld [vmem:[#allocation2 + $0xd8] sm:$0xff] }
 0x25a   : > { %v1555_v27 = vpop.permute.xlu0 %1554  ;;  %1618 = vst.msk [vmem:[#allocation2 + $0xe8] sm:$0xff] %vm1588_vm13, %v1557_v21  ;;  %v2674_v29 = vpop.f32.mrf.mxu0  ;;  %2697 = vmatmul.mubr.msk.f32.gmra.mxu1 %vm209_vm3, %v1828_v28 }
 0x25b   : > { %1617 = vst.msk [vmem:[#allocation2 + $0xe0] sm:$0xff] %vm1588_vm13, %v1555_v27  ;;  %v2067_v30 = vadd.f32 %v2674_v29, %v3691_v26 }
 0x25c   : > { %v2061_v31 = vpop.f32.mrf.mxu0 }
 0x25d   : > { %2354 = vst.msk [vmem:[%s3701_s6 + $0x58] sm:$0xff] %vm279_vm1, %v2067_v30  ;;  %v2062_v59 = vadd.f32 %v3691_v26, %v2061_v31  ;;  %v1738_v32 = vpop.permute.xlu1 %1737  ;;  %v2252_v34 = vmul.f32 %v2067_v30, %v2067_v30  ;;  %v2191_v37 = vsel %vm279_vm1, %v2067_v30, 0.0 }
 0x25e   : > { %v1736_v33 = vpop.permute.xlu0 %1735  ;;  %1800 = vst.msk [vmem:[#allocation2 + $0xe8] sm:$0x7f] %vm1771_vm0, %v1738_v32 }
 0x25f   : > { %1799 = vst.msk [vmem:[#allocation2 + $0xe0] sm:$0xff] %vm1769_vm15, %v1736_v33  ;;  %v2189_v35 = vsel %vm279_vm1, %v2062_v59, 0.0  ;;  %v2251_v5 = vmul.f32 %v2062_v59, %v2062_v59  ;;  %v2294_v41 = vsel %vm279_vm1, %v2252_v34, 0.0 }
 0x260   : > { %2353 = vst.msk [vmem:[%s3701_s6 + $0x50] sm:$0xff] %vm279_vm1, %v2062_v59  ;;  %v2190_v36 = vadd.f32 %v2189_v35, %v2188_v22 }
 0x261   : > { %v2292_v11 = vsel %vm279_vm1, %v2251_v5, 0.0  ;;  %v801_v38 = vpop.permute.xlu1 %800 }
 0x262   : > { %v799_v39 = vpop.permute.xlu0 %798  ;;  %v2293_v51 = vadd.f32 %v2292_v11, %v2291_v57  ;;  %867 = vst.msk [vmem:[#allocation2 + $0xf9] sm:$0x7f] %vm836_vm7, %v801_v38  ;;  %v2192_v40 = vadd.f32 %v2191_v37, %v2190_v36 }
 0x263   : > { %866 = vst.msk [vmem:[#allocation2 + $0xf1] sm:$0xff] %vm834_vm8, %v799_v39 }
 0x264   : > { %v2295_v42 = vadd.f32 %v2294_v41, %v2293_v51 }
 0x265   : > { %v995_v43 = vpop.permute.xlu1 %994  ;;  %v1830_v6 = vld [vmem:[#allocation2 + $0xe8] sm:$0xff] }
 0x266   : > { %v993_v44 = vpop.permute.xlu0 %992  ;;  %v1829_v45 = vld [vmem:[#allocation2 + $0xe0] sm:$0xff]  ;;  %1060 = vst.msk [vmem:[#allocation2 + $0xf8] sm:$0xff] %vm1028_vm9, %v995_v43 }
 0x267   : > { %1059 = vst.msk [vmem:[#allocation2 + $0xf0] sm:$0xff] %vm1028_vm9, %v993_v44  ;;  %2699 = vmatprep.mubr.msk.f32.mxu1 %vm209_vm3, %v1829_v45 }
 0x268   : > { %2700 = vmatmul.mubr.msk.f32.gmra.mxu1 %vm209_vm3, %v1830_v6 }
 0x269   : > { %v1188_v46 = vpop.permute.xlu1 %1187 }
 0x26a   : > { %v1186_v48 = vpop.permute.xlu0 %1185  ;;  %1254 = vst.msk [vmem:[#allocation2 + $0xf8] sm:$0x7f] %vm1223_vm11, %v1188_v46 }
 0x26b   : > { %1253 = vst.msk [vmem:[#allocation2 + $0xf0] sm:$0xff] %vm1221_vm10, %v1186_v48 }
 0x271   : > { %v1832_v50 = vld [vmem:[#allocation2 + $0xf8] sm:$0xff] }
 0x272   : > { %v1831_v17 = vld [vmem:[#allocation2 + $0xf0] sm:$0xff]  ;;  %v2677_v52 = vpop.f32.mrf.mxu0 }
 0x273   : > { %2702 = vmatprep.mubr.msk.f32.mxu1 %vm209_vm3, %v1831_v17  ;;  %v2077_v53 = vadd.f32 %v2677_v52, %v3691_v26 }
 0x274   : > { %2703 = vmatmul.mubr.msk.f32.gmra.mxu1 %vm209_vm3, %v1832_v50  ;;  %v2071_v2 = vpop.f32.mrf.mxu0 }
 0x275   : > { %2356 = vst.msk [vmem:[%s3701_s6 + $0x68] sm:$0xff] %vm279_vm1, %v2077_v53  ;;  %v2072_v54 = vadd.f32 %v3691_v26, %v2071_v2  ;;  %v2254_v56 = vmul.f32 %v2077_v53, %v2077_v53  ;;  %v2195_v7 = vsel %vm279_vm1, %v2077_v53, 0.0 }
 0x277   : > { %v2193_v58 = vsel %vm279_vm1, %v2072_v54, 0.0  ;;  %v2253_v60 = vmul.f32 %v2072_v54, %v2072_v54  ;;  %2355 = vst.msk [vmem:[%s3701_s6 + $0x60] sm:$0xff] %vm279_vm1, %v2072_v54  ;;  %v2298_v62 = vsel %vm279_vm1, %v2254_v56, 0.0 }
 0x278   : > { %v2194_v4 = vadd.f32 %v2193_v58, %v2192_v40 }
 0x279   : > { %v2296_v47 = vsel %vm279_vm1, %v2253_v60, 0.0 }
 0x27a   : > { %v2297_v61 = vadd.f32 %v2296_v47, %v2295_v42  ;;  %v2196_v19 = vadd.f32 %v2195_v7, %v2194_v4 }
 0x27c   : > { %v2299_v63 = vadd.f32 %v2298_v62, %v2297_v61 }
 0x28a   : > { %v2680_v55 = vpop.f32.mrf.mxu0 }
 0x28b   : > { %v2087_v0 = vadd.f32 %v2680_v55, %v3691_v26 }
 0x28c   : > { %v2081_v10 = vpop.f32.mrf.mxu0 }
 0x28d   : > { %2358 = vst.msk [vmem:[%s3701_s6 + $0x78] sm:$0xff] %vm279_vm1, %v2087_v0  ;;  %v2082_v12 = vadd.f32 %v3691_v26, %v2081_v10  ;;  %v2256_v13 = vmul.f32 %v2087_v0, %v2087_v0  ;;  %v2199_v16 = vsel %vm279_vm1, %v2087_v0, 0.0 }
 0x28f   : > { %v2197_v14 = vsel %vm279_vm1, %v2082_v12, 0.0  ;;  %v2255_v15 = vmul.f32 %v2082_v12, %v2082_v12  ;;  %2357 = vst.msk [vmem:[%s3701_s6 + $0x70] sm:$0xff] %vm279_vm1, %v2082_v12  ;;  %v2302_v22 = vsel %vm279_vm1, %v2256_v13, 0.0 }
 0x290   : > { %v2198_v8 = vadd.f32 %v2197_v14, %v2196_v19 }
 0x291   : > { %v2300_v1 = vsel %vm279_vm1, %v2255_v15, 0.0 }
 0x292   : > { %v2301_v20 = vadd.f32 %v2300_v1, %v2299_v63  ;;  %v2200_v18 = vadd.f32 %v2199_v16, %v2198_v8 }
 0x294   : > { %v2303_v23 = vadd.f32 %v2302_v22, %v2301_v20 }
 0x2a2   : > { %v2683_v57 = vpop.f32.mrf.mxu1 }
 0x2a3   : > { %v2097_v3 = vadd.f32 %v2683_v57, %v3691_v26 }
 0x2a4   : > { %v2091_v24 = vpop.f32.mrf.mxu1 }
 0x2a5   : > { %2360 = vst.msk [vmem:[%s3701_s6 + $0x88] sm:$0xff] %vm279_vm1, %v2097_v3  ;;  %v2092_v25 = vadd.f32 %v3691_v26, %v2091_v24  ;;  %v2258_v9 = vmul.f32 %v2097_v3, %v2097_v3  ;;  %v2203_v28 = vsel %vm279_vm1, %v2097_v3, 0.0 }
 0x2a7   : > { %v2201_v49 = vsel %vm279_vm1, %v2092_v25, 0.0  ;;  %v2257_v21 = vmul.f32 %v2092_v25, %v2092_v25  ;;  %2359 = vst.msk [vmem:[%s3701_s6 + $0x80] sm:$0xff] %vm279_vm1, %v2092_v25  ;;  %v2306_v59 = vsel %vm279_vm1, %v2258_v9, 0.0 }
 0x2a8   : > { %v2202_v27 = vadd.f32 %v2201_v49, %v2200_v18 }
 0x2a9   : > { %v2304_v29 = vsel %vm279_vm1, %v2257_v21, 0.0 }
 0x2aa   : > { %v2305_v30 = vadd.f32 %v2304_v29, %v2303_v23  ;;  %v2204_v31 = vadd.f32 %v2203_v28, %v2202_v27 }
 0x2ac   : > { %v2307_v32 = vadd.f32 %v2306_v59, %v2305_v30 }
 0x2ba   : > { %v2686_v33 = vpop.f32.mrf.mxu1 }
 0x2bb   : > { %v2107_v34 = vadd.f32 %v2686_v33, %v3691_v26 }
 0x2bc   : > { %v2101_v35 = vpop.f32.mrf.mxu1 }
 0x2bd   : > { %2362 = vst.msk [vmem:[%s3701_s6 + $0x98] sm:$0xff] %vm279_vm1, %v2107_v34  ;;  %v2102_v5 = vadd.f32 %v3691_v26, %v2101_v35  ;;  %v2260_v36 = vmul.f32 %v2107_v34, %v2107_v34  ;;  %v2207_v39 = vsel %vm279_vm1, %v2107_v34, 0.0 }
 0x2bf   : > { %v2205_v37 = vsel %vm279_vm1, %v2102_v5, 0.0  ;;  %v2259_v11 = vmul.f32 %v2102_v5, %v2102_v5  ;;  %2361 = vst.msk [vmem:[%s3701_s6 + $0x90] sm:$0xff] %vm279_vm1, %v2102_v5  ;;  %v2310_v42 = vsel %vm279_vm1, %v2260_v36, 0.0 }
 0x2c0   : > { %v2206_v38 = vadd.f32 %v2205_v37, %v2204_v31 }
 0x2c1   : > { %v2308_v51 = vsel %vm279_vm1, %v2259_v11, 0.0 }
 0x2c2   : > { %v2309_v40 = vadd.f32 %v2308_v51, %v2307_v32  ;;  %v2208_v41 = vadd.f32 %v2207_v39, %v2206_v38 }
 0x2c4   : > { %v2311_v43 = vadd.f32 %v2310_v42, %v2309_v40 }
 0x2d2   : > { %v2689_v44 = vpop.f32.mrf.mxu1 }
 0x2d3   : > { %v2117_v45 = vadd.f32 %v2689_v44, %v3691_v26 }
 0x2d4   : > { %v2111_v6 = vpop.f32.mrf.mxu1 }
 0x2d5   : > { %2364 = vst.msk [vmem:[%s3701_s6 + $0xa8] sm:$0xff] %vm279_vm1, %v2117_v45  ;;  %v2112_v46 = vadd.f32 %v3691_v26, %v2111_v6  ;;  %v2262_v48 = vmul.f32 %v2117_v45, %v2117_v45  ;;  %v2211_v53 = vsel %vm279_vm1, %v2117_v45, 0.0 }
 0x2d7   : > { %v2209_v17 = vsel %vm279_vm1, %v2112_v46, 0.0  ;;  %v2261_v50 = vmul.f32 %v2112_v46, %v2112_v46  ;;  %2363 = vst.msk [vmem:[%s3701_s6 + $0xa0] sm:$0xff] %vm279_vm1, %v2112_v46  ;;  %v2314_v58 = vsel %vm279_vm1, %v2262_v48, 0.0 }
 0x2d8   : > { %v2210_v52 = vadd.f32 %v2209_v17, %v2208_v41 }
 0x2d9   : > { %v2312_v2 = vsel %vm279_vm1, %v2261_v50, 0.0 }
 0x2da   : > { %v2313_v54 = vadd.f32 %v2312_v2, %v2311_v43  ;;  %v2212_v56 = vadd.f32 %v2211_v53, %v2210_v52 }
 0x2dc   : > { %v2315_v60 = vadd.f32 %v2314_v58, %v2313_v54 }
 0x2eb   : > { %v2692_v4 = vpop.f32.mrf.mxu1 }
 0x2ec   : > { %v2127_v7 = vadd.f32 %v2692_v4, %v3691_v26 }
 0x2ed   : > { %v2121_v47 = vpop.f32.mrf.mxu1 }
 0x2ee   : > { %2366 = vst.msk [vmem:[%s3701_s6 + $0xb8] sm:$0xff] %vm279_vm1, %v2127_v7  ;;  %v2122_v61 = vadd.f32 %v3691_v26, %v2121_v47  ;;  %v2264_v1 = vmul.f32 %v2127_v7, %v2127_v7  ;;  %v2215_v22 = vsel %vm279_vm1, %v2127_v7, 0.0 }
 0x2f0   : > { %2365 = vst.msk [vmem:[%s3701_s6 + $0xb0] sm:$0xff] %vm279_vm1, %v2122_v61  ;;  %v2263_v12 = vmul.f32 %v2122_v61, %v2122_v61  ;;  %v2213_v15 = vsel %vm279_vm1, %v2122_v61, 0.0  ;;  %v2318_v3 = vsel %vm279_vm1, %v2264_v1, 0.0 }
 0x2f1   : > { %v2214_v16 = vadd.f32 %v2213_v15, %v2212_v56 }
 0x2f2   : > { %v2316_v8 = vsel %vm279_vm1, %v2263_v12, 0.0 }
 0x2f3   : > { %v2317_v18 = vadd.f32 %v2316_v8, %v2315_v60  ;;  %v2216_v57 = vadd.f32 %v2215_v22, %v2214_v16 }
 0x2f5   : > { %v2319_v9 = vadd.f32 %v2318_v3, %v2317_v18 }
 0x302   : > { %v2695_v19 = vpop.f32.mrf.mxu1 }
 0x303   : > { %v2137_v62 = vadd.f32 %v2695_v19, %v3691_v26 }
 0x304   : > { %v2131_v63 = vpop.f32.mrf.mxu1 }
 0x305   : > { %2368 = vst.msk [vmem:[%s3701_s6 + $0xc8] sm:$0xff] %vm279_vm1, %v2137_v62  ;;  %v2132_v55 = vadd.f32 %v3691_v26, %v2131_v63  ;;  %v2266_v21 = vmul.f32 %v2137_v62, %v2137_v62  ;;  %v2219_v31 = vsel %vm279_vm1, %v2137_v62, 0.0 }
 0x307   : > { %2367 = vst.msk [vmem:[%s3701_s6 + $0xc0] sm:$0xff] %vm279_vm1, %v2132_v55  ;;  %v2265_v20 = vmul.f32 %v2132_v55, %v2132_v55  ;;  %v2217_v23 = vsel %vm279_vm1, %v2132_v55, 0.0  ;;  %v2322_v34 = vsel %vm279_vm1, %v2266_v21, 0.0 }
 0x308   : > { %v2218_v25 = vadd.f32 %v2217_v23, %v2216_v57 }
 0x309   : > { %v2320_v24 = vsel %vm279_vm1, %v2265_v20, 0.0 }
 0x30a   : > { %v2321_v29 = vadd.f32 %v2320_v24, %v2319_v9  ;;  %v2220_v33 = vadd.f32 %v2219_v31, %v2218_v25 }
 0x30c   : > { %v2323_v36 = vadd.f32 %v2322_v34, %v2321_v29 }
 0x31a   : > { %v2698_v0 = vpop.f32.mrf.mxu1 }
 0x31b   : > { %v2147_v10 = vadd.f32 %v2698_v0, %v3691_v26 }
 0x31c   : > { %v2141_v13 = vpop.f32.mrf.mxu1 }
 0x31d   : > { %2370 = vst.msk [vmem:[%s3701_s6 + $0xd8] sm:$0xff] %vm279_vm1, %v2147_v10  ;;  %v2142_v14 = vadd.f32 %v3691_v26, %v2141_v13  ;;  %v2268_v37 = vmul.f32 %v2147_v10, %v2147_v10  ;;  %v2223_v39 = vsel %vm279_vm1, %v2147_v10, 0.0 }
 0x31f   : > { %2369 = vst.msk [vmem:[%s3701_s6 + $0xd0] sm:$0xff] %vm279_vm1, %v2142_v14  ;;  %v2267_v27 = vmul.f32 %v2142_v14, %v2142_v14  ;;  %v2221_v59 = vsel %vm279_vm1, %v2142_v14, 0.0  ;;  %v2326_v41 = vsel %vm279_vm1, %v2268_v37, 0.0 }
 0x320   : > { %v2222_v5 = vadd.f32 %v2221_v59, %v2220_v33 }
 0x321   : > { %v2324_v35 = vsel %vm279_vm1, %v2267_v27, 0.0 }
 0x322   : > { %v2325_v38 = vadd.f32 %v2324_v35, %v2323_v36  ;;  %v2224_v40 = vadd.f32 %v2223_v39, %v2222_v5 }
 0x324   : > { %v2327_v44 = vadd.f32 %v2326_v41, %v2325_v38 }
 0x328   : > { %v2701_v49 = vpop.f32.mrf.mxu1 }
 0x329   : > { %v2157_v28 = vadd.f32 %v2701_v49, %v3691_v26 }
 0x32a   : > { %v2151_v30 = vpop.f32.mrf.mxu1 }
 0x32b   : > { %2372 = vst.msk [vmem:[%s3701_s6 + $0xe8] sm:$0xff] %vm279_vm1, %v2157_v28  ;;  %v2152_v32 = vadd.f32 %v3691_v26, %v2151_v30  ;;  %v2270_v6 = vmul.f32 %v2157_v28, %v2157_v28  ;;  %v2227_v50 = vsel %vm279_vm1, %v2157_v28, 0.0 }
 0x32d   : > { %2371 = vst.msk [vmem:[%s3701_s6 + $0xe0] sm:$0xff] %vm279_vm1, %v2152_v32  ;;  %v2269_v11 = vmul.f32 %v2152_v32, %v2152_v32  ;;  %v2225_v51 = vsel %vm279_vm1, %v2152_v32, 0.0  ;;  %v2330_v2 = vsel %vm279_vm1, %v2270_v6, 0.0 }
 0x32e   : > { %v2226_v43 = vadd.f32 %v2225_v51, %v2224_v40 }
 0x32f   : > { %v2328_v42 = vsel %vm279_vm1, %v2269_v11, 0.0 }
 0x330   : > { %v2329_v48 = vadd.f32 %v2328_v42, %v2327_v44  ;;  %v2228_v53 = vadd.f32 %v2227_v50, %v2226_v43 }
 0x332   : > { %v2331_v4 = vadd.f32 %v2330_v2, %v2329_v48 }
 0x334   : > { %v2704_v45 = vpop.f32.mrf.mxu1 }
 0x335   : > { %v2167_v46 = vadd.f32 %v2704_v45, %v3691_v26 }
 0x336   : > { %v2161_v17 = vpop.f32.mrf.mxu1 }
 0x337   : > { %2374 = vst.msk [vmem:[%s3701_s6 + $0xf8] sm:$0xff] %vm279_vm1, %v2167_v46  ;;  %v2162_v52 = vadd.f32 %v3691_v26, %v2161_v17  ;;  %v2272_v54 = vmul.f32 %v2167_v46, %v2167_v46  ;;  %v2231_v7 = vsel %vm279_vm1, %v2167_v46, 0.0 }
 0x339   : > { %v2229_v56 = vsel %vm279_vm1, %v2162_v52, 0.0  ;;  %v2271_v58 = vmul.f32 %v2162_v52, %v2162_v52  ;;  %2373 = vst.msk [vmem:[%s3701_s6 + $0xf0] sm:$0xff] %vm279_vm1, %v2162_v52  ;;  %v2334_v26 = vsel %vm279_vm1, %v2272_v54, 0.0 }
 0x33a   : > { %v2230_v60 = vadd.f32 %v2229_v56, %v2228_v53 }
 0x33b   : > { %v2332_v47 = vsel %vm279_vm1, %v2271_v58, 0.0 }
 0x33c   : > { %v2232_v61 = vadd.f32 %v2231_v7, %v2230_v60  ;;  %v2333_v19 = vadd.f32 %v2332_v47, %v2331_v4 }
 0x33e   : > { %v2233_v62 = vrot.slane %v2232_v61, 4  ;;  %v2335_v63 = vadd.f32 %v2334_v26, %v2333_v19 }
 0x340   : > { %v2234_v55 = vadd.f32 %v2233_v62, %v2232_v61  ;;  %v2336_v0 = vrot.slane %v2335_v63, 4 }
 0x342   : > { %v2235_v10 = vrot.slane %v2234_v55, 2  ;;  %v2337_v12 = vadd.f32 %v2336_v0, %v2335_v63 }
 0x344   : > { %v2236_v13 = vadd.f32 %v2235_v10, %v2234_v55  ;;  %v2338_v14 = vrot.slane %v2337_v12, 2 }
 0x346   : > { %v2237_v15 = vrot.slane %v2236_v13, 1  ;;  %v2339_v8 = vadd.f32 %v2338_v14, %v2337_v12 }
 0x348   : > { %v2238_v16 = vadd.f32 %v2237_v15, %v2236_v13  ;;  %v2340_v1 = vrot.slane %v2339_v8, 1 }
 0x34a   : > { %2240 = vst.msk [vmem:[%s208_s26] sm:$0x1] %vm2239_vm2, %v2238_v16  ;;  %v2341_v20 = vadd.f32 %v2340_v1, %v2339_v8 }
 0x34c   : > { %2342 = vst.msk [vmem:[%s208_s26 + $0x1] sm:$0x1] %vm2239_vm2, %v2341_v20 }
 0x34d PF: > { %s15_s15 = sadd.s32 1, %s2746_s15  }
 0x34e   : > { %p12_p4 = scmp.ge.s32.totalorder %s15_s15, 4  }
 0x350   :  { %14 = sbr.rel (!%p12_p4) target bundleno = 1 (0x1), region = 77 }

</bundles_post_ra>
